<compile_context>
chip_gen: v7x
topology: tpu7x:2x2x1
jax: 0.10.0
libtpu: 0.0.40
codegen_flags: <defaults>
</compile_context>

<pallas_src>
import functools

import numpy as np
import jax
import jax.numpy as jnp
from jax import lax
from jax.experimental import pallas as pl
from jax.experimental.pallas import tpu as pltpu


# ----------------------------- host-side helpers ----------------------------

def _round_up(x, m):
    return ((x + m - 1) // m) * m


def _bilinear_matrix(n_in, n_out):
    """align_corners=True interpolation matrix A so that out = A @ in (1 axis)."""
    a = np.zeros((n_out, n_in), np.float32)
    if n_in == 1:
        a[:, 0] = 1.0
        return a
    for o in range(n_out):
        src = o * (n_in - 1) / (n_out - 1)
        i0 = min(int(np.floor(src)), n_in - 2)
        t = src - i0
        a[o, i0] += 1.0 - t
        a[o, i0 + 1] += t
    return a


def _blend_table(n_in, n_out):
    """Static (i0, i1, t) per output row for align_corners=True interpolation."""
    tab = []
    for o in range(n_out):
        if n_in == 1:
            tab.append((0, 0, 0.0))
            continue
        src = o * (n_in - 1) / (n_out - 1)
        i0 = min(int(np.floor(src)), n_in - 2)
        tab.append((i0, i0 + 1, float(src - i0)))
    return tuple(tab)


def _pick_vmem_limit_bytes():
    # Larger scoped-VMEM budget on v5e/v6e (128 MiB physical), tighter on v7x
    # (64 MiB physical); conservative fallback if the query is unavailable.
    try:
        cap = int(pltpu.get_tpu_info().vmem_capacity_bytes)
    except Exception:
        cap = 64 * 1024 * 1024
    return int(max(32 * 1024 * 1024,
                   min(cap - 16 * 1024 * 1024, 100 * 1024 * 1024)))


# ------------------------------ fused kernel --------------------------------

def _up_fused_kernel(x1r_ref, x2_ref, awt_ref,
                     w1_ref, b1_ref, w2_ref, b2_ref, w3_ref, b3_ref,
                     o_ref, a0_scr, cat_scr, z_scr,
                     *, c, c2, h, h2, w2, p, s, row_blend):
    """upsample+pad -> conv1(2x2) -> concat(skip) -> 3x3+ReLU -> 3x3+ReLU.

    Channel-major layout everywhere: activations are (Cin, rows*S) with row
    stride S (a multiple of 128); each KxK VALID conv is a tap-accumulated GEMM
    acc(Cout, M) += W_k(Cout, Cin) @ A[:, ki*S+kj : ki*S+kj+M].
    """
    f32 = jnp.float32
    hy = 2 * h
    wy = 2 * (awt_ref.shape[0])           # = 2*w
    m1 = hy * s                           # conv1 output positions
    m2 = (hy - 2) * s                     # conv2a output positions
    m3 = (hy - 4) * s                     # conv2b output positions

    # ---- 1) bilinear 2x upsample + ZeroPad2d((0,1,0,1)), flat channel-major --
    # Width interpolation (right zero-pad column and stride-pad columns are
    # baked into awt as zero columns): one batched MXU matmul, rows = H*2C.
    xw = jnp.dot(x1r_ref[...], awt_ref[...], preferred_element_type=f32)  # (h*c2, s)
    # Height interpolation: each output row blends <=2 input rows with static
    # weights, written straight into the flat activation at aligned columns.
    for r in range(hy):
        i0, i1, t = row_blend[r]
        s0 = xw[i0 * c2:(i0 + 1) * c2, :]
        s1 = xw[i1 * c2:(i1 + 1) * c2, :]
        a0_scr[:, r * s:(r + 1) * s] = (1.0 - t) * s0 + t * s1
    # Bottom ZeroPad2d row + one guard row (keeps all tap reads well defined).
    a0_scr[:, hy * s:(hy + 2) * s] = jnp.zeros((c2, 2 * s), f32)

    # ---- 2) conv1: 2x2, stride 1 (no activation) -----------------------------
    acc = jnp.broadcast_to(b1_ref[...], (c, m1)).astype(f32)
    for ki in range(2):
        for kj in range(2):
            off = ki * s + kj
            acc = acc + jnp.dot(w1_ref[ki * 2 + kj],
                                a0_scr[:, off:off + m1],
                                preferred_element_type=f32)
    # concat([x2, y1], dim=1): y1 goes into the lower channel half of cat_scr.
    cat_scr[c:c2, 0:m1] = acc
    cat_scr[c:c2, m1:m1 + s] = jnp.zeros((c, s), f32)          # guard row

    # ---- 3) crop-pad of the skip tensor into the upper channel half ----------
    cat_scr[0:c, :] = jnp.zeros((c, (hy + 1) * s), f32)        # zero pad + guard
    for rr in range(h2):
        off = (p + rr) * s + p
        cat_scr[0:c, off:off + w2] = x2_ref[:, rr, :]

    # ---- 4) conv2a: 3x3 on the concat (single dot per tap) + ReLU ------------
    acc = jnp.broadcast_to(b2_ref[...], (c, m2)).astype(f32)
    for ki in range(3):
        for kj in range(3):
            off = ki * s + kj
            acc = acc + jnp.dot(w2_ref[ki * 3 + kj],
                                cat_scr[:, off:off + m2],
                                preferred_element_type=f32)
    z_scr[:, 0:m2] = jnp.maximum(acc, 0.0)
    z_scr[:, m2:m2 + s] = jnp.zeros((c, s), f32)               # guard row

    # ---- 5) conv2b: 3x3 + ReLU, store the cropped NCHW output ----------------
    acc = jnp.broadcast_to(b3_ref[...], (c, m3)).astype(f32)
    for ki in range(3):
        for kj in range(3):
            off = ki * s + kj
            acc = acc + jnp.dot(w3_ref[ki * 3 + kj],
                                z_scr[:, off:off + m3],
                                preferred_element_type=f32)
    res = jnp.maximum(acc, 0.0).astype(o_ref.dtype)
    for r in range(hy - 4):
        o_ref[:, r, :] = res[:, r * s:r * s + (wy - 4)]


# ----------------------------- Up module ------------------------------------

def init_up_params(key, in_dim):
    k1, k2, k3 = jax.random.split(key, 3)

    def conv_init(k, cout, cin, kh, kw):
        kw_, kb_ = jax.random.split(k)
        bound = 1.0 / np.sqrt(cin * kh * kw)
        wgt = jax.random.uniform(kw_, (cout, cin, kh, kw), jnp.float32, -bound, bound)
        b = jax.random.uniform(kb_, (cout,), jnp.float32, -bound, bound)
        return wgt, b

    w1, b1 = conv_init(k1, in_dim, 2 * in_dim, 2, 2)        # self.conv1
    w2a, b2a = conv_init(k2, in_dim, 2 * in_dim, 3, 3)      # DoubleConv.conv[0]
    w2b, b2b = conv_init(k3, in_dim, in_dim, 3, 3)          # DoubleConv.conv[2]
    return dict(w1=w1, b1=b1, w2a=w2a, b2a=b2a, w2b=w2b, b2b=b2b)


def up_forward(params, x1, x2):
    """Pallas implementation of Up.forward.  x1, x2, output are NCHW float32."""
    n, c2, h, w = x1.shape
    c = c2 // 2
    hy, wy = 2 * h, 2 * w
    s = _round_up(2 * w + 1, 128)          # lane-aligned row stride
    l0 = (hy + 2) * s                      # upsampled+pad rows + 1 guard row
    l1 = (hy + 1) * s                      # concat rows + 1 guard row
    l2 = (hy - 1) * s                      # conv2a rows + 1 guard row

    # crop/pad of the skip: PyTorch uses ZeroPad2d(int((Hy1 - Hx2) / 2)).
    h2, w2 = int(x2.shape[2]), int(x2.shape[3])
    p = int((hy - h2) / 2)
    x2c = x2
    if p < 0:  # negative pad == crop
        x2c = x2[:, :, -p:h2 + p, -p:w2 + p]
        h2, w2 = int(x2c.shape[2]), int(x2c.shape[3])
        p = 0
    if h2 + 2 * p != hy or w2 + 2 * p != wy:
        # TODO(synk): odd size differences would need PyTorch's asymmetric pad.
        raise ValueError("x1/x2 spatial sizes incompatible (torch.cat would fail).")

    # x1 with each input row's channels contiguous: (N,2C,H,W)->(N,H*2C,W);
    # this is the only (tiny, x1-sized) host-side data movement.
    x1r = jnp.transpose(x1, (0, 2, 1, 3)).reshape(n, h * c2, w)

    # width-interp matrix (transposed) with the ZeroPad2d right column and the
    # lane-stride padding baked in as zero columns.
    awt = np.zeros((w, s), np.float32)
    awt[:, :2 * w] = _bilinear_matrix(w, 2 * w).T
    awt = jnp.asarray(awt)
    row_blend = _blend_table(h, hy)

    # weights: tap-major, (Cout, Cin) per tap (Cin order matches cat([x2, y1])).
    w1t = jnp.transpose(params["w1"], (2, 3, 0, 1)).reshape(4, c, c2)
    w2t = jnp.transpose(params["w2a"], (2, 3, 0, 1)).reshape(9, c, c2)
    w3t = jnp.transpose(params["w2b"], (2, 3, 0, 1)).reshape(9, c, c)
    b1 = params["b1"].reshape(c, 1)
    b2 = params["b2a"].reshape(c, 1)
    b3 = params["b2b"].reshape(c, 1)

    kernel = functools.partial(
        _up_fused_kernel,
        c=c, c2=c2, h=h, h2=h2, w2=w2, p=p, s=s, row_blend=row_blend)

    out = pl.pallas_call(
        kernel,
        out_shape=jax.ShapeDtypeStruct((n, c, hy - 4, wy - 4), jnp.float32),
        grid=(n,),
        in_specs=[
            pl.BlockSpec((None, h * c2, w), lambda i: (i, 0, 0)),
            pl.BlockSpec((None, c, h2, w2), lambda i: (i, 0, 0, 0)),
            pl.BlockSpec((w, s), lambda i: (0, 0)),
            pl.BlockSpec((4, c, c2), lambda i: (0, 0, 0)),
            pl.BlockSpec((c, 1), lambda i: (0, 0)),
            pl.BlockSpec((9, c, c2), lambda i: (0, 0, 0)),
            pl.BlockSpec((c, 1), lambda i: (0, 0)),
            pl.BlockSpec((9, c, c), lambda i: (0, 0, 0)),
            pl.BlockSpec((c, 1), lambda i: (0, 0)),
        ],
        out_specs=pl.BlockSpec((None, c, hy - 4, wy - 4), lambda i: (i, 0, 0, 0)),
        scratch_shapes=[
            pltpu.VMEM((c2, l0), jnp.float32),   # upsampled + padded x1 (flat)
            pltpu.VMEM((c2, l1), jnp.float32),   # concat([x2_pad, y1]) (flat)
            pltpu.VMEM((c, l2), jnp.float32),    # conv2a output (flat)
        ],
        compiler_params=pltpu.CompilerParams(
            dimension_semantics=("parallel",),
            vmem_limit_bytes=_pick_vmem_limit_bytes(),
        ),
    )(x1r, x2c, awt, w1t, b1, w2t, b2, w3t, b3)
    return out


# ----------------------- pure-JAX reference (validation) --------------------

def _ref_forward(params, x1, x2):
    n, c, h, w = x1.shape
    ah = jnp.asarray(_bilinear_matrix(h, 2 * h))
    aw = jnp.asarray(_bilinear_matrix(w, 2 * w))
    x1u = jnp.einsum("oh,nchw->ncow", ah, x1)
    x1u = jnp.einsum("pw,ncow->ncop", aw, x1u)
    x1p = jnp.pad(x1u, ((0, 0), (0, 0), (0, 1), (0, 1)))

    def conv(x, wgt, b, relu):
        y = lax.conv_general_dilated(
            x, wgt, window_strides=(1, 1), padding="VALID",
            dimension_numbers=("NCHW", "OIHW", "NCHW"))
        y = y + b[None, :, None, None]
        return jnp.maximum(y, 0.0) if relu else y

    y1 = conv(x1p, params["w1"], params["b1"], False)
    pad = (y1.shape[2] - x2.shape[2]) // 2
    x2p = jnp.pad(x2, ((0, 0), (0, 0), (pad, pad), (pad, pad)))
    xc = jnp.concatenate([x2p, y1], axis=1)
    z = conv(xc, params["w2a"], params["b2a"], True)
    z = conv(z, params["w2b"], params["b2b"], True)
    return z


if __name__ == "__main__":
    in_dim = 4
    key = jax.random.PRNGKey(0)
    kx1, kx2, kp = jax.random.split(key, 3)
    # x1: (N, 2*in_dim, H, W);  x2: (N, in_dim, 2H-2, 2W-2)  (UNet-style skip)
    x1 = jax.random.normal(kx1, (2, 2 * in_dim, 8, 8), jnp.float32)
    x2 = jax.random.normal(kx2, (2, in_dim, 14, 14), jnp.float32)
    params = init_up_params(kp, in_dim)

    up_fn = jax.jit(up_forward)
    out = jax.block_until_ready(up_fn(params, x1, x2))
    ref = jax.block_until_ready(_ref_forward(params, x1, x2))

    assert out.shape == (2, in_dim, 12, 12), out.shape
    assert out.dtype == jnp.float32
    np.testing.assert_allclose(np.asarray(out), np.asarray(ref), rtol=1e-3, atol=1e-3)
    print("KERNEL_OK")
</pallas_src>

<mosaic_0001>
module attributes {stable_mosaic.version = 11 : i64} {
  func.func @_up_fused_kernel(%arg0: i32, %arg1: memref<1x64x8xf32, #tpu.memory_space<vmem>>, %arg2: memref<1x4x14x14xf32, #tpu.memory_space<vmem>>, %arg3: memref<8x128xf32, #tpu.memory_space<vmem>>, %arg4: memref<4x4x8xf32, #tpu.memory_space<vmem>>, %arg5: memref<4x1xf32, #tpu.memory_space<vmem>>, %arg6: memref<9x4x8xf32, #tpu.memory_space<vmem>>, %arg7: memref<4x1xf32, #tpu.memory_space<vmem>>, %arg8: memref<9x4x4xf32, #tpu.memory_space<vmem>>, %arg9: memref<4x1xf32, #tpu.memory_space<vmem>>, %arg10: memref<1x4x12x12xf32, #tpu.memory_space<vmem>>, %arg11: memref<8x2304xf32, #tpu.memory_space<vmem>>, %arg12: memref<8x2176xf32, #tpu.memory_space<vmem>>, %arg13: memref<4x1920xf32, #tpu.memory_space<vmem>>) attributes {dimension_semantics = [#tpu.dimension_semantics<parallel>], iteration_bounds = array<i64: 2>, scalar_prefetch = 0 : i64, scratch_operands = 3 : i64, tpu.core_type = #tpu.core_type<tc>, window_params = [{transform_indices = @transform_0, window_bounds = array<i64: 1, 64, 8>}, {transform_indices = @transform_1, window_bounds = array<i64: 1, 4, 14, 14>}, {pipeline_mode = #tpu.pipeline_mode<synchronous>, transform_indices = @transform_2, window_bounds = array<i64: 8, 128>}, {pipeline_mode = #tpu.pipeline_mode<synchronous>, transform_indices = @transform_3, window_bounds = array<i64: 4, 4, 8>}, {pipeline_mode = #tpu.pipeline_mode<synchronous>, transform_indices = @transform_4, window_bounds = array<i64: 4, 1>}, {pipeline_mode = #tpu.pipeline_mode<synchronous>, transform_indices = @transform_5, window_bounds = array<i64: 9, 4, 8>}, {pipeline_mode = #tpu.pipeline_mode<synchronous>, transform_indices = @transform_6, window_bounds = array<i64: 4, 1>}, {pipeline_mode = #tpu.pipeline_mode<synchronous>, transform_indices = @transform_7, window_bounds = array<i64: 9, 4, 4>}, {pipeline_mode = #tpu.pipeline_mode<synchronous>, transform_indices = @transform_8, window_bounds = array<i64: 4, 1>}, {transform_indices = @transform_9, window_bounds = array<i64: 1, 4, 12, 12>}]} {
    %c0 = arith.constant 0 : index
    %c0_0 = arith.constant 0 : index
    %c0_1 = arith.constant 0 : index
    %0 = vector.load %arg1[%c0, %c0_0, %c0_1] : memref<1x64x8xf32, #tpu.memory_space<vmem>>, vector<1x64x8xf32>
    %1 = vector.shape_cast %0 : vector<1x64x8xf32> to vector<64x8xf32>
    %c0_2 = arith.constant 0 : index
    %c0_3 = arith.constant 0 : index
    %2 = vector.load %arg3[%c0_2, %c0_3] : memref<8x128xf32, #tpu.memory_space<vmem>>, vector<8x128xf32>
    %cst = arith.constant dense<0.000000e+00> : vector<64x128xf32>
    %3 = tpu.matmul %1, %2, %cst {dimension_numbers = #tpu.dot_dimension_numbers<[1], [0], [0], [1], [0, 0, 1, 1], [], []>} : vector<64x8xf32>, vector<8x128xf32>, vector<64x128xf32> -> vector<64x128xf32>
    %4 = vector.extract_strided_slice %3 {offsets = [0, 0], sizes = [8, 128], strides = [1, 1]} : vector<64x128xf32> to vector<8x128xf32>
    %5 = vector.extract_strided_slice %3 {offsets = [8, 0], sizes = [8, 128], strides = [1, 1]} : vector<64x128xf32> to vector<8x128xf32>
    %cst_4 = arith.constant 1.000000e+00 : f32
    %6 = vector.broadcast %cst_4 : f32 to vector<8x128xf32>
    %7 = arith.mulf %6, %4 : vector<8x128xf32>
    %cst_5 = arith.constant 0.000000e+00 : f32
    %8 = vector.broadcast %cst_5 : f32 to vector<8x128xf32>
    %9 = arith.mulf %8, %5 : vector<8x128xf32>
    %10 = arith.addf %7, %9 : vector<8x128xf32>
    %c0_6 = arith.constant 0 : index
    %c0_7 = arith.constant 0 : index
    %11 = vector.load %arg11[%c0_6, %c0_7] : memref<8x2304xf32, #tpu.memory_space<vmem>>, vector<8x128xf32>
    tpu.vector_store %arg11[%c0_6, %c0_7], %10 {strides = array<i32>} : memref<8x2304xf32, #tpu.memory_space<vmem>>, vector<8x128xf32>,
    %12 = vector.extract_strided_slice %3 {offsets = [0, 0], sizes = [8, 128], strides = [1, 1]} : vector<64x128xf32> to vector<8x128xf32>
    %13 = vector.extract_strided_slice %3 {offsets = [8, 0], sizes = [8, 128], strides = [1, 1]} : vector<64x128xf32> to vector<8x128xf32>
    %cst_8 = arith.constant 0.533333361 : f32
    %14 = vector.broadcast %cst_8 : f32 to vector<8x128xf32>
    %15 = arith.mulf %14, %12 : vector<8x128xf32>
    %cst_9 = arith.constant 0.466666669 : f32
    %16 = vector.broadcast %cst_9 : f32 to vector<8x128xf32>
    %17 = arith.mulf %16, %13 : vector<8x128xf32>
    %18 = arith.addf %15, %17 : vector<8x128xf32>
    %c0_10 = arith.constant 0 : index
    %c128 = arith.constant 128 : index
    %19 = vector.load %arg11[%c0_10, %c128] : memref<8x2304xf32, #tpu.memory_space<vmem>>, vector<8x128xf32>
    tpu.vector_store %arg11[%c0_10, %c128], %18 {strides = array<i32>} : memref<8x2304xf32, #tpu.memory_space<vmem>>, vector<8x128xf32>,
    %20 = vector.extract_strided_slice %3 {offsets = [0, 0], sizes = [8, 128], strides = [1, 1]} : vector<64x128xf32> to vector<8x128xf32>
    %21 = vector.extract_strided_slice %3 {offsets = [8, 0], sizes = [8, 128], strides = [1, 1]} : vector<64x128xf32> to vector<8x128xf32>
    %cst_11 = arith.constant 0.0666666701 : f32
    %22 = vector.broadcast %cst_11 : f32 to vector<8x128xf32>
    %23 = arith.mulf %22, %20 : vector<8x128xf32>
    %cst_12 = arith.constant 0.933333337 : f32
    %24 = vector.broadcast %cst_12 : f32 to vector<8x128xf32>
    %25 = arith.mulf %24, %21 : vector<8x128xf32>
    %26 = arith.addf %23, %25 : vector<8x128xf32>
    %c0_13 = arith.constant 0 : index
    %c256 = arith.constant 256 : index
    %27 = vector.load %arg11[%c0_13, %c256] : memref<8x2304xf32, #tpu.memory_space<vmem>>, vector<8x128xf32>
    tpu.vector_store %arg11[%c0_13, %c256], %26 {strides = array<i32>} : memref<8x2304xf32, #tpu.memory_space<vmem>>, vector<8x128xf32>,
    %28 = vector.extract_strided_slice %3 {offsets = [8, 0], sizes = [8, 128], strides = [1, 1]} : vector<64x128xf32> to vector<8x128xf32>
    %29 = vector.extract_strided_slice %3 {offsets = [16, 0], sizes = [8, 128], strides = [1, 1]} : vector<64x128xf32> to vector<8x128xf32>
    %cst_14 = arith.constant 6.000000e-01 : f32
    %30 = vector.broadcast %cst_14 : f32 to vector<8x128xf32>
    %31 = arith.mulf %30, %28 : vector<8x128xf32>
    %cst_15 = arith.constant 4.000000e-01 : f32
    %32 = vector.broadcast %cst_15 : f32 to vector<8x128xf32>
    %33 = arith.mulf %32, %29 : vector<8x128xf32>
    %34 = arith.addf %31, %33 : vector<8x128xf32>
    %c0_16 = arith.constant 0 : index
    %c384 = arith.constant 384 : index
    %35 = vector.load %arg11[%c0_16, %c384] : memref<8x2304xf32, #tpu.memory_space<vmem>>, vector<8x128xf32>
    tpu.vector_store %arg11[%c0_16, %c384], %34 {strides = array<i32>} : memref<8x2304xf32, #tpu.memory_space<vmem>>, vector<8x128xf32>,
    %36 = vector.extract_strided_slice %3 {offsets = [8, 0], sizes = [8, 128], strides = [1, 1]} : vector<64x128xf32> to vector<8x128xf32>
    %37 = vector.extract_strided_slice %3 {offsets = [16, 0], sizes = [8, 128], strides = [1, 1]} : vector<64x128xf32> to vector<8x128xf32>
    %cst_17 = arith.constant 0.13333334 : f32
    %38 = vector.broadcast %cst_17 : f32 to vector<8x128xf32>
    %39 = arith.mulf %38, %36 : vector<8x128xf32>
    %cst_18 = arith.constant 0.866666674 : f32
    %40 = vector.broadcast %cst_18 : f32 to vector<8x128xf32>
    %41 = arith.mulf %40, %37 : vector<8x128xf32>
    %42 = arith.addf %39, %41 : vector<8x128xf32>
    %c0_19 = arith.constant 0 : index
    %c512 = arith.constant 512 : index
    %43 = vector.load %arg11[%c0_19, %c512] : memref<8x2304xf32, #tpu.memory_space<vmem>>, vector<8x128xf32>
    tpu.vector_store %arg11[%c0_19, %c512], %42 {strides = array<i32>} : memref<8x2304xf32, #tpu.memory_space<vmem>>, vector<8x128xf32>,
    %44 = vector.extract_strided_slice %3 {offsets = [16, 0], sizes = [8, 128], strides = [1, 1]} : vector<64x128xf32> to vector<8x128xf32>
    %45 = vector.extract_strided_slice %3 {offsets = [24, 0], sizes = [8, 128], strides = [1, 1]} : vector<64x128xf32> to vector<8x128xf32>
    %cst_20 = arith.constant 0.666666686 : f32
    %46 = vector.broadcast %cst_20 : f32 to vector<8x128xf32>
    %47 = arith.mulf %46, %44 : vector<8x128xf32>
    %cst_21 = arith.constant 0.333333343 : f32
    %48 = vector.broadcast %cst_21 : f32 to vector<8x128xf32>
    %49 = arith.mulf %48, %45 : vector<8x128xf32>
    %50 = arith.addf %47, %49 : vector<8x128xf32>
    %c0_22 = arith.constant 0 : index
    %c640 = arith.constant 640 : index
    %51 = vector.load %arg11[%c0_22, %c640] : memref<8x2304xf32, #tpu.memory_space<vmem>>, vector<8x128xf32>
    tpu.vector_store %arg11[%c0_22, %c640], %50 {strides = array<i32>} : memref<8x2304xf32, #tpu.memory_space<vmem>>, vector<8x128xf32>,
    %52 = vector.extract_strided_slice %3 {offsets = [16, 0], sizes = [8, 128], strides = [1, 1]} : vector<64x128xf32> to vector<8x128xf32>
    %53 = vector.extract_strided_slice %3 {offsets = [24, 0], sizes = [8, 128], strides = [1, 1]} : vector<64x128xf32> to vector<8x128xf32>
    %cst_23 = arith.constant 2.000000e-01 : f32
    %54 = vector.broadcast %cst_23 : f32 to vector<8x128xf32>
    %55 = arith.mulf %54, %52 : vector<8x128xf32>
    %cst_24 = arith.constant 8.000000e-01 : f32
    %56 = vector.broadcast %cst_24 : f32 to vector<8x128xf32>
    %57 = arith.mulf %56, %53 : vector<8x128xf32>
    %58 = arith.addf %55, %57 : vector<8x128xf32>
    %c0_25 = arith.constant 0 : index
    %c768 = arith.constant 768 : index
    %59 = vector.load %arg11[%c0_25, %c768] : memref<8x2304xf32, #tpu.memory_space<vmem>>, vector<8x128xf32>
    tpu.vector_store %arg11[%c0_25, %c768], %58 {strides = array<i32>} : memref<8x2304xf32, #tpu.memory_space<vmem>>, vector<8x128xf32>,
    %60 = vector.extract_strided_slice %3 {offsets = [24, 0], sizes = [8, 128], strides = [1, 1]} : vector<64x128xf32> to vector<8x128xf32>
    %61 = vector.extract_strided_slice %3 {offsets = [32, 0], sizes = [8, 128], strides = [1, 1]} : vector<64x128xf32> to vector<8x128xf32>
    %cst_26 = arith.constant 0.733333349 : f32
    %62 = vector.broadcast %cst_26 : f32 to vector<8x128xf32>
    %63 = arith.mulf %62, %60 : vector<8x128xf32>
    %cst_27 = arith.constant 0.266666681 : f32
    %64 = vector.broadcast %cst_27 : f32 to vector<8x128xf32>
    %65 = arith.mulf %64, %61 : vector<8x128xf32>
    %66 = arith.addf %63, %65 : vector<8x128xf32>
    %c0_28 = arith.constant 0 : index
    %c896 = arith.constant 896 : index
    %67 = vector.load %arg11[%c0_28, %c896] : memref<8x2304xf32, #tpu.memory_space<vmem>>, vector<8x128xf32>
    tpu.vector_store %arg11[%c0_28, %c896], %66 {strides = array<i32>} : memref<8x2304xf32, #tpu.memory_space<vmem>>, vector<8x128xf32>,
    %68 = vector.extract_strided_slice %3 {offsets = [24, 0], sizes = [8, 128], strides = [1, 1]} : vector<64x128xf32> to vector<8x128xf32>
    %69 = vector.extract_strided_slice %3 {offsets = [32, 0], sizes = [8, 128], strides = [1, 1]} : vector<64x128xf32> to vector<8x128xf32>
    %cst_29 = arith.constant 0.266666681 : f32
    %70 = vector.broadcast %cst_29 : f32 to vector<8x128xf32>
    %71 = arith.mulf %70, %68 : vector<8x128xf32>
    %cst_30 = arith.constant 0.733333349 : f32
    %72 = vector.broadcast %cst_30 : f32 to vector<8x128xf32>
    %73 = arith.mulf %72, %69 : vector<8x128xf32>
    %74 = arith.addf %71, %73 : vector<8x128xf32>
    %c0_31 = arith.constant 0 : index
    %c1024 = arith.constant 1024 : index
    %75 = vector.load %arg11[%c0_31, %c1024] : memref<8x2304xf32, #tpu.memory_space<vmem>>, vector<8x128xf32>
    tpu.vector_store %arg11[%c0_31, %c1024], %74 {strides = array<i32>} : memref<8x2304xf32, #tpu.memory_space<vmem>>, vector<8x128xf32>,
    %76 = vector.extract_strided_slice %3 {offsets = [32, 0], sizes = [8, 128], strides = [1, 1]} : vector<64x128xf32> to vector<8x128xf32>
    %77 = vector.extract_strided_slice %3 {offsets = [40, 0], sizes = [8, 128], strides = [1, 1]} : vector<64x128xf32> to vector<8x128xf32>
    %cst_32 = arith.constant 8.000000e-01 : f32
    %78 = vector.broadcast %cst_32 : f32 to vector<8x128xf32>
    %79 = arith.mulf %78, %76 : vector<8x128xf32>
    %cst_33 = arith.constant 2.000000e-01 : f32
    %80 = vector.broadcast %cst_33 : f32 to vector<8x128xf32>
    %81 = arith.mulf %80, %77 : vector<8x128xf32>
    %82 = arith.addf %79, %81 : vector<8x128xf32>
    %c0_34 = arith.constant 0 : index
    %c1152 = arith.constant 1152 : index
    %83 = vector.load %arg11[%c0_34, %c1152] : memref<8x2304xf32, #tpu.memory_space<vmem>>, vector<8x128xf32>
    tpu.vector_store %arg11[%c0_34, %c1152], %82 {strides = array<i32>} : memref<8x2304xf32, #tpu.memory_space<vmem>>, vector<8x128xf32>,
    %84 = vector.extract_strided_slice %3 {offsets = [32, 0], sizes = [8, 128], strides = [1, 1]} : vector<64x128xf32> to vector<8x128xf32>
    %85 = vector.extract_strided_slice %3 {offsets = [40, 0], sizes = [8, 128], strides = [1, 1]} : vector<64x128xf32> to vector<8x128xf32>
    %cst_35 = arith.constant 0.333333343 : f32
    %86 = vector.broadcast %cst_35 : f32 to vector<8x128xf32>
    %87 = arith.mulf %86, %84 : vector<8x128xf32>
    %cst_36 = arith.constant 0.666666686 : f32
    %88 = vector.broadcast %cst_36 : f32 to vector<8x128xf32>
    %89 = arith.mulf %88, %85 : vector<8x128xf32>
    %90 = arith.addf %87, %89 : vector<8x128xf32>
    %c0_37 = arith.constant 0 : index
    %c1280 = arith.constant 1280 : index
    %91 = vector.load %arg11[%c0_37, %c1280] : memref<8x2304xf32, #tpu.memory_space<vmem>>, vector<8x128xf32>
    tpu.vector_store %arg11[%c0_37, %c1280], %90 {strides = array<i32>} : memref<8x2304xf32, #tpu.memory_space<vmem>>, vector<8x128xf32>,
    %92 = vector.extract_strided_slice %3 {offsets = [40, 0], sizes = [8, 128], strides = [1, 1]} : vector<64x128xf32> to vector<8x128xf32>
    %93 = vector.extract_strided_slice %3 {offsets = [48, 0], sizes = [8, 128], strides = [1, 1]} : vector<64x128xf32> to vector<8x128xf32>
    %cst_38 = arith.constant 0.866666674 : f32
    %94 = vector.broadcast %cst_38 : f32 to vector<8x128xf32>
    %95 = arith.mulf %94, %92 : vector<8x128xf32>
    %cst_39 = arith.constant 0.13333334 : f32
    %96 = vector.broadcast %cst_39 : f32 to vector<8x128xf32>
    %97 = arith.mulf %96, %93 : vector<8x128xf32>
    %98 = arith.addf %95, %97 : vector<8x128xf32>
    %c0_40 = arith.constant 0 : index
    %c1408 = arith.constant 1408 : index
    %99 = vector.load %arg11[%c0_40, %c1408] : memref<8x2304xf32, #tpu.memory_space<vmem>>, vector<8x128xf32>
    tpu.vector_store %arg11[%c0_40, %c1408], %98 {strides = array<i32>} : memref<8x2304xf32, #tpu.memory_space<vmem>>, vector<8x128xf32>,
    %100 = vector.extract_strided_slice %3 {offsets = [40, 0], sizes = [8, 128], strides = [1, 1]} : vector<64x128xf32> to vector<8x128xf32>
    %101 = vector.extract_strided_slice %3 {offsets = [48, 0], sizes = [8, 128], strides = [1, 1]} : vector<64x128xf32> to vector<8x128xf32>
    %cst_41 = arith.constant 4.000000e-01 : f32
    %102 = vector.broadcast %cst_41 : f32 to vector<8x128xf32>
    %103 = arith.mulf %102, %100 : vector<8x128xf32>
    %cst_42 = arith.constant 6.000000e-01 : f32
    %104 = vector.broadcast %cst_42 : f32 to vector<8x128xf32>
    %105 = arith.mulf %104, %101 : vector<8x128xf32>
    %106 = arith.addf %103, %105 : vector<8x128xf32>
    %c0_43 = arith.constant 0 : index
    %c1536 = arith.constant 1536 : index
    %107 = vector.load %arg11[%c0_43, %c1536] : memref<8x2304xf32, #tpu.memory_space<vmem>>, vector<8x128xf32>
    tpu.vector_store %arg11[%c0_43, %c1536], %106 {strides = array<i32>} : memref<8x2304xf32, #tpu.memory_space<vmem>>, vector<8x128xf32>,
    %108 = vector.extract_strided_slice %3 {offsets = [48, 0], sizes = [8, 128], strides = [1, 1]} : vector<64x128xf32> to vector<8x128xf32>
    %109 = vector.extract_strided_slice %3 {offsets = [56, 0], sizes = [8, 128], strides = [1, 1]} : vector<64x128xf32> to vector<8x128xf32>
    %cst_44 = arith.constant 0.933333337 : f32
    %110 = vector.broadcast %cst_44 : f32 to vector<8x128xf32>
    %111 = arith.mulf %110, %108 : vector<8x128xf32>
    %cst_45 = arith.constant 0.0666666701 : f32
    %112 = vector.broadcast %cst_45 : f32 to vector<8x128xf32>
    %113 = arith.mulf %112, %109 : vector<8x128xf32>
    %114 = arith.addf %111, %113 : vector<8x128xf32>
    %c0_46 = arith.constant 0 : index
    %c1664 = arith.constant 1664 : index
    %115 = vector.load %arg11[%c0_46, %c1664] : memref<8x2304xf32, #tpu.memory_space<vmem>>, vector<8x128xf32>
    tpu.vector_store %arg11[%c0_46, %c1664], %114 {strides = array<i32>} : memref<8x2304xf32, #tpu.memory_space<vmem>>, vector<8x128xf32>,
    %116 = vector.extract_strided_slice %3 {offsets = [48, 0], sizes = [8, 128], strides = [1, 1]} : vector<64x128xf32> to vector<8x128xf32>
    %117 = vector.extract_strided_slice %3 {offsets = [56, 0], sizes = [8, 128], strides = [1, 1]} : vector<64x128xf32> to vector<8x128xf32>
    %cst_47 = arith.constant 0.466666669 : f32
    %118 = vector.broadcast %cst_47 : f32 to vector<8x128xf32>
    %119 = arith.mulf %118, %116 : vector<8x128xf32>
    %cst_48 = arith.constant 0.533333361 : f32
    %120 = vector.broadcast %cst_48 : f32 to vector<8x128xf32>
    %121 = arith.mulf %120, %117 : vector<8x128xf32>
    %122 = arith.addf %119, %121 : vector<8x128xf32>
    %c0_49 = arith.constant 0 : index
    %c1792 = arith.constant 1792 : index
    %123 = vector.load %arg11[%c0_49, %c1792] : memref<8x2304xf32, #tpu.memory_space<vmem>>, vector<8x128xf32>
    tpu.vector_store %arg11[%c0_49, %c1792], %122 {strides = array<i32>} : memref<8x2304xf32, #tpu.memory_space<vmem>>, vector<8x128xf32>,
    %124 = vector.extract_strided_slice %3 {offsets = [48, 0], sizes = [8, 128], strides = [1, 1]} : vector<64x128xf32> to vector<8x128xf32>
    %125 = vector.extract_strided_slice %3 {offsets = [56, 0], sizes = [8, 128], strides = [1, 1]} : vector<64x128xf32> to vector<8x128xf32>
    %cst_50 = arith.constant 0.000000e+00 : f32
    %126 = vector.broadcast %cst_50 : f32 to vector<8x128xf32>
    %127 = arith.mulf %126, %124 : vector<8x128xf32>
    %cst_51 = arith.constant 1.000000e+00 : f32
    %128 = vector.broadcast %cst_51 : f32 to vector<8x128xf32>
    %129 = arith.mulf %128, %125 : vector<8x128xf32>
    %130 = arith.addf %127, %129 : vector<8x128xf32>
    %c0_52 = arith.constant 0 : index
    %c1920 = arith.constant 1920 : index
    %131 = vector.load %arg11[%c0_52, %c1920] : memref<8x2304xf32, #tpu.memory_space<vmem>>, vector<8x128xf32>
    tpu.vector_store %arg11[%c0_52, %c1920], %130 {strides = array<i32>} : memref<8x2304xf32, #tpu.memory_space<vmem>>, vector<8x128xf32>,
    %cst_53 = arith.constant 0.000000e+00 : f32
    %132 = vector.broadcast %cst_53 : f32 to vector<8x256xf32>
    %c0_54 = arith.constant 0 : index
    %c2048 = arith.constant 2048 : index
    %133 = vector.load %arg11[%c0_54, %c2048] : memref<8x2304xf32, #tpu.memory_space<vmem>>, vector<8x256xf32>
    tpu.vector_store %arg11[%c0_54, %c2048], %132 {strides = array<i32>} : memref<8x2304xf32, #tpu.memory_space<vmem>>, vector<8x256xf32>,
    %c0_55 = arith.constant 0 : index
    %c0_56 = arith.constant 0 : index
    %134 = vector.load %arg5[%c0_55, %c0_56] : memref<4x1xf32, #tpu.memory_space<vmem>>, vector<4x1xf32>
    %135 = vector.shape_cast %134 : vector<4x1xf32> to vector<4x1xf32>
    %136 = vector.broadcast %135 : vector<4x1xf32> to vector<4x2048xf32>
    %c0_57 = arith.constant 0 : index
    %c0_58 = arith.constant 0 : index
    %c0_59 = arith.constant 0 : index
    %137 = vector.load %arg4[%c0_57, %c0_58, %c0_59] : memref<4x4x8xf32, #tpu.memory_space<vmem>>, vector<1x4x8xf32>
    %138 = vector.shape_cast %137 : vector<1x4x8xf32> to vector<4x8xf32>
    %c0_60 = arith.constant 0 : index
    %c0_61 = arith.constant 0 : index
    %139 = vector.load %arg11[%c0_60, %c0_61] : memref<8x2304xf32, #tpu.memory_space<vmem>>, vector<8x2048xf32>
    %cst_62 = arith.constant dense<0.000000e+00> : vector<4x2048xf32>
    %140 = tpu.matmul %138, %139, %cst_62 {dimension_numbers = #tpu.dot_dimension_numbers<[1], [0], [0], [1], [0, 0, 1, 1], [], []>} : vector<4x8xf32>, vector<8x2048xf32>, vector<4x2048xf32> -> vector<4x2048xf32>
    %141 = arith.addf %136, %140 : vector<4x2048xf32>
    %c1 = arith.constant 1 : index
    %c0_63 = arith.constant 0 : index
    %c0_64 = arith.constant 0 : index
    %142 = vector.load %arg4[%c1, %c0_63, %c0_64] : memref<4x4x8xf32, #tpu.memory_space<vmem>>, vector<1x4x8xf32>
    %143 = vector.shape_cast %142 : vector<1x4x8xf32> to vector<4x8xf32>
    %c0_65 = arith.constant 0 : index
    %c1_66 = arith.constant 1 : index
    %144 = vector.load %arg11[%c0_65, %c1_66] : memref<8x2304xf32, #tpu.memory_space<vmem>>, vector<8x2048xf32>
    %cst_67 = arith.constant dense<0.000000e+00> : vector<4x2048xf32>
    %145 = tpu.matmul %143, %144, %cst_67 {dimension_numbers = #tpu.dot_dimension_numbers<[1], [0], [0], [1], [0, 0, 1, 1], [], []>} : vector<4x8xf32>, vector<8x2048xf32>, vector<4x2048xf32> -> vector<4x2048xf32>
    %146 = arith.addf %141, %145 : vector<4x2048xf32>
    %c2 = arith.constant 2 : index
    %c0_68 = arith.constant 0 : index
    %c0_69 = arith.constant 0 : index
    %147 = vector.load %arg4[%c2, %c0_68, %c0_69] : memref<4x4x8xf32, #tpu.memory_space<vmem>>, vector<1x4x8xf32>
    %148 = vector.shape_cast %147 : vector<1x4x8xf32> to vector<4x8xf32>
    %c0_70 = arith.constant 0 : index
    %c128_71 = arith.constant 128 : index
    %149 = vector.load %arg11[%c0_70, %c128_71] : memref<8x2304xf32, #tpu.memory_space<vmem>>, vector<8x2048xf32>
    %cst_72 = arith.constant dense<0.000000e+00> : vector<4x2048xf32>
    %150 = tpu.matmul %148, %149, %cst_72 {dimension_numbers = #tpu.dot_dimension_numbers<[1], [0], [0], [1], [0, 0, 1, 1], [], []>} : vector<4x8xf32>, vector<8x2048xf32>, vector<4x2048xf32> -> vector<4x2048xf32>
    %151 = arith.addf %146, %150 : vector<4x2048xf32>
    %c3 = arith.constant 3 : index
    %c0_73 = arith.constant 0 : index
    %c0_74 = arith.constant 0 : index
    %152 = vector.load %arg4[%c3, %c0_73, %c0_74] : memref<4x4x8xf32, #tpu.memory_space<vmem>>, vector<1x4x8xf32>
    %153 = vector.shape_cast %152 : vector<1x4x8xf32> to vector<4x8xf32>
    %c0_75 = arith.constant 0 : index
    %c129 = arith.constant 129 : index
    %154 = vector.load %arg11[%c0_75, %c129] : memref<8x2304xf32, #tpu.memory_space<vmem>>, vector<8x2048xf32>
    %cst_76 = arith.constant dense<0.000000e+00> : vector<4x2048xf32>
    %155 = tpu.matmul %153, %154, %cst_76 {dimension_numbers = #tpu.dot_dimension_numbers<[1], [0], [0], [1], [0, 0, 1, 1], [], []>} : vector<4x8xf32>, vector<8x2048xf32>, vector<4x2048xf32> -> vector<4x2048xf32>
    %156 = arith.addf %151, %155 : vector<4x2048xf32>
    %c4 = arith.constant 4 : index
    %c0_77 = arith.constant 0 : index
    %157 = vector.load %arg12[%c4, %c0_77] : memref<8x2176xf32, #tpu.memory_space<vmem>>, vector<4x2048xf32>
    tpu.vector_store %arg12[%c4, %c0_77], %156 {strides = array<i32>} : memref<8x2176xf32, #tpu.memory_space<vmem>>, vector<4x2048xf32>,
    %cst_78 = arith.constant 0.000000e+00 : f32
    %158 = vector.broadcast %cst_78 : f32 to vector<4x128xf32>
    %c4_79 = arith.constant 4 : index
    %c2048_80 = arith.constant 2048 : index
    %159 = vector.load %arg12[%c4_79, %c2048_80] : memref<8x2176xf32, #tpu.memory_space<vmem>>, vector<4x128xf32>
    tpu.vector_store %arg12[%c4_79, %c2048_80], %158 {strides = array<i32>} : memref<8x2176xf32, #tpu.memory_space<vmem>>, vector<4x128xf32>,
    %cst_81 = arith.constant 0.000000e+00 : f32
    %160 = vector.broadcast %cst_81 : f32 to vector<4x2176xf32>
    %c0_82 = arith.constant 0 : index
    %c0_83 = arith.constant 0 : index
    %161 = vector.load %arg12[%c0_82, %c0_83] : memref<8x2176xf32, #tpu.memory_space<vmem>>, vector<4x2176xf32>
    tpu.vector_store %arg12[%c0_82, %c0_83], %160 {strides = array<i32>} : memref<8x2176xf32, #tpu.memory_space<vmem>>, vector<4x2176xf32>,
    %c0_84 = arith.constant 0 : index
    %c0_85 = arith.constant 0 : index
    %c0_86 = arith.constant 0 : index
    %c0_87 = arith.constant 0 : index
    %162 = vector.load %arg2[%c0_84, %c0_85, %c0_86, %c0_87] : memref<1x4x14x14xf32, #tpu.memory_space<vmem>>, vector<1x4x1x14xf32>
    %163 = vector.shape_cast %162 : vector<1x4x1x14xf32> to vector<4x14xf32>
    %c0_88 = arith.constant 0 : index
    %c129_89 = arith.constant 129 : index
    %164 = vector.load %arg12[%c0_88, %c129_89] : memref<8x2176xf32, #tpu.memory_space<vmem>>, vector<4x14xf32>
    tpu.vector_store %arg12[%c0_88, %c129_89], %163 {strides = array<i32>} : memref<8x2176xf32, #tpu.memory_space<vmem>>, vector<4x14xf32>,
    %c0_90 = arith.constant 0 : index
    %c0_91 = arith.constant 0 : index
    %c1_92 = arith.constant 1 : index
    %c0_93 = arith.constant 0 : index
    %165 = vector.load %arg2[%c0_90, %c0_91, %c1_92, %c0_93] : memref<1x4x14x14xf32, #tpu.memory_space<vmem>>, vector<1x4x1x14xf32>
    %166 = vector.shape_cast %165 : vector<1x4x1x14xf32> to vector<4x14xf32>
    %c0_94 = arith.constant 0 : index
    %c257 = arith.constant 257 : index
    %167 = vector.load %arg12[%c0_94, %c257] : memref<8x2176xf32, #tpu.memory_space<vmem>>, vector<4x14xf32>
    tpu.vector_store %arg12[%c0_94, %c257], %166 {strides = array<i32>} : memref<8x2176xf32, #tpu.memory_space<vmem>>, vector<4x14xf32>,
    %c0_95 = arith.constant 0 : index
    %c0_96 = arith.constant 0 : index
    %c2_97 = arith.constant 2 : index
    %c0_98 = arith.constant 0 : index
    %168 = vector.load %arg2[%c0_95, %c0_96, %c2_97, %c0_98] : memref<1x4x14x14xf32, #tpu.memory_space<vmem>>, vector<1x4x1x14xf32>
    %169 = vector.shape_cast %168 : vector<1x4x1x14xf32> to vector<4x14xf32>
    %c0_99 = arith.constant 0 : index
    %c385 = arith.constant 385 : index
    %170 = vector.load %arg12[%c0_99, %c385] : memref<8x2176xf32, #tpu.memory_space<vmem>>, vector<4x14xf32>
    tpu.vector_store %arg12[%c0_99, %c385], %169 {strides = array<i32>} : memref<8x2176xf32, #tpu.memory_space<vmem>>, vector<4x14xf32>,
    %c0_100 = arith.constant 0 : index
    %c0_101 = arith.constant 0 : index
    %c3_102 = arith.constant 3 : index
    %c0_103 = arith.constant 0 : index
    %171 = vector.load %arg2[%c0_100, %c0_101, %c3_102, %c0_103] : memref<1x4x14x14xf32, #tpu.memory_space<vmem>>, vector<1x4x1x14xf32>
    %172 = vector.shape_cast %171 : vector<1x4x1x14xf32> to vector<4x14xf32>
    %c0_104 = arith.constant 0 : index
    %c513 = arith.constant 513 : index
    %173 = vector.load %arg12[%c0_104, %c513] : memref<8x2176xf32, #tpu.memory_space<vmem>>, vector<4x14xf32>
    tpu.vector_store %arg12[%c0_104, %c513], %172 {strides = array<i32>} : memref<8x2176xf32, #tpu.memory_space<vmem>>, vector<4x14xf32>,
    %c0_105 = arith.constant 0 : index
    %c0_106 = arith.constant 0 : index
    %c4_107 = arith.constant 4 : index
    %c0_108 = arith.constant 0 : index
    %174 = vector.load %arg2[%c0_105, %c0_106, %c4_107, %c0_108] : memref<1x4x14x14xf32, #tpu.memory_space<vmem>>, vector<1x4x1x14xf32>
    %175 = vector.shape_cast %174 : vector<1x4x1x14xf32> to vector<4x14xf32>
    %c0_109 = arith.constant 0 : index
    %c641 = arith.constant 641 : index
    %176 = vector.load %arg12[%c0_109, %c641] : memref<8x2176xf32, #tpu.memory_space<vmem>>, vector<4x14xf32>
    tpu.vector_store %arg12[%c0_109, %c641], %175 {strides = array<i32>} : memref<8x2176xf32, #tpu.memory_space<vmem>>, vector<4x14xf32>,
    %c0_110 = arith.constant 0 : index
    %c0_111 = arith.constant 0 : index
    %c5 = arith.constant 5 : index
    %c0_112 = arith.constant 0 : index
    %177 = vector.load %arg2[%c0_110, %c0_111, %c5, %c0_112] : memref<1x4x14x14xf32, #tpu.memory_space<vmem>>, vector<1x4x1x14xf32>
    %178 = vector.shape_cast %177 : vector<1x4x1x14xf32> to vector<4x14xf32>
    %c0_113 = arith.constant 0 : index
    %c769 = arith.constant 769 : index
    %179 = vector.load %arg12[%c0_113, %c769] : memref<8x2176xf32, #tpu.memory_space<vmem>>, vector<4x14xf32>
    tpu.vector_store %arg12[%c0_113, %c769], %178 {strides = array<i32>} : memref<8x2176xf32, #tpu.memory_space<vmem>>, vector<4x14xf32>,
    %c0_114 = arith.constant 0 : index
    %c0_115 = arith.constant 0 : index
    %c6 = arith.constant 6 : index
    %c0_116 = arith.constant 0 : index
    %180 = vector.load %arg2[%c0_114, %c0_115, %c6, %c0_116] : memref<1x4x14x14xf32, #tpu.memory_space<vmem>>, vector<1x4x1x14xf32>
    %181 = vector.shape_cast %180 : vector<1x4x1x14xf32> to vector<4x14xf32>
    %c0_117 = arith.constant 0 : index
    %c897 = arith.constant 897 : index
    %182 = vector.load %arg12[%c0_117, %c897] : memref<8x2176xf32, #tpu.memory_space<vmem>>, vector<4x14xf32>
    tpu.vector_store %arg12[%c0_117, %c897], %181 {strides = array<i32>} : memref<8x2176xf32, #tpu.memory_space<vmem>>, vector<4x14xf32>,
    %c0_118 = arith.constant 0 : index
    %c0_119 = arith.constant 0 : index
    %c7 = arith.constant 7 : index
    %c0_120 = arith.constant 0 : index
    %183 = vector.load %arg2[%c0_118, %c0_119, %c7, %c0_120] : memref<1x4x14x14xf32, #tpu.memory_space<vmem>>, vector<1x4x1x14xf32>
    %184 = vector.shape_cast %183 : vector<1x4x1x14xf32> to vector<4x14xf32>
    %c0_121 = arith.constant 0 : index
    %c1025 = arith.constant 1025 : index
    %185 = vector.load %arg12[%c0_121, %c1025] : memref<8x2176xf32, #tpu.memory_space<vmem>>, vector<4x14xf32>
    tpu.vector_store %arg12[%c0_121, %c1025], %184 {strides = array<i32>} : memref<8x2176xf32, #tpu.memory_space<vmem>>, vector<4x14xf32>,
    %c0_122 = arith.constant 0 : index
    %c0_123 = arith.constant 0 : index
    %c8 = arith.constant 8 : index
    %c0_124 = arith.constant 0 : index
    %186 = vector.load %arg2[%c0_122, %c0_123, %c8, %c0_124] : memref<1x4x14x14xf32, #tpu.memory_space<vmem>>, vector<1x4x1x14xf32>
    %187 = vector.shape_cast %186 : vector<1x4x1x14xf32> to vector<4x14xf32>
    %c0_125 = arith.constant 0 : index
    %c1153 = arith.constant 1153 : index
    %188 = vector.load %arg12[%c0_125, %c1153] : memref<8x2176xf32, #tpu.memory_space<vmem>>, vector<4x14xf32>
    tpu.vector_store %arg12[%c0_125, %c1153], %187 {strides = array<i32>} : memref<8x2176xf32, #tpu.memory_space<vmem>>, vector<4x14xf32>,
    %c0_126 = arith.constant 0 : index
    %c0_127 = arith.constant 0 : index
    %c9 = arith.constant 9 : index
    %c0_128 = arith.constant 0 : index
    %189 = vector.load %arg2[%c0_126, %c0_127, %c9, %c0_128] : memref<1x4x14x14xf32, #tpu.memory_space<vmem>>, vector<1x4x1x14xf32>
    %190 = vector.shape_cast %189 : vector<1x4x1x14xf32> to vector<4x14xf32>
    %c0_129 = arith.constant 0 : index
    %c1281 = arith.constant 1281 : index
    %191 = vector.load %arg12[%c0_129, %c1281] : memref<8x2176xf32, #tpu.memory_space<vmem>>, vector<4x14xf32>
    tpu.vector_store %arg12[%c0_129, %c1281], %190 {strides = array<i32>} : memref<8x2176xf32, #tpu.memory_space<vmem>>, vector<4x14xf32>,
    %c0_130 = arith.constant 0 : index
    %c0_131 = arith.constant 0 : index
    %c10 = arith.constant 10 : index
    %c0_132 = arith.constant 0 : index
    %192 = vector.load %arg2[%c0_130, %c0_131, %c10, %c0_132] : memref<1x4x14x14xf32, #tpu.memory_space<vmem>>, vector<1x4x1x14xf32>
    %193 = vector.shape_cast %192 : vector<1x4x1x14xf32> to vector<4x14xf32>
    %c0_133 = arith.constant 0 : index
    %c1409 = arith.constant 1409 : index
    %194 = vector.load %arg12[%c0_133, %c1409] : memref<8x2176xf32, #tpu.memory_space<vmem>>, vector<4x14xf32>
    tpu.vector_store %arg12[%c0_133, %c1409], %193 {strides = array<i32>} : memref<8x2176xf32, #tpu.memory_space<vmem>>, vector<4x14xf32>,
    %c0_134 = arith.constant 0 : index
    %c0_135 = arith.constant 0 : index
    %c11 = arith.constant 11 : index
    %c0_136 = arith.constant 0 : index
    %195 = vector.load %arg2[%c0_134, %c0_135, %c11, %c0_136] : memref<1x4x14x14xf32, #tpu.memory_space<vmem>>, vector<1x4x1x14xf32>
    %196 = vector.shape_cast %195 : vector<1x4x1x14xf32> to vector<4x14xf32>
    %c0_137 = arith.constant 0 : index
    %c1537 = arith.constant 1537 : index
    %197 = vector.load %arg12[%c0_137, %c1537] : memref<8x2176xf32, #tpu.memory_space<vmem>>, vector<4x14xf32>
    tpu.vector_store %arg12[%c0_137, %c1537], %196 {strides = array<i32>} : memref<8x2176xf32, #tpu.memory_space<vmem>>, vector<4x14xf32>,
    %c0_138 = arith.constant 0 : index
    %c0_139 = arith.constant 0 : index
    %c12 = arith.constant 12 : index
    %c0_140 = arith.constant 0 : index
    %198 = vector.load %arg2[%c0_138, %c0_139, %c12, %c0_140] : memref<1x4x14x14xf32, #tpu.memory_space<vmem>>, vector<1x4x1x14xf32>
    %199 = vector.shape_cast %198 : vector<1x4x1x14xf32> to vector<4x14xf32>
    %c0_141 = arith.constant 0 : index
    %c1665 = arith.constant 1665 : index
    %200 = vector.load %arg12[%c0_141, %c1665] : memref<8x2176xf32, #tpu.memory_space<vmem>>, vector<4x14xf32>
    tpu.vector_store %arg12[%c0_141, %c1665], %199 {strides = array<i32>} : memref<8x2176xf32, #tpu.memory_space<vmem>>, vector<4x14xf32>,
    %c0_142 = arith.constant 0 : index
    %c0_143 = arith.constant 0 : index
    %c13 = arith.constant 13 : index
    %c0_144 = arith.constant 0 : index
    %201 = vector.load %arg2[%c0_142, %c0_143, %c13, %c0_144] : memref<1x4x14x14xf32, #tpu.memory_space<vmem>>, vector<1x4x1x14xf32>
    %202 = vector.shape_cast %201 : vector<1x4x1x14xf32> to vector<4x14xf32>
    %c0_145 = arith.constant 0 : index
    %c1793 = arith.constant 1793 : index
    %203 = vector.load %arg12[%c0_145, %c1793] : memref<8x2176xf32, #tpu.memory_space<vmem>>, vector<4x14xf32>
    tpu.vector_store %arg12[%c0_145, %c1793], %202 {strides = array<i32>} : memref<8x2176xf32, #tpu.memory_space<vmem>>, vector<4x14xf32>,
    %c0_146 = arith.constant 0 : index
    %c0_147 = arith.constant 0 : index
    %204 = vector.load %arg7[%c0_146, %c0_147] : memref<4x1xf32, #tpu.memory_space<vmem>>, vector<4x1xf32>
    %205 = vector.shape_cast %204 : vector<4x1xf32> to vector<4x1xf32>
    %206 = vector.broadcast %205 : vector<4x1xf32> to vector<4x1792xf32>
    %c0_148 = arith.constant 0 : index
    %c0_149 = arith.constant 0 : index
    %c0_150 = arith.constant 0 : index
    %207 = vector.load %arg6[%c0_148, %c0_149, %c0_150] : memref<9x4x8xf32, #tpu.memory_space<vmem>>, vector<1x4x8xf32>
    %208 = vector.shape_cast %207 : vector<1x4x8xf32> to vector<4x8xf32>
    %c0_151 = arith.constant 0 : index
    %c0_152 = arith.constant 0 : index
    %209 = vector.load %arg12[%c0_151, %c0_152] : memref<8x2176xf32, #tpu.memory_space<vmem>>, vector<8x1792xf32>
    %cst_153 = arith.constant dense<0.000000e+00> : vector<4x1792xf32>
    %210 = tpu.matmul %208, %209, %cst_153 {dimension_numbers = #tpu.dot_dimension_numbers<[1], [0], [0], [1], [0, 0, 1, 1], [], []>} : vector<4x8xf32>, vector<8x1792xf32>, vector<4x1792xf32> -> vector<4x1792xf32>
    %211 = arith.addf %206, %210 : vector<4x1792xf32>
    %c1_154 = arith.constant 1 : index
    %c0_155 = arith.constant 0 : index
    %c0_156 = arith.constant 0 : index
    %212 = vector.load %arg6[%c1_154, %c0_155, %c0_156] : memref<9x4x8xf32, #tpu.memory_space<vmem>>, vector<1x4x8xf32>
    %213 = vector.shape_cast %212 : vector<1x4x8xf32> to vector<4x8xf32>
    %c0_157 = arith.constant 0 : index
    %c1_158 = arith.constant 1 : index
    %214 = vector.load %arg12[%c0_157, %c1_158] : memref<8x2176xf32, #tpu.memory_space<vmem>>, vector<8x1792xf32>
    %cst_159 = arith.constant dense<0.000000e+00> : vector<4x1792xf32>
    %215 = tpu.matmul %213, %214, %cst_159 {dimension_numbers = #tpu.dot_dimension_numbers<[1], [0], [0], [1], [0, 0, 1, 1], [], []>} : vector<4x8xf32>, vector<8x1792xf32>, vector<4x1792xf32> -> vector<4x1792xf32>
    %216 = arith.addf %211, %215 : vector<4x1792xf32>
    %c2_160 = arith.constant 2 : index
    %c0_161 = arith.constant 0 : index
    %c0_162 = arith.constant 0 : index
    %217 = vector.load %arg6[%c2_160, %c0_161, %c0_162] : memref<9x4x8xf32, #tpu.memory_space<vmem>>, vector<1x4x8xf32>
    %218 = vector.shape_cast %217 : vector<1x4x8xf32> to vector<4x8xf32>
    %c0_163 = arith.constant 0 : index
    %c2_164 = arith.constant 2 : index
    %219 = vector.load %arg12[%c0_163, %c2_164] : memref<8x2176xf32, #tpu.memory_space<vmem>>, vector<8x1792xf32>
    %cst_165 = arith.constant dense<0.000000e+00> : vector<4x1792xf32>
    %220 = tpu.matmul %218, %219, %cst_165 {dimension_numbers = #tpu.dot_dimension_numbers<[1], [0], [0], [1], [0, 0, 1, 1], [], []>} : vector<4x8xf32>, vector<8x1792xf32>, vector<4x1792xf32> -> vector<4x1792xf32>
    %221 = arith.addf %216, %220 : vector<4x1792xf32>
    %c3_166 = arith.constant 3 : index
    %c0_167 = arith.constant 0 : index
    %c0_168 = arith.constant 0 : index
    %222 = vector.load %arg6[%c3_166, %c0_167, %c0_168] : memref<9x4x8xf32, #tpu.memory_space<vmem>>, vector<1x4x8xf32>
    %223 = vector.shape_cast %222 : vector<1x4x8xf32> to vector<4x8xf32>
    %c0_169 = arith.constant 0 : index
    %c128_170 = arith.constant 128 : index
    %224 = vector.load %arg12[%c0_169, %c128_170] : memref<8x2176xf32, #tpu.memory_space<vmem>>, vector<8x1792xf32>
    %cst_171 = arith.constant dense<0.000000e+00> : vector<4x1792xf32>
    %225 = tpu.matmul %223, %224, %cst_171 {dimension_numbers = #tpu.dot_dimension_numbers<[1], [0], [0], [1], [0, 0, 1, 1], [], []>} : vector<4x8xf32>, vector<8x1792xf32>, vector<4x1792xf32> -> vector<4x1792xf32>
    %226 = arith.addf %221, %225 : vector<4x1792xf32>
    %c4_172 = arith.constant 4 : index
    %c0_173 = arith.constant 0 : index
    %c0_174 = arith.constant 0 : index
    %227 = vector.load %arg6[%c4_172, %c0_173, %c0_174] : memref<9x4x8xf32, #tpu.memory_space<vmem>>, vector<1x4x8xf32>
    %228 = vector.shape_cast %227 : vector<1x4x8xf32> to vector<4x8xf32>
    %c0_175 = arith.constant 0 : index
    %c129_176 = arith.constant 129 : index
    %229 = vector.load %arg12[%c0_175, %c129_176] : memref<8x2176xf32, #tpu.memory_space<vmem>>, vector<8x1792xf32>
    %cst_177 = arith.constant dense<0.000000e+00> : vector<4x1792xf32>
    %230 = tpu.matmul %228, %229, %cst_177 {dimension_numbers = #tpu.dot_dimension_numbers<[1], [0], [0], [1], [0, 0, 1, 1], [], []>} : vector<4x8xf32>, vector<8x1792xf32>, vector<4x1792xf32> -> vector<4x1792xf32>
    %231 = arith.addf %226, %230 : vector<4x1792xf32>
    %c5_178 = arith.constant 5 : index
    %c0_179 = arith.constant 0 : index
    %c0_180 = arith.constant 0 : index
    %232 = vector.load %arg6[%c5_178, %c0_179, %c0_180] : memref<9x4x8xf32, #tpu.memory_space<vmem>>, vector<1x4x8xf32>
    %233 = vector.shape_cast %232 : vector<1x4x8xf32> to vector<4x8xf32>
    %c0_181 = arith.constant 0 : index
    %c130 = arith.constant 130 : index
    %234 = vector.load %arg12[%c0_181, %c130] : memref<8x2176xf32, #tpu.memory_space<vmem>>, vector<8x1792xf32>
    %cst_182 = arith.constant dense<0.000000e+00> : vector<4x1792xf32>
    %235 = tpu.matmul %233, %234, %cst_182 {dimension_numbers = #tpu.dot_dimension_numbers<[1], [0], [0], [1], [0, 0, 1, 1], [], []>} : vector<4x8xf32>, vector<8x1792xf32>, vector<4x1792xf32> -> vector<4x1792xf32>
    %236 = arith.addf %231, %235 : vector<4x1792xf32>
    %c6_183 = arith.constant 6 : index
    %c0_184 = arith.constant 0 : index
    %c0_185 = arith.constant 0 : index
    %237 = vector.load %arg6[%c6_183, %c0_184, %c0_185] : memref<9x4x8xf32, #tpu.memory_space<vmem>>, vector<1x4x8xf32>
    %238 = vector.shape_cast %237 : vector<1x4x8xf32> to vector<4x8xf32>
    %c0_186 = arith.constant 0 : index
    %c256_187 = arith.constant 256 : index
    %239 = vector.load %arg12[%c0_186, %c256_187] : memref<8x2176xf32, #tpu.memory_space<vmem>>, vector<8x1792xf32>
    %cst_188 = arith.constant dense<0.000000e+00> : vector<4x1792xf32>
    %240 = tpu.matmul %238, %239, %cst_188 {dimension_numbers = #tpu.dot_dimension_numbers<[1], [0], [0], [1], [0, 0, 1, 1], [], []>} : vector<4x8xf32>, vector<8x1792xf32>, vector<4x1792xf32> -> vector<4x1792xf32>
    %241 = arith.addf %236, %240 : vector<4x1792xf32>
    %c7_189 = arith.constant 7 : index
    %c0_190 = arith.constant 0 : index
    %c0_191 = arith.constant 0 : index
    %242 = vector.load %arg6[%c7_189, %c0_190, %c0_191] : memref<9x4x8xf32, #tpu.memory_space<vmem>>, vector<1x4x8xf32>
    %243 = vector.shape_cast %242 : vector<1x4x8xf32> to vector<4x8xf32>
    %c0_192 = arith.constant 0 : index
    %c257_193 = arith.constant 257 : index
    %244 = vector.load %arg12[%c0_192, %c257_193] : memref<8x2176xf32, #tpu.memory_space<vmem>>, vector<8x1792xf32>
    %cst_194 = arith.constant dense<0.000000e+00> : vector<4x1792xf32>
    %245 = tpu.matmul %243, %244, %cst_194 {dimension_numbers = #tpu.dot_dimension_numbers<[1], [0], [0], [1], [0, 0, 1, 1], [], []>} : vector<4x8xf32>, vector<8x1792xf32>, vector<4x1792xf32> -> vector<4x1792xf32>
    %246 = arith.addf %241, %245 : vector<4x1792xf32>
    %c8_195 = arith.constant 8 : index
    %c0_196 = arith.constant 0 : index
    %c0_197 = arith.constant 0 : index
    %247 = vector.load %arg6[%c8_195, %c0_196, %c0_197] : memref<9x4x8xf32, #tpu.memory_space<vmem>>, vector<1x4x8xf32>
    %248 = vector.shape_cast %247 : vector<1x4x8xf32> to vector<4x8xf32>
    %c0_198 = arith.constant 0 : index
    %c258 = arith.constant 258 : index
    %249 = vector.load %arg12[%c0_198, %c258] : memref<8x2176xf32, #tpu.memory_space<vmem>>, vector<8x1792xf32>
    %cst_199 = arith.constant dense<0.000000e+00> : vector<4x1792xf32>
    %250 = tpu.matmul %248, %249, %cst_199 {dimension_numbers = #tpu.dot_dimension_numbers<[1], [0], [0], [1], [0, 0, 1, 1], [], []>} : vector<4x8xf32>, vector<8x1792xf32>, vector<4x1792xf32> -> vector<4x1792xf32>
    %251 = arith.addf %246, %250 : vector<4x1792xf32>
    %cst_200 = arith.constant 0.000000e+00 : f32
    %252 = vector.broadcast %cst_200 : f32 to vector<4x1792xf32>
    %253 = arith.maximumf %251, %252 : vector<4x1792xf32>
    %c0_201 = arith.constant 0 : index
    %c0_202 = arith.constant 0 : index
    %254 = vector.load %arg13[%c0_201, %c0_202] : memref<4x1920xf32, #tpu.memory_space<vmem>>, vector<4x1792xf32>
    tpu.vector_store %arg13[%c0_201, %c0_202], %253 {strides = array<i32>} : memref<4x1920xf32, #tpu.memory_space<vmem>>, vector<4x1792xf32>,
    %cst_203 = arith.constant 0.000000e+00 : f32
    %255 = vector.broadcast %cst_203 : f32 to vector<4x128xf32>
    %c0_204 = arith.constant 0 : index
    %c1792_205 = arith.constant 1792 : index
    %256 = vector.load %arg13[%c0_204, %c1792_205] : memref<4x1920xf32, #tpu.memory_space<vmem>>, vector<4x128xf32>
    tpu.vector_store %arg13[%c0_204, %c1792_205], %255 {strides = array<i32>} : memref<4x1920xf32, #tpu.memory_space<vmem>>, vector<4x128xf32>,
    %c0_206 = arith.constant 0 : index
    %c0_207 = arith.constant 0 : index
    %257 = vector.load %arg9[%c0_206, %c0_207] : memref<4x1xf32, #tpu.memory_space<vmem>>, vector<4x1xf32>
    %258 = vector.shape_cast %257 : vector<4x1xf32> to vector<4x1xf32>
    %259 = vector.broadcast %258 : vector<4x1xf32> to vector<4x1536xf32>
    %c0_208 = arith.constant 0 : index
    %c0_209 = arith.constant 0 : index
    %c0_210 = arith.constant 0 : index
    %260 = vector.load %arg8[%c0_208, %c0_209, %c0_210] : memref<9x4x4xf32, #tpu.memory_space<vmem>>, vector<1x4x4xf32>
    %261 = vector.shape_cast %260 : vector<1x4x4xf32> to vector<4x4xf32>
    %c0_211 = arith.constant 0 : index
    %c0_212 = arith.constant 0 : index
    %262 = vector.load %arg13[%c0_211, %c0_212] : memref<4x1920xf32, #tpu.memory_space<vmem>>, vector<4x1536xf32>
    %cst_213 = arith.constant dense<0.000000e+00> : vector<4x1536xf32>
    %263 = tpu.matmul %261, %262, %cst_213 {dimension_numbers = #tpu.dot_dimension_numbers<[1], [0], [0], [1], [0, 0, 1, 1], [], []>} : vector<4x4xf32>, vector<4x1536xf32>, vector<4x1536xf32> -> vector<4x1536xf32>
    %264 = arith.addf %259, %263 : vector<4x1536xf32>
    %c1_214 = arith.constant 1 : index
    %c0_215 = arith.constant 0 : index
    %c0_216 = arith.constant 0 : index
    %265 = vector.load %arg8[%c1_214, %c0_215, %c0_216] : memref<9x4x4xf32, #tpu.memory_space<vmem>>, vector<1x4x4xf32>
    %266 = vector.shape_cast %265 : vector<1x4x4xf32> to vector<4x4xf32>
    %c0_217 = arith.constant 0 : index
    %c1_218 = arith.constant 1 : index
    %267 = vector.load %arg13[%c0_217, %c1_218] : memref<4x1920xf32, #tpu.memory_space<vmem>>, vector<4x1536xf32>
    %cst_219 = arith.constant dense<0.000000e+00> : vector<4x1536xf32>
    %268 = tpu.matmul %266, %267, %cst_219 {dimension_numbers = #tpu.dot_dimension_numbers<[1], [0], [0], [1], [0, 0, 1, 1], [], []>} : vector<4x4xf32>, vector<4x1536xf32>, vector<4x1536xf32> -> vector<4x1536xf32>
    %269 = arith.addf %264, %268 : vector<4x1536xf32>
    %c2_220 = arith.constant 2 : index
    %c0_221 = arith.constant 0 : index
    %c0_222 = arith.constant 0 : index
    %270 = vector.load %arg8[%c2_220, %c0_221, %c0_222] : memref<9x4x4xf32, #tpu.memory_space<vmem>>, vector<1x4x4xf32>
    %271 = vector.shape_cast %270 : vector<1x4x4xf32> to vector<4x4xf32>
    %c0_223 = arith.constant 0 : index
    %c2_224 = arith.constant 2 : index
    %272 = vector.load %arg13[%c0_223, %c2_224] : memref<4x1920xf32, #tpu.memory_space<vmem>>, vector<4x1536xf32>
    %cst_225 = arith.constant dense<0.000000e+00> : vector<4x1536xf32>
    %273 = tpu.matmul %271, %272, %cst_225 {dimension_numbers = #tpu.dot_dimension_numbers<[1], [0], [0], [1], [0, 0, 1, 1], [], []>} : vector<4x4xf32>, vector<4x1536xf32>, vector<4x1536xf32> -> vector<4x1536xf32>
    %274 = arith.addf %269, %273 : vector<4x1536xf32>
    %c3_226 = arith.constant 3 : index
    %c0_227 = arith.constant 0 : index
    %c0_228 = arith.constant 0 : index
    %275 = vector.load %arg8[%c3_226, %c0_227, %c0_228] : memref<9x4x4xf32, #tpu.memory_space<vmem>>, vector<1x4x4xf32>
    %276 = vector.shape_cast %275 : vector<1x4x4xf32> to vector<4x4xf32>
    %c0_229 = arith.constant 0 : index
    %c128_230 = arith.constant 128 : index
    %277 = vector.load %arg13[%c0_229, %c128_230] : memref<4x1920xf32, #tpu.memory_space<vmem>>, vector<4x1536xf32>
    %cst_231 = arith.constant dense<0.000000e+00> : vector<4x1536xf32>
    %278 = tpu.matmul %276, %277, %cst_231 {dimension_numbers = #tpu.dot_dimension_numbers<[1], [0], [0], [1], [0, 0, 1, 1], [], []>} : vector<4x4xf32>, vector<4x1536xf32>, vector<4x1536xf32> -> vector<4x1536xf32>
    %279 = arith.addf %274, %278 : vector<4x1536xf32>
    %c4_232 = arith.constant 4 : index
    %c0_233 = arith.constant 0 : index
    %c0_234 = arith.constant 0 : index
    %280 = vector.load %arg8[%c4_232, %c0_233, %c0_234] : memref<9x4x4xf32, #tpu.memory_space<vmem>>, vector<1x4x4xf32>
    %281 = vector.shape_cast %280 : vector<1x4x4xf32> to vector<4x4xf32>
    %c0_235 = arith.constant 0 : index
    %c129_236 = arith.constant 129 : index
    %282 = vector.load %arg13[%c0_235, %c129_236] : memref<4x1920xf32, #tpu.memory_space<vmem>>, vector<4x1536xf32>
    %cst_237 = arith.constant dense<0.000000e+00> : vector<4x1536xf32>
    %283 = tpu.matmul %281, %282, %cst_237 {dimension_numbers = #tpu.dot_dimension_numbers<[1], [0], [0], [1], [0, 0, 1, 1], [], []>} : vector<4x4xf32>, vector<4x1536xf32>, vector<4x1536xf32> -> vector<4x1536xf32>
    %284 = arith.addf %279, %283 : vector<4x1536xf32>
    %c5_238 = arith.constant 5 : index
    %c0_239 = arith.constant 0 : index
    %c0_240 = arith.constant 0 : index
    %285 = vector.load %arg8[%c5_238, %c0_239, %c0_240] : memref<9x4x4xf32, #tpu.memory_space<vmem>>, vector<1x4x4xf32>
    %286 = vector.shape_cast %285 : vector<1x4x4xf32> to vector<4x4xf32>
    %c0_241 = arith.constant 0 : index
    %c130_242 = arith.constant 130 : index
    %287 = vector.load %arg13[%c0_241, %c130_242] : memref<4x1920xf32, #tpu.memory_space<vmem>>, vector<4x1536xf32>
    %cst_243 = arith.constant dense<0.000000e+00> : vector<4x1536xf32>
    %288 = tpu.matmul %286, %287, %cst_243 {dimension_numbers = #tpu.dot_dimension_numbers<[1], [0], [0], [1], [0, 0, 1, 1], [], []>} : vector<4x4xf32>, vector<4x1536xf32>, vector<4x1536xf32> -> vector<4x1536xf32>
    %289 = arith.addf %284, %288 : vector<4x1536xf32>
    %c6_244 = arith.constant 6 : index
    %c0_245 = arith.constant 0 : index
    %c0_246 = arith.constant 0 : index
    %290 = vector.load %arg8[%c6_244, %c0_245, %c0_246] : memref<9x4x4xf32, #tpu.memory_space<vmem>>, vector<1x4x4xf32>
    %291 = vector.shape_cast %290 : vector<1x4x4xf32> to vector<4x4xf32>
    %c0_247 = arith.constant 0 : index
    %c256_248 = arith.constant 256 : index
    %292 = vector.load %arg13[%c0_247, %c256_248] : memref<4x1920xf32, #tpu.memory_space<vmem>>, vector<4x1536xf32>
    %cst_249 = arith.constant dense<0.000000e+00> : vector<4x1536xf32>
    %293 = tpu.matmul %291, %292, %cst_249 {dimension_numbers = #tpu.dot_dimension_numbers<[1], [0], [0], [1], [0, 0, 1, 1], [], []>} : vector<4x4xf32>, vector<4x1536xf32>, vector<4x1536xf32> -> vector<4x1536xf32>
    %294 = arith.addf %289, %293 : vector<4x1536xf32>
    %c7_250 = arith.constant 7 : index
    %c0_251 = arith.constant 0 : index
    %c0_252 = arith.constant 0 : index
    %295 = vector.load %arg8[%c7_250, %c0_251, %c0_252] : memref<9x4x4xf32, #tpu.memory_space<vmem>>, vector<1x4x4xf32>
    %296 = vector.shape_cast %295 : vector<1x4x4xf32> to vector<4x4xf32>
    %c0_253 = arith.constant 0 : index
    %c257_254 = arith.constant 257 : index
    %297 = vector.load %arg13[%c0_253, %c257_254] : memref<4x1920xf32, #tpu.memory_space<vmem>>, vector<4x1536xf32>
    %cst_255 = arith.constant dense<0.000000e+00> : vector<4x1536xf32>
    %298 = tpu.matmul %296, %297, %cst_255 {dimension_numbers = #tpu.dot_dimension_numbers<[1], [0], [0], [1], [0, 0, 1, 1], [], []>} : vector<4x4xf32>, vector<4x1536xf32>, vector<4x1536xf32> -> vector<4x1536xf32>
    %299 = arith.addf %294, %298 : vector<4x1536xf32>
    %c8_256 = arith.constant 8 : index
    %c0_257 = arith.constant 0 : index
    %c0_258 = arith.constant 0 : index
    %300 = vector.load %arg8[%c8_256, %c0_257, %c0_258] : memref<9x4x4xf32, #tpu.memory_space<vmem>>, vector<1x4x4xf32>
    %301 = vector.shape_cast %300 : vector<1x4x4xf32> to vector<4x4xf32>
    %c0_259 = arith.constant 0 : index
    %c258_260 = arith.constant 258 : index
    %302 = vector.load %arg13[%c0_259, %c258_260] : memref<4x1920xf32, #tpu.memory_space<vmem>>, vector<4x1536xf32>
    %cst_261 = arith.constant dense<0.000000e+00> : vector<4x1536xf32>
    %303 = tpu.matmul %301, %302, %cst_261 {dimension_numbers = #tpu.dot_dimension_numbers<[1], [0], [0], [1], [0, 0, 1, 1], [], []>} : vector<4x4xf32>, vector<4x1536xf32>, vector<4x1536xf32> -> vector<4x1536xf32>
    %304 = arith.addf %299, %303 : vector<4x1536xf32>
    %cst_262 = arith.constant 0.000000e+00 : f32
    %305 = vector.broadcast %cst_262 : f32 to vector<4x1536xf32>
    %306 = arith.maximumf %304, %305 : vector<4x1536xf32>
    %307 = vector.extract_strided_slice %306 {offsets = [0, 0], sizes = [4, 12], strides = [1, 1]} : vector<4x1536xf32> to vector<4x12xf32>
    %c0_263 = arith.constant 0 : index
    %c0_264 = arith.constant 0 : index
    %c0_265 = arith.constant 0 : index
    %c0_266 = arith.constant 0 : index
    %308 = vector.load %arg10[%c0_263, %c0_264, %c0_265, %c0_266] : memref<1x4x12x12xf32, #tpu.memory_space<vmem>>, vector<1x4x1x12xf32>
    %309 = vector.shape_cast %308 : vector<1x4x1x12xf32> to vector<4x12xf32>
    %310 = vector.shape_cast %307 : vector<4x12xf32> to vector<1x4x1x12xf32>
    tpu.vector_store %arg10[%c0_263, %c0_264, %c0_265, %c0_266], %310 {strides = array<i32>} : memref<1x4x12x12xf32, #tpu.memory_space<vmem>>, vector<1x4x1x12xf32>,
    %311 = vector.extract_strided_slice %306 {offsets = [0, 128], sizes = [4, 12], strides = [1, 1]} : vector<4x1536xf32> to vector<4x12xf32>
    %c0_267 = arith.constant 0 : index
    %c0_268 = arith.constant 0 : index
    %c1_269 = arith.constant 1 : index
    %c0_270 = arith.constant 0 : index
    %312 = vector.load %arg10[%c0_267, %c0_268, %c1_269, %c0_270] : memref<1x4x12x12xf32, #tpu.memory_space<vmem>>, vector<1x4x1x12xf32>
    %313 = vector.shape_cast %312 : vector<1x4x1x12xf32> to vector<4x12xf32>
    %314 = vector.shape_cast %311 : vector<4x12xf32> to vector<1x4x1x12xf32>
    tpu.vector_store %arg10[%c0_267, %c0_268, %c1_269, %c0_270], %314 {strides = array<i32>} : memref<1x4x12x12xf32, #tpu.memory_space<vmem>>, vector<1x4x1x12xf32>,
    %315 = vector.extract_strided_slice %306 {offsets = [0, 256], sizes = [4, 12], strides = [1, 1]} : vector<4x1536xf32> to vector<4x12xf32>
    %c0_271 = arith.constant 0 : index
    %c0_272 = arith.constant 0 : index
    %c2_273 = arith.constant 2 : index
    %c0_274 = arith.constant 0 : index
    %316 = vector.load %arg10[%c0_271, %c0_272, %c2_273, %c0_274] : memref<1x4x12x12xf32, #tpu.memory_space<vmem>>, vector<1x4x1x12xf32>
    %317 = vector.shape_cast %316 : vector<1x4x1x12xf32> to vector<4x12xf32>
    %318 = vector.shape_cast %315 : vector<4x12xf32> to vector<1x4x1x12xf32>
    tpu.vector_store %arg10[%c0_271, %c0_272, %c2_273, %c0_274], %318 {strides = array<i32>} : memref<1x4x12x12xf32, #tpu.memory_space<vmem>>, vector<1x4x1x12xf32>,
    %319 = vector.extract_strided_slice %306 {offsets = [0, 384], sizes = [4, 12], strides = [1, 1]} : vector<4x1536xf32> to vector<4x12xf32>
    %c0_275 = arith.constant 0 : index
    %c0_276 = arith.constant 0 : index
    %c3_277 = arith.constant 3 : index
    %c0_278 = arith.constant 0 : index
    %320 = vector.load %arg10[%c0_275, %c0_276, %c3_277, %c0_278] : memref<1x4x12x12xf32, #tpu.memory_space<vmem>>, vector<1x4x1x12xf32>
    %321 = vector.shape_cast %320 : vector<1x4x1x12xf32> to vector<4x12xf32>
    %322 = vector.shape_cast %319 : vector<4x12xf32> to vector<1x4x1x12xf32>
    tpu.vector_store %arg10[%c0_275, %c0_276, %c3_277, %c0_278], %322 {strides = array<i32>} : memref<1x4x12x12xf32, #tpu.memory_space<vmem>>, vector<1x4x1x12xf32>,
    %323 = vector.extract_strided_slice %306 {offsets = [0, 512], sizes = [4, 12], strides = [1, 1]} : vector<4x1536xf32> to vector<4x12xf32>
    %c0_279 = arith.constant 0 : index
    %c0_280 = arith.constant 0 : index
    %c4_281 = arith.constant 4 : index
    %c0_282 = arith.constant 0 : index
    %324 = vector.load %arg10[%c0_279, %c0_280, %c4_281, %c0_282] : memref<1x4x12x12xf32, #tpu.memory_space<vmem>>, vector<1x4x1x12xf32>
    %325 = vector.shape_cast %324 : vector<1x4x1x12xf32> to vector<4x12xf32>
    %326 = vector.shape_cast %323 : vector<4x12xf32> to vector<1x4x1x12xf32>
    tpu.vector_store %arg10[%c0_279, %c0_280, %c4_281, %c0_282], %326 {strides = array<i32>} : memref<1x4x12x12xf32, #tpu.memory_space<vmem>>, vector<1x4x1x12xf32>,
    %327 = vector.extract_strided_slice %306 {offsets = [0, 640], sizes = [4, 12], strides = [1, 1]} : vector<4x1536xf32> to vector<4x12xf32>
    %c0_283 = arith.constant 0 : index
    %c0_284 = arith.constant 0 : index
    %c5_285 = arith.constant 5 : index
    %c0_286 = arith.constant 0 : index
    %328 = vector.load %arg10[%c0_283, %c0_284, %c5_285, %c0_286] : memref<1x4x12x12xf32, #tpu.memory_space<vmem>>, vector<1x4x1x12xf32>
    %329 = vector.shape_cast %328 : vector<1x4x1x12xf32> to vector<4x12xf32>
    %330 = vector.shape_cast %327 : vector<4x12xf32> to vector<1x4x1x12xf32>
    tpu.vector_store %arg10[%c0_283, %c0_284, %c5_285, %c0_286], %330 {strides = array<i32>} : memref<1x4x12x12xf32, #tpu.memory_space<vmem>>, vector<1x4x1x12xf32>,
    %331 = vector.extract_strided_slice %306 {offsets = [0, 768], sizes = [4, 12], strides = [1, 1]} : vector<4x1536xf32> to vector<4x12xf32>
    %c0_287 = arith.constant 0 : index
    %c0_288 = arith.constant 0 : index
    %c6_289 = arith.constant 6 : index
    %c0_290 = arith.constant 0 : index
    %332 = vector.load %arg10[%c0_287, %c0_288, %c6_289, %c0_290] : memref<1x4x12x12xf32, #tpu.memory_space<vmem>>, vector<1x4x1x12xf32>
    %333 = vector.shape_cast %332 : vector<1x4x1x12xf32> to vector<4x12xf32>
    %334 = vector.shape_cast %331 : vector<4x12xf32> to vector<1x4x1x12xf32>
    tpu.vector_store %arg10[%c0_287, %c0_288, %c6_289, %c0_290], %334 {strides = array<i32>} : memref<1x4x12x12xf32, #tpu.memory_space<vmem>>, vector<1x4x1x12xf32>,
    %335 = vector.extract_strided_slice %306 {offsets = [0, 896], sizes = [4, 12], strides = [1, 1]} : vector<4x1536xf32> to vector<4x12xf32>
    %c0_291 = arith.constant 0 : index
    %c0_292 = arith.constant 0 : index
    %c7_293 = arith.constant 7 : index
    %c0_294 = arith.constant 0 : index
    %336 = vector.load %arg10[%c0_291, %c0_292, %c7_293, %c0_294] : memref<1x4x12x12xf32, #tpu.memory_space<vmem>>, vector<1x4x1x12xf32>
    %337 = vector.shape_cast %336 : vector<1x4x1x12xf32> to vector<4x12xf32>
    %338 = vector.shape_cast %335 : vector<4x12xf32> to vector<1x4x1x12xf32>
    tpu.vector_store %arg10[%c0_291, %c0_292, %c7_293, %c0_294], %338 {strides = array<i32>} : memref<1x4x12x12xf32, #tpu.memory_space<vmem>>, vector<1x4x1x12xf32>,
    %339 = vector.extract_strided_slice %306 {offsets = [0, 1024], sizes = [4, 12], strides = [1, 1]} : vector<4x1536xf32> to vector<4x12xf32>
    %c0_295 = arith.constant 0 : index
    %c0_296 = arith.constant 0 : index
    %c8_297 = arith.constant 8 : index
    %c0_298 = arith.constant 0 : index
    %340 = vector.load %arg10[%c0_295, %c0_296, %c8_297, %c0_298] : memref<1x4x12x12xf32, #tpu.memory_space<vmem>>, vector<1x4x1x12xf32>
    %341 = vector.shape_cast %340 : vector<1x4x1x12xf32> to vector<4x12xf32>
    %342 = vector.shape_cast %339 : vector<4x12xf32> to vector<1x4x1x12xf32>
    tpu.vector_store %arg10[%c0_295, %c0_296, %c8_297, %c0_298], %342 {strides = array<i32>} : memref<1x4x12x12xf32, #tpu.memory_space<vmem>>, vector<1x4x1x12xf32>,
    %343 = vector.extract_strided_slice %306 {offsets = [0, 1152], sizes = [4, 12], strides = [1, 1]} : vector<4x1536xf32> to vector<4x12xf32>
    %c0_299 = arith.constant 0 : index
    %c0_300 = arith.constant 0 : index
    %c9_301 = arith.constant 9 : index
    %c0_302 = arith.constant 0 : index
    %344 = vector.load %arg10[%c0_299, %c0_300, %c9_301, %c0_302] : memref<1x4x12x12xf32, #tpu.memory_space<vmem>>, vector<1x4x1x12xf32>
    %345 = vector.shape_cast %344 : vector<1x4x1x12xf32> to vector<4x12xf32>
    %346 = vector.shape_cast %343 : vector<4x12xf32> to vector<1x4x1x12xf32>
    tpu.vector_store %arg10[%c0_299, %c0_300, %c9_301, %c0_302], %346 {strides = array<i32>} : memref<1x4x12x12xf32, #tpu.memory_space<vmem>>, vector<1x4x1x12xf32>,
    %347 = vector.extract_strided_slice %306 {offsets = [0, 1280], sizes = [4, 12], strides = [1, 1]} : vector<4x1536xf32> to vector<4x12xf32>
    %c0_303 = arith.constant 0 : index
    %c0_304 = arith.constant 0 : index
    %c10_305 = arith.constant 10 : index
    %c0_306 = arith.constant 0 : index
    %348 = vector.load %arg10[%c0_303, %c0_304, %c10_305, %c0_306] : memref<1x4x12x12xf32, #tpu.memory_space<vmem>>, vector<1x4x1x12xf32>
    %349 = vector.shape_cast %348 : vector<1x4x1x12xf32> to vector<4x12xf32>
    %350 = vector.shape_cast %347 : vector<4x12xf32> to vector<1x4x1x12xf32>
    tpu.vector_store %arg10[%c0_303, %c0_304, %c10_305, %c0_306], %350 {strides = array<i32>} : memref<1x4x12x12xf32, #tpu.memory_space<vmem>>, vector<1x4x1x12xf32>,
    %351 = vector.extract_strided_slice %306 {offsets = [0, 1408], sizes = [4, 12], strides = [1, 1]} : vector<4x1536xf32> to vector<4x12xf32>
    %c0_307 = arith.constant 0 : index
    %c0_308 = arith.constant 0 : index
    %c11_309 = arith.constant 11 : index
    %c0_310 = arith.constant 0 : index
    %352 = vector.load %arg10[%c0_307, %c0_308, %c11_309, %c0_310] : memref<1x4x12x12xf32, #tpu.memory_space<vmem>>, vector<1x4x1x12xf32>
    %353 = vector.shape_cast %352 : vector<1x4x1x12xf32> to vector<4x12xf32>
    %354 = vector.shape_cast %351 : vector<4x12xf32> to vector<1x4x1x12xf32>
    tpu.vector_store %arg10[%c0_307, %c0_308, %c11_309, %c0_310], %354 {strides = array<i32>} : memref<1x4x12x12xf32, #tpu.memory_space<vmem>>, vector<1x4x1x12xf32>,
    return
  }
  func.func @transform_0(%arg0: i32) -> (i32, i32, i32) {
    %c0_i32 = arith.constant 0 : i32
    %c0_i32_0 = arith.constant 0 : i32
    %c0_i32_1 = arith.constant 0 : i32
    return %arg0, %c0_i32, %c0_i32_0 : i32, i32, i32
  }
  func.func @transform_1(%arg0: i32) -> (i32, i32, i32, i32) {
    %c0_i32 = arith.constant 0 : i32
    %c0_i32_0 = arith.constant 0 : i32
    %c0_i32_1 = arith.constant 0 : i32
    %c0_i32_2 = arith.constant 0 : i32
    return %arg0, %c0_i32, %c0_i32_0, %c0_i32_1 : i32, i32, i32, i32
  }
  func.func @transform_2(%arg0: i32) -> (i32, i32) {
    %c0_i32 = arith.constant 0 : i32
    %c0_i32_0 = arith.constant 0 : i32
    %c0_i32_1 = arith.constant 0 : i32
    return %c0_i32, %c0_i32_0 : i32, i32
  }
  func.func @transform_3(%arg0: i32) -> (i32, i32, i32) {
    %c0_i32 = arith.constant 0 : i32
    %c0_i32_0 = arith.constant 0 : i32
    %c0_i32_1 = arith.constant 0 : i32
    %c0_i32_2 = arith.constant 0 : i32
    return %c0_i32, %c0_i32_0, %c0_i32_1 : i32, i32, i32
  }
  func.func @transform_4(%arg0: i32) -> (i32, i32) {
    %c0_i32 = arith.constant 0 : i32
    %c0_i32_0 = arith.constant 0 : i32
    %c0_i32_1 = arith.constant 0 : i32
    return %c0_i32, %c0_i32_0 : i32, i32
  }
  func.func @transform_5(%arg0: i32) -> (i32, i32, i32) {
    %c0_i32 = arith.constant 0 : i32
    %c0_i32_0 = arith.constant 0 : i32
    %c0_i32_1 = arith.constant 0 : i32
    %c0_i32_2 = arith.constant 0 : i32
    return %c0_i32, %c0_i32_0, %c0_i32_1 : i32, i32, i32
  }
  func.func @transform_6(%arg0: i32) -> (i32, i32) {
    %c0_i32 = arith.constant 0 : i32
    %c0_i32_0 = arith.constant 0 : i32
    %c0_i32_1 = arith.constant 0 : i32
    return %c0_i32, %c0_i32_0 : i32, i32
  }
  func.func @transform_7(%arg0: i32) -> (i32, i32, i32) {
    %c0_i32 = arith.constant 0 : i32
    %c0_i32_0 = arith.constant 0 : i32
    %c0_i32_1 = arith.constant 0 : i32
    %c0_i32_2 = arith.constant 0 : i32
    return %c0_i32, %c0_i32_0, %c0_i32_1 : i32, i32, i32
  }
  func.func @transform_8(%arg0: i32) -> (i32, i32) {
    %c0_i32 = arith.constant 0 : i32
    %c0_i32_0 = arith.constant 0 : i32
    %c0_i32_1 = arith.constant 0 : i32
    return %c0_i32, %c0_i32_0 : i32, i32
  }
  func.func @transform_9(%arg0: i32) -> (i32, i32, i32, i32) {
    %c0_i32 = arith.constant 0 : i32
    %c0_i32_0 = arith.constant 0 : i32
    %c0_i32_1 = arith.constant 0 : i32
    %c0_i32_2 = arith.constant 0 : i32
    return %arg0, %c0_i32, %c0_i32_0, %c0_i32_1 : i32, i32, i32, i32
  }
}

</mosaic_0001>

<bundles_post_ra>
// kernel: up_forward.1
= control target key start
LH: loop header
LB: loop body
LE: loop exit
PB: predicated region body
PF: predicated region fallthrough
CT: control target
= control target key end

     0   :  { %s14436_s30 = smov 0   ;;  %s16178_s0 = inlined_call_operand.vmem [shape: f32[2,64,8], index: 0, kind: input, shape index: {}]   ;;  %s16179_s1 = inlined_call_operand.vmem [shape: f32[2,4,14,14], index: 1, kind: input, shape index: {}]   ;;  %s16180_s2 = inlined_call_operand.vmem [shape: f32[8,128], index: 2, kind: input, shape index: {}]   ;;  %s16181_s3 = inlined_call_operand.vmem [shape: f32[4,4,8], index: 3, kind: input, shape index: {}]   ;;  %s16182_s4 = inlined_call_operand.vmem [shape: f32[4,1], index: 4, kind: input, shape index: {}]   ;;  %s16183_s5 = inlined_call_operand.vmem [shape: f32[9,4,8], index: 5, kind: input, shape index: {}]   ;;  %s16184_s6 = inlined_call_operand.vmem [shape: f32[4,1], index: 6, kind: input, shape index: {}]   ;;  %s16185_s7 = inlined_call_operand.vmem [shape: f32[9,4,4], index: 7, kind: input, shape index: {}]   ;;  %s16186_s8 = inlined_call_operand.vmem [shape: f32[4,1], index: 8, kind: input, shape index: {}]   ;;  %s16187_s9 = inlined_call_operand.vmem [shape: f32[2,4,12,12], index: 9, kind: output, shape index: {}]  }
   0x1 LB: > { %s13712_s10 = sadd.s32 4294967295, %s14377_s30   ;;  %p13716_p0 = scmp.ge.s32.totalorder %s14377_s30, 1  ;;  %s14377_s30 = sphi %s14436_s30, %s19_s30  }
   0x2   : > { %p297_p1 = scmp.lt.s32.totalorder %s14377_s30, 3 }
   0x4   : > { %p298_p2 = pnand %p13716_p0, %p297_p1 }
   0x5   : > { %v361_v0 = vld [vmem:[%s16180_s2] sm:$0xff] (!%p298_p2)  ;;  %p338_p3 = scmp.lt.s32.totalorder (!%p298_p2), %s13712_s10, 1  ;;  %vm362_vm0 = vcmask (!%p298_p2), 64512   ;;  %v14379_v9 = vmov (!%p298_p2), 0.0   ;;  %s14380_s17 = smov (!%p298_p2), 127   ;;  %vm3225_vm1 = vcmask (!%p298_p2), 1041409  }
   0x6   : > { %301 = sbr.rel (%p298_p2) target bundleno = 1716 (0x6b4), region = 56  ;;  %14023 = vmatprep.subr.mxu0 (!%p298_p2), %v361_v0  ;;  %646 = vmatprep.mubr.f32.mxu1 (!%p298_p2), %v14379_v9  ;;  %3198 = vst [vmem:[#allocation3 + $0x80] sm:$0xf0] (!%p298_p2), %v14379_v9  ;;  %3199 = vst [vmem:[#allocation3] sm:$0xf] (!%p298_p2), %v14379_v9  ;;  %vm3228_vm2 = vcmask (!%p298_p2), 1042434  }
   0x7   : > { %14024 = vmatpush3.msra.mxu0 (!%p298_p2), %v361_v0  ;;  %3200 = vst [vmem:[#allocation3 + $0x8] sm:$0xf] (!%p298_p2), %v14379_v9  ;;  %3201 = vst [vmem:[#allocation3 + $0x10] sm:$0xf] (!%p298_p2), %v14379_v9  ;;  %v14490_v23 = vld [vmem:[%s16181_s3] sm:$0xf] (!%p298_p2) }
   0x8   : > { %3202 = vst [vmem:[#allocation3 + $0x18] sm:$0xf] (!%p298_p2), %v14379_v9  ;;  %3203 = vst [vmem:[#allocation3 + $0x20] sm:$0xf] (!%p298_p2), %v14379_v9  ;;  %vm3231_vm3 = vcmask (!%p298_p2), 1043459   ;;  %s14382_s25 = smov (!%p298_p2), 1  }
   0x9   : > { %3204 = vst [vmem:[#allocation3 + $0x28] sm:$0xf] (!%p298_p2), %v14379_v9  ;;  %3205 = vst [vmem:[#allocation3 + $0x30] sm:$0xf] (!%p298_p2), %v14379_v9  ;;  %vm1236_vm4 = vcmask (!%p298_p2), 1039360   ;;  %vm14383_vm5 = vmmov (!%p298_p2), 0  }
   0xa   : > { %3206 = vst [vmem:[#allocation3 + $0x38] sm:$0xf] (!%p298_p2), %v14379_v9  ;;  %3207 = vst [vmem:[#allocation3 + $0x40] sm:$0xf] (!%p298_p2), %v14379_v9  ;;  %vm3236_vm6 = vcmask (!%p298_p2), 117768   ;;  %s14384_s15 = smov (!%p298_p2), 126  }
   0xb   : > { %3208 = vst [vmem:[#allocation3 + $0x48] sm:$0xf] (!%p298_p2), %v14379_v9  ;;  %3209 = vst [vmem:[#allocation3 + $0x50] sm:$0xf] (!%p298_p2), %v14379_v9  ;;  %vm4643_vm7 = vcmask (!%p298_p2), 1031168   ;;  %vm8653_vm8 = vcmask (!%p298_p2), 1043456  }
   0xc   : > { %3210 = vst [vmem:[#allocation3 + $0x58] sm:$0xf] (!%p298_p2), %v14379_v9  ;;  %3211 = vst [vmem:[#allocation3 + $0x60] sm:$0xf] (!%p298_p2), %v14379_v9  ;;  %vm8649_vm9 = vcmask (!%p298_p2), 31744   ;;  %vm13277_vm10 = vcmask (!%p298_p2), 90112  }
   0xd   : > { %s16189_s10 = smov (!%p338_p3, %s13712_s10), 1  ;;  %3212 = vst [vmem:[#allocation3 + $0x68] sm:$0xf] %v14379_v9  ;;  %3213 = vst [vmem:[#allocation3 + $0x70] sm:$0xf] %v14379_v9 }
   0xe   : > { %s14447_s13 = sshll.u32 %s16189_s10, 6  ;;  %3214 = vst [vmem:[#allocation3 + $0x78] sm:$0xf] %v14379_v9  ;;  %3215 = vst [vmem:[#allocation3 + $0x80] sm:$0xf] %v14379_v9 }
   0xf   : > { %s342_s16 = scalar_lea.vmem %s16178_s0, %s14447_s13  ;;  %8623 = vst [vmem:[#allocation4 + $0x38] sm:$0xf] %v14379_v9  ;;  %s14615_s22 = scalar_lea.vmem %s16179_s1, %s14447_s13 }
  0x10   : > { %v353_v1 = vld [vmem:[%s342_s16] sm:$0xff]  ;;  %v354_v2 = vld [vmem:[%s342_s16 + $0x8] sm:$0xff]  ;;  %v355_v3 = vld [vmem:[%s342_s16 + $0x10] sm:$0xff]  ;;  %s16033_s21 = scalar_lea.vmem %s16187_s9, %s14447_s13 }
  0x11   : > { %14025 = vmatprep.mubr.msk.f32.mxu0 %vm362_vm0, %v353_v1  ;;  %v356_v4 = vld [vmem:[%s342_s16 + $0x18] sm:$0xff]  ;;  %v357_v5 = vld [vmem:[%s342_s16 + $0x20] sm:$0xff]  ;;  %v358_v6 = vld [vmem:[%s342_s16 + $0x28] sm:$0xff] }
  0x12   : > { %14026 = vmatmul.mubr.msk.f32.vlgmr.msra.gmra.mrb[0].mxu0 %vm362_vm0, %v354_v2  ;;  %v359_v7 = vld [vmem:[%s342_s16 + $0x30] sm:$0xff]  ;;  %v360_v8 = vld [vmem:[%s342_s16 + $0x38] sm:$0xff]  ;;  %v3216_v1 = vld [vmem:[%s14615_s22] sm:$0x1]  ;;  %v14381_v2 = vmov 0  }
  0x13   : > { %14028 = vmatprep.mubr.msk.f32.mxu0 %vm362_vm0, %v355_v3  ;;  %14356 = vset.pattern.permute.xlu1 %v14381_v2  ;;  %v3217_v3 = vld [vmem:[%s14615_s22 + $0x10] sm:$0x1] }
  0x14   : > { %14357 = vset.pattern.permute.xlu0 %v14381_v2 }
  0x16   : > { %14029 = vmatmul.mubr.msk.f32.gmra.mrb[2].mxu0 %vm362_vm0, %v356_v4  ;;  %v3218_v4 = vld [vmem:[%s14615_s22 + $0x20] sm:$0x1] }
  0x17   : > { %14031 = vmatprep.mubr.msk.f32.mxu0 %vm362_vm0, %v357_v5  ;;  %v3219_v5 = vld [vmem:[%s14615_s22 + $0x30] sm:$0x1] }
  0x1a   : > { %14032 = vmatmul.mubr.msk.f32.gmra.mrb[4].mxu0 %vm362_vm0, %v358_v6  ;;  %v556_v6 = vld [vmem:[%s16182_s4] sm:$0xf] }
  0x1b   : > { %14034 = vmatprep.mubr.msk.f32.mxu0 %vm362_vm0, %v359_v7  ;;  %v3224_v7 = vrot.slane %v3217_v3, 7 }
  0x1e   : > { %14035 = vmatmul.mubr.msk.f32.gmra.mrb[6].mxu0 %vm362_vm0, %v360_v8  ;;  %v3227_v8 = vrot.slane %v3218_v4, 6 }
  0x1f   : > { %930 = vmatprep.mubr.f32.mxu0 %v14379_v9 }
  0xe5   : > { %v14027_v10 = vpop.f32.mrb[0].mxu0 }
  0xe6   : > { %v453_v11 = vpop.f32.mrb[1].mxu0  ;;  %v492_v12 = vmul.f32 0.0, %v14027_v10  ;;  %v496_v14 = vmul.f32 0.46666667, %v14027_v10  ;;  %v500_v16 = vmul.f32 0.93333334, %v14027_v10 }
  0xe7   : > { %v495_v13 = vmul.f32 0.53333336, %v453_v11  ;;  %v499_v15 = vmul.f32 0.06666667, %v453_v11  ;;  %v503_v20 = vmul.f32 0.6, %v14027_v10 }
  0xe8   : > { %v493_v17 = vadd.f32 %v492_v12, %v453_v11  ;;  %v507_v21 = vmul.f32 0.13333334, %v14027_v10  ;;  %v3230_v10 = vrot.slane %v3219_v5, 5  ;;  %v3238_v11 = vld [vmem:[%s14615_s22 + $0x1] sm:$0x1] }
  0xe9   : > { %v14482_v18 = vadd.f32 %v496_v14, %v495_v13  ;;  %v14030_v19 = vpop.f32.mrb[2].mxu0  ;;  %v14484_v22 = vadd.f32 %v500_v16, %v499_v15  ;;  %v3239_v12 = vld [vmem:[%s14615_s22 + $0x11] sm:$0x1]  ;;  %v3226_v13 = vsel %vm3225_vm1, %v3224_v7, %v3216_v1  ;;  %v3240_v14 = vld [vmem:[%s14615_s22 + $0x21] sm:$0x1] }
  0xea   : > { %1202 = vrot.lane.b32.xlu1 %v493_v17, %s14380_s17  ;;  %v512_v24 = vmul.f32 0.33333334, %v14030_v19  ;;  %v516_v25 = vmul.f32 0.8, %v14030_v19  ;;  %v463_v26 = vpop.f32.mrb[3].mxu0  ;;  %v3246_v16 = vrot.slane %v3239_v12, 7 }
  0xeb   : > { %1204 = vrot.lane.b32.xlu0 %v14482_v18, %s14380_s17  ;;  %582 = vmatprep.subr.mxu1 %v14482_v18  ;;  %v504_v27 = vmul.f32 0.4, %v463_v26  ;;  %v508_v28 = vmul.f32 0.8666667, %v463_v26  ;;  %v511_v29 = vmul.f32 0.6666667, %v463_v26 }
  0xec   : > { %583 = vmatpush1.msra.mxu1 %v493_v17  ;;  %v519_v30 = vmul.f32 0.73333335, %v14030_v19  ;;  %v515_v31 = vmul.f32 0.2, %v463_v26  ;;  %v523_v33 = vmul.f32 0.26666668, %v14030_v19  ;;  %v3229_v17 = vsel %vm3228_vm2, %v3227_v8, %v3226_v13 }
  0xed   : > { %v14033_v32 = vpop.f32.mrb[4].mxu0  ;;  %13731 = vmatmul.mubr.msk.f32.vlgmr.msra.gmra.mrb[0].mxu1 %vm362_vm0, %v14490_v23  ;;  %v14497_v36 = vadd.f32 %v504_v27, %v503_v20  ;;  %v14502_v39 = vadd.f32 %v512_v24, %v511_v29  ;;  %v14504_v40 = vadd.f32 %v508_v28, %v507_v21  ;;  %v3241_v15 = vld [vmem:[%s14615_s22 + $0x31] sm:$0x1]  ;;  %v3248_v19 = vrot.slane %v3240_v14, 6  ;;  %v3256_v21 = vld [vmem:[%s14615_s22 + $0x2] sm:$0x1] }
  0xee   : > { %v528_v34 = vmul.f32 0.2, %v14033_v32  ;;  %v532_v35 = vmul.f32 0.6666667, %v14033_v32  ;;  %717 = vmatprep.mubr.f32.mxu1 %v14379_v9  ;;  %v535_v37 = vmul.f32 0.8666667, %v14033_v32  ;;  %v14506_v41 = vadd.f32 %v516_v25, %v515_v31 }
  0xef   : > { %v473_v38 = vpop.f32.mrb[5].mxu0  ;;  %1206 = vrot.lane.b32.xlu0 %v14484_v22, %s14380_s17  ;;  %1208 = vrot.lane.b32.xlu1 %v14497_v36, %s14380_s17  ;;  %v539_v45 = vmul.f32 0.4, %v14033_v32  ;;  %v3250_v20 = vrot.slane %v3241_v15, 5  ;;  %v3247_v24 = vsel %vm3225_vm1, %v3246_v16, %v3238_v11  ;;  %v3258_v25 = vld [vmem:[%s14615_s22 + $0x22] sm:$0x1] }
  0xf0   : > { %v520_v42 = vmul.f32 0.26666668, %v473_v38  ;;  %v524_v43 = vmul.f32 0.73333335, %v473_v38  ;;  %v527_v44 = vmul.f32 0.8, %v473_v38  ;;  %653 = vmatprep.subr.mxu1 %v14497_v36  ;;  %v3249_v28 = vsel %vm3228_vm2, %v3248_v19, %v3247_v24 }
  0xf1   : > { %v531_v46 = vmul.f32 0.33333334, %v473_v38  ;;  %654 = vmatpush1.msra.mxu1 %v14484_v22  ;;  %v14036_v47 = vpop.f32.mrb[6].mxu0  ;;  %v3259_v26 = vld [vmem:[%s14615_s22 + $0x32] sm:$0x1]  ;;  %v3266_v29 = vrot.slane %v3258_v25, 6 }
  0xf2   : > { %13732 = vmatmul.mubr.msk.f32.vlgmr.msra.gmra.mrb[2].mxu1 %vm362_vm0, %v14490_v23  ;;  %724 = vmatprep.subr.mxu1 %v14502_v39  ;;  %v544_v48 = vmul.f32 0.06666667, %v14036_v47  ;;  %v548_v49 = vmul.f32 0.53333336, %v14036_v47  ;;  %v483_v50 = vpop.f32.mrb[7].mxu0  ;;  %v14515_v51 = vadd.f32 %v520_v42, %v519_v30  ;;  %v14517_v52 = vadd.f32 %v528_v34, %v527_v44 }
  0xf3   : > { %725 = vmatpush1.msra.mxu1 %v14504_v40  ;;  %1210 = vrot.lane.b32.xlu0 %v14504_v40, %s14380_s17  ;;  %v536_v53 = vmul.f32 0.13333334, %v483_v50  ;;  %v540_v54 = vmul.f32 0.6, %v483_v50  ;;  %v543_v55 = vmul.f32 0.93333334, %v483_v50  ;;  %v14522_v56 = vadd.f32 %v524_v43, %v523_v33 }
  0xf4   : > { %1212 = vrot.lane.b32.xlu1 %v14502_v39, %s14380_s17  ;;  %v547_v57 = vmul.f32 0.46666667, %v483_v50  ;;  %v551_v58 = vmul.f32 0.0, %v483_v50  ;;  %795 = vmatprep.subr.mxu1 %v14515_v51  ;;  %v14527_v59 = vadd.f32 %v532_v35, %v531_v46  ;;  %v3268_v30 = vrot.slane %v3259_v26, 5  ;;  %v3274_v31 = vld [vmem:[%s14615_s22 + $0x3] sm:$0x1] }
  0xf5   : > { %866 = vmatprep.subr.mxu0 %v14517_v52  ;;  %788 = vmatprep.mubr.f32.mxu1 %v14379_v9  ;;  %v14531_v60 = vadd.f32 %v536_v53, %v535_v37  ;;  %v14533_v61 = vadd.f32 %v544_v48, %v543_v55  ;;  %v14535_v62 = vadd.f32 %v540_v54, %v539_v45  ;;  %v3275_v32 = vld [vmem:[%s14615_s22 + $0x13] sm:$0x1]  ;;  %v3276_v37 = vld [vmem:[%s14615_s22 + $0x23] sm:$0x1]  ;;  %v3292_v46 = vld [vmem:[%s14615_s22 + $0x4] sm:$0x1] }
  0xf6   : > { %867 = vmatpush1.msra.mxu0 %v14522_v56  ;;  %13733 = vmatmul.mubr.msk.f32.vlgmr.msra.gmra.mrb[4].mxu1 %vm362_vm0, %v14490_v23  ;;  %v14540_v63 = vadd.f32 %v14036_v47, %v551_v58  ;;  %v14542_v0 = vadd.f32 %v548_v49, %v547_v57  ;;  %v3232_v33 = vsel %vm3231_vm3, %v3230_v10, %v3229_v17  ;;  %v3277_v38 = vld [vmem:[%s14615_s22 + $0x33] sm:$0x1]  ;;  %v3282_v42 = vrot.slane %v3275_v32, 7  ;;  %v3293_v47 = vld [vmem:[%s14615_s22 + $0x14] sm:$0x1] }
  0xf7   : > { %796 = vmatpush1.msra.mxu1 %v14506_v41  ;;  %1214 = vrot.lane.b32.xlu0 %v14506_v41, %s14380_s17  ;;  %v3251_v34 = vsel %vm3231_vm3, %v3250_v20, %v3249_v28  ;;  %v3284_v44 = vrot.slane %v3276_v37, 6  ;;  %v3286_v45 = vrot.slane %v3277_v38, 5  ;;  %v3294_v49 = vld [vmem:[%s14615_s22 + $0x24] sm:$0x1]  ;;  %v3295_v50 = vld [vmem:[%s14615_s22 + $0x34] sm:$0x1] }
  0xf8   : > { %1216 = vrot.lane.b32.xlu1 %v14515_v51, %s14380_s17  ;;  %859 = vmatprep.mubr.f32.mxu1 %v14379_v9  ;;  %v3283_v48 = vsel %vm3225_vm1, %v3282_v42, %v3274_v31  ;;  %v3300_v53 = vrot.slane %v3293_v47, 7  ;;  %v3302_v57 = vrot.slane %v3294_v49, 6  ;;  %v3310_v58 = vld [vmem:[%s14615_s22 + $0x5] sm:$0x1]  ;;  %v3311_v1 = vld [vmem:[%s14615_s22 + $0x15] sm:$0x1] }
  0xf9   : > { %937 = vmatprep.subr.mxu1 %v14531_v60  ;;  %1008 = vmatprep.subr.mxu0 %v14533_v61  ;;  %v3285_v55 = vsel %vm3228_vm2, %v3284_v44, %v3283_v48  ;;  %v3304_v4 = vrot.slane %v3295_v50, 5  ;;  %v3312_v5 = vld [vmem:[%s14615_s22 + $0x25] sm:$0x1]  ;;  %v3318_v7 = vrot.slane %v3311_v1, 7  ;;  %v3328_v12 = vld [vmem:[%s14615_s22 + $0x6] sm:$0x1] }
  0xfa   : > { %13734 = vmatmul.mubr.msk.f32.vlgmr.msra.gmra.mrb[6].mxu1 %vm362_vm0, %v14490_v23  ;;  %13735 = vmatmul.mubr.msk.f32.vlgmr.msra.gmra.mrb[8].mxu0 %vm362_vm0, %v14490_v23  ;;  %v3287_v2 = vsel %vm3231_vm3, %v3286_v45, %v3285_v55  ;;  %v3301_v3 = vsel %vm3225_vm1, %v3300_v53, %v3292_v46  ;;  %v3320_v10 = vrot.slane %v3312_v5, 6  ;;  %v3329_v13 = vld [vmem:[%s14615_s22 + $0x16] sm:$0x1]  ;;  %v3330_v15 = vld [vmem:[%s14615_s22 + $0x26] sm:$0x1] }
  0xfb   : > { %938 = vmatpush1.msra.mxu1 %v14527_v59  ;;  %1009 = vmatpush1.msra.mxu0 %v14535_v62  ;;  %v3303_v8 = vsel %vm3228_vm2, %v3302_v57, %v3301_v3  ;;  %v3319_v14 = vsel %vm3225_vm1, %v3318_v7, %v3310_v58  ;;  %v3331_v16 = vld [vmem:[%s14615_s22 + $0x36] sm:$0x1]  ;;  %v3336_v17 = vrot.slane %v3329_v13, 7  ;;  %v3338_v20 = vrot.slane %v3330_v15, 6  ;;  %v3347_v24 = vld [vmem:[%s14615_s22 + $0x17] sm:$0x1] }
  0xfc   : > { %1218 = vrot.lane.b32.xlu0 %v14522_v56, %s14380_s17  ;;  %1222 = vrot.lane.b32.xlu1 %v14527_v59, %s14380_s17  ;;  %v3321_v19 = vsel %vm3228_vm2, %v3320_v10, %v3319_v14  ;;  %v3305_v25 = vsel %vm3231_vm3, %v3304_v4, %v3303_v8  ;;  %v3348_v28 = vld [vmem:[%s14615_s22 + $0x27] sm:$0x1]  ;;  %v3366_v38 = vld [vmem:[%s14615_s22 + $0x28] sm:$0x1] }
  0xfd   : > { %1079 = vmatprep.subr.mxu1 %v14540_v63  ;;  %1001 = vmatprep.mubr.f32.mxu1 %v14379_v9  ;;  %v3356_v32 = vrot.slane %v3348_v28, 6  ;;  %v3367_v42 = vld [vmem:[%s14615_s22 + $0x38] sm:$0x1]  ;;  %v3374_v46 = vrot.slane %v3366_v38, 6  ;;  %v3382_v47 = vld [vmem:[%s14615_s22 + $0x9] sm:$0x1] }
  0xfe   : > { %13736 = vmatmul.mubr.msk.f32.vlgmr.msra.gmra.mrb[8].mxu1 %vm362_vm0, %v14490_v23  ;;  %1072 = vmatprep.mubr.f32.mxu0 %v14379_v9  ;;  %v3383_v48 = vld [vmem:[%s14615_s22 + $0x19] sm:$0x1]  ;;  %v3376_v53 = vrot.slane %v3367_v42, 5  ;;  %v3400_v3 = vld [vmem:[%s14615_s22 + $0xa] sm:$0x1] }
  0xff   : > { %1080 = vmatpush1.msra.mxu1 %v14542_v0  ;;  %1143 = vmatprep.mubr.f32.mxu1 %v14379_v9  ;;  %v3385_v55 = vld [vmem:[%s14615_s22 + $0x39] sm:$0x1]  ;;  %v3390_v57 = vrot.slane %v3383_v48, 7  ;;  %v3401_v4 = vld [vmem:[%s14615_s22 + $0x1a] sm:$0x1] }
 0x100   : > { %1226 = vrot.lane.b32.xlu0 %v14535_v62, %s14380_s17  ;;  %1224 = vrot.lane.b32.xlu1 %v14531_v60, %s14380_s17  ;;  %v3403_v7 = vld [vmem:[%s14615_s22 + $0x3a] sm:$0x1]  ;;  %v3408_v8 = vrot.slane %v3401_v4, 7  ;;  %v3418_v13 = vld [vmem:[%s14615_s22 + $0xb] sm:$0x1] }
 0x101   : > { %13737 = vmatmul.mubr.msk.f32.vlgmr.msra.gmra.mrb[10].mxu0 %vm362_vm0, %v14490_v23  ;;  %v3391_v5 = vsel %vm3225_vm1, %v3390_v57, %v3382_v47  ;;  %v3419_v14 = vld [vmem:[%s14615_s22 + $0x1b] sm:$0x1]  ;;  %v14746_v4 = vld [vmem:[%s16181_s3 + $0x4] sm:$0xf] }
 0x102   : > { %13738 = vmatmul.mubr.msk.f32.vlgmr.msra.gmra.mrb[10].mxu1 %vm362_vm0, %v14490_v23  ;;  %1620 = vmatprep.mubr.f32.mxu0 %v14379_v9  ;;  %v3257_v23 = vld [vmem:[%s14615_s22 + $0x12] sm:$0x1] }
 0x103   : > { %1336 = vmatprep.mubr.f32.mxu1 %v14379_v9  ;;  %v3264_v27 = vrot.slane %v3257_v23, 7  ;;  %v3346_v23 = vld [vmem:[%s14615_s22 + $0x7] sm:$0x1] }
 0x104   : > { %1232 = vrot.lane.b32.xlu0 %v14540_v63, %s14380_s17  ;;  %1234 = vrot.lane.b32.xlu1 %v14379_v9, %s14380_s17 }
 0x105   : > { %v3265_v35 = vsel %vm3225_vm1, %v3264_v27, %v3256_v21  ;;  %v3340_v21 = vrot.slane %v3331_v16, 5  ;;  %v3337_v27 = vsel %vm3225_vm1, %v3336_v17, %v3328_v12  ;;  %v3412_v12 = vrot.slane %v3403_v7, 5 }
 0x106   : > { %v3267_v43 = vsel %vm3228_vm2, %v3266_v29, %v3265_v35  ;;  %v3349_v29 = vld [vmem:[%s14615_s22 + $0x37] sm:$0x1]  ;;  %v3339_v31 = vsel %vm3228_vm2, %v3338_v20, %v3337_v27  ;;  %v3365_v35 = vld [vmem:[%s14615_s22 + $0x18] sm:$0x1]  ;;  %v3409_v17 = vsel %vm3225_vm1, %v3408_v8, %v3400_v3  ;;  %v3421_v20 = vld [vmem:[%s14615_s22 + $0x3b] sm:$0x1] }
 0x107   : > { %v3269_v54 = vsel %vm3231_vm3, %v3268_v30, %v3267_v43  ;;  %v3354_v30 = vrot.slane %v3347_v24, 7  ;;  %v3372_v43 = vrot.slane %v3365_v35, 7  ;;  %v3341_v44 = vsel %vm3231_vm3, %v3340_v21, %v3339_v31  ;;  %v3437_v27 = vld [vmem:[%s14615_s22 + $0x1c] sm:$0x1]  ;;  %v3454_v35 = vld [vmem:[%s14615_s22 + $0xd] sm:$0x1] }
 0x108   : > { %1230 = vrot.lane.b32.xlu0 %v14542_v0, %s14380_s17  ;;  %1220 = vrot.lane.b32.xlu1 %v14517_v52, %s14380_s17  ;;  %v3426_v21 = vrot.slane %v3419_v14, 7  ;;  %v3444_v31 = vrot.slane %v3437_v27, 7 }
 0x109   : > { %v3355_v37 = vsel %vm3225_vm1, %v3354_v30, %v3346_v23  ;;  %v3439_v30 = vld [vmem:[%s14615_s22 + $0x3c] sm:$0x1] }
 0x10a   : > { %v3357_v45 = vsel %vm3228_vm2, %v3356_v32, %v3355_v37  ;;  %v3427_v28 = vsel %vm3225_vm1, %v3426_v21, %v3418_v13  ;;  %v3455_v37 = vld [vmem:[%s14615_s22 + $0x1d] sm:$0x1] }
 0x10c   : > { %2485 = vrot.lane.b32.xlu0 %v14497_v36, %s14380_s17  ;;  %2483 = vrot.lane.b32.xlu1 %v14484_v22, %s14380_s17 }
 0x110   : > { %1228 = vrot.lane.b32.xlu0 %v14533_v61, %s14380_s17  ;;  %2481 = vrot.lane.b32.xlu1 %v14482_v18, %s14380_s17 }
 0x114   : > { %2487 = vrot.lane.b32.xlu0 %v14504_v40, %s14380_s17  ;;  %2489 = vrot.lane.b32.xlu1 %v14502_v39, %s14380_s17 }
 0x118   : > { %2491 = vrot.lane.b32.xlu0 %v14506_v41, %s14380_s17  ;;  %2493 = vrot.lane.b32.xlu1 %v14515_v51, %s14380_s17 }
 0x11c   : > { %2495 = vrot.lane.b32.xlu0 %v14522_v56, %s14380_s17  ;;  %2497 = vrot.lane.b32.xlu1 %v14517_v52, %s14380_s17 }
 0x120   : > { %2499 = vrot.lane.b32.xlu0 %v14527_v59, %s14380_s17  ;;  %2501 = vrot.lane.b32.xlu1 %v14531_v60, %s14380_s17 }
 0x124   : > { %2503 = vrot.lane.b32.xlu0 %v14535_v62, %s14380_s17  ;;  %2505 = vrot.lane.b32.xlu1 %v14533_v61, %s14380_s17 }
 0x128   : > { %2507 = vrot.lane.b32.xlu0 %v14542_v0, %s14380_s17  ;;  %2509 = vrot.lane.b32.xlu1 %v14540_v63, %s14380_s17 }
 0x12c   : > { %14352 = vrot.lane.b32.xlu0 %v14379_v9, %s14380_s17  ;;  %559 = vperm.xlu1 %14356, %v556_v6   ;;  %v3313_v6 = vld [vmem:[%s14615_s22 + $0x35] sm:$0x1] }
 0x12d   : > { %v3322_v11 = vrot.slane %v3313_v6, 5  ;;  %v3402_v6 = vld [vmem:[%s14615_s22 + $0x2a] sm:$0x1] }
 0x12f   : > { %v3323_v26 = vsel %vm3231_vm3, %v3322_v11, %v3321_v19  ;;  %v3410_v11 = vrot.slane %v3402_v6, 6  ;;  %v3420_v19 = vld [vmem:[%s14615_s22 + $0x2b] sm:$0x1] }
 0x130   : > { %3233 = vrot.lane.b32.xlu0 %v3232_v33, %s14382_s25  ;;  %3252 = vrot.lane.b32.xlu1 %v3251_v34, %s14382_s25  ;;  %v3358_v33 = vrot.slane %v3349_v29, 5  ;;  %v3364_v34 = vld [vmem:[%s14615_s22 + $0x8] sm:$0x1]  ;;  %v3428_v24 = vrot.slane %v3420_v19, 6  ;;  %v3438_v29 = vld [vmem:[%s14615_s22 + $0x2c] sm:$0x1] }
 0x131   : > { %v3373_v50 = vsel %vm3225_vm1, %v3372_v43, %v3364_v34  ;;  %v3411_v23 = vsel %vm3228_vm2, %v3410_v11, %v3409_v17  ;;  %v3446_v34 = vrot.slane %v3438_v29, 6  ;;  %v3448_v43 = vrot.slane %v3439_v30, 5 }
 0x132   : > { %v3359_v49 = vsel %vm3231_vm3, %v3358_v33, %v3357_v45  ;;  %v3375_v58 = vsel %vm3228_vm2, %v3374_v46, %v3373_v50  ;;  %v3413_v32 = vsel %vm3231_vm3, %v3412_v12, %v3411_v23  ;;  %v3429_v33 = vsel %vm3228_vm2, %v3428_v24, %v3427_v28  ;;  %v3457_v45 = vld [vmem:[%s14615_s22 + $0x3d] sm:$0x1] }
 0x133   : > { %v3377_v15 = vsel %vm3231_vm3, %v3376_v53, %v3375_v58  ;;  %v3462_v46 = vrot.slane %v3455_v37, 7 }
 0x134   : > { %3270 = vrot.lane.b32.xlu0 %v3269_v54, %s14382_s25  ;;  %3288 = vrot.lane.b32.xlu1 %v3287_v2, %s14382_s25  ;;  %v3384_v54 = vld [vmem:[%s14615_s22 + $0x29] sm:$0x1]  ;;  %v3394_v2 = vrot.slane %v3385_v55, 5 }
 0x135   : > { %v3392_v1 = vrot.slane %v3384_v54, 6  ;;  %v3463_v50 = vsel %vm3225_vm1, %v3462_v46, %v3454_v35  ;;  %v13748_v35 = vld [vmem:[%s16181_s3 + $0x8] sm:$0xf] }
 0x137   : > { %v3393_v10 = vsel %vm3228_vm2, %v3392_v1, %v3391_v5 }
 0x138   : > { %3306 = vrot.lane.b32.xlu0 %v3305_v25, %s14382_s25  ;;  %3324 = vrot.lane.b32.xlu1 %v3323_v26, %s14382_s25  ;;  %v3395_v16 = vsel %vm3231_vm3, %v3394_v2, %v3393_v10  ;;  %v3430_v25 = vrot.slane %v3421_v20, 5  ;;  %v3436_v26 = vld [vmem:[%s14615_s22 + $0xc] sm:$0x1] }
 0x139   : > { %v3445_v42 = vsel %vm3225_vm1, %v3444_v31, %v3436_v26 }
 0x13a   : > { %v3431_v38 = vsel %vm3231_vm3, %v3430_v25, %v3429_v33  ;;  %v3447_v47 = vsel %vm3228_vm2, %v3446_v34, %v3445_v42 }
 0x13b   : > { %v3449_v54 = vsel %vm3231_vm3, %v3448_v43, %v3447_v47 }
 0x13c   : > { %3342 = vrot.lane.b32.xlu0 %v3341_v44, %s14382_s25  ;;  %3360 = vrot.lane.b32.xlu1 %v3359_v49, %s14382_s25  ;;  %v3456_v44 = vld [vmem:[%s14615_s22 + $0x2d] sm:$0x1]  ;;  %v3466_v49 = vrot.slane %v3457_v45, 5 }
 0x13d   : > { %v3464_v48 = vrot.slane %v3456_v44, 6 }
 0x13f   : > { %v3465_v53 = vsel %vm3228_vm2, %v3464_v48, %v3463_v50 }
 0x140   : > { %3378 = vrot.lane.b32.xlu0 %v3377_v15, %s14382_s25  ;;  %3396 = vrot.lane.b32.xlu1 %v3395_v16, %s14382_s25  ;;  %v3467_v55 = vsel %vm3231_vm3, %v3466_v49, %v3465_v53 }
 0x144   : > { %3414 = vrot.lane.b32.xlu0 %v3413_v32, %s14382_s25  ;;  %3432 = vrot.lane.b32.xlu1 %v3431_v38, %s14382_s25 }
 0x148   : > { %3450 = vrot.lane.b32.xlu0 %v3449_v54, %s14382_s25  ;;  %3468 = vrot.lane.b32.xlu1 %v3467_v55, %s14382_s25 }
 0x15c   : > { %v1203_v57 = vpop.permute.xlu1 %1202 }
 0x15d   : > { %v1205_v58 = vpop.permute.xlu0 %1204 }
 0x15e   : > { %v1237_v5 = vsel %vm1236_vm4, %v1203_v57, %v1205_v58 }
 0x161   : > { %v1207_v1 = vpop.permute.xlu0 %1206  ;;  %v1209_v2 = vpop.permute.xlu1 %1208 }
 0x162   : > { %v1238_v3 = vsel %vm1236_vm4, %v1205_v58, %v1207_v1  ;;  %v1239_v10 = vsel %vm1236_vm4, %v1207_v1, %v1209_v2 }
 0x163   : > { %1272 = vmatprep.subr.mxu1 %v1238_v3 }
 0x164   : > { %1273 = vmatpush1.msra.mxu1 %v1237_v5 }
 0x165   : > { %v1211_v6 = vpop.permute.xlu0 %1210  ;;  %13740 = vmatmul.mubr.msk.f32.vlgmr.msra.gmra.mrb[0].mxu1 %vm362_vm0, %v14746_v4 }
 0x166   : > { %v1213_v7 = vpop.permute.xlu1 %1212  ;;  %v1240_v8 = vsel %vm1236_vm4, %v1209_v2, %v1211_v6  ;;  %1407 = vmatprep.mubr.f32.mxu1 %v14379_v9 }
 0x167   : > { %1343 = vmatprep.subr.mxu1 %v1240_v8  ;;  %v1241_v14 = vsel %vm1236_vm4, %v1211_v6, %v1213_v7 }
 0x168   : > { %1344 = vmatpush1.msra.mxu1 %v1239_v10 }
 0x169   : > { %v1215_v11 = vpop.permute.xlu0 %1214  ;;  %13741 = vmatmul.mubr.msk.f32.vlgmr.msra.gmra.mrb[2].mxu1 %vm362_vm0, %v14746_v4 }
 0x16a   : > { %v1217_v12 = vpop.permute.xlu1 %1216  ;;  %v1242_v13 = vsel %vm1236_vm4, %v1213_v7, %v1215_v11  ;;  %1478 = vmatprep.mubr.f32.mxu1 %v14379_v9 }
 0x16b   : > { %1414 = vmatprep.subr.mxu1 %v1242_v13  ;;  %v1243_v19 = vsel %vm1236_vm4, %v1215_v11, %v1217_v12 }
 0x16c   : > { %1415 = vmatpush1.msra.mxu1 %v1241_v14 }
 0x16d   : > { %13742 = vmatmul.mubr.msk.f32.vlgmr.msra.gmra.mrb[4].mxu1 %vm362_vm0, %v14746_v4 }
 0x16e   : > { %v1219_v15 = vpop.permute.xlu0 %1218  ;;  %v1223_v16 = vpop.permute.xlu1 %1222  ;;  %1549 = vmatprep.mubr.f32.mxu1 %v14379_v9 }
 0x16f   : > { %v1244_v17 = vsel %vm1236_vm4, %v1217_v12, %v1219_v15 }
 0x170   : > { %1485 = vmatprep.subr.mxu1 %v1244_v17 }
 0x171   : > { %1486 = vmatpush1.msra.mxu1 %v1243_v19 }
 0x172   : > { %v1227_v20 = vpop.permute.xlu0 %1226  ;;  %v1225_v21 = vpop.permute.xlu1 %1224  ;;  %13743 = vmatmul.mubr.msk.f32.vlgmr.msra.gmra.mrb[6].mxu1 %vm362_vm0, %v14746_v4 }
 0x173   : > { %v1248_v23 = vsel %vm1236_vm4, %v1225_v21, %v1227_v20  ;;  %v1247_v24 = vsel %vm1236_vm4, %v1223_v16, %v1225_v21  ;;  %1691 = vmatprep.mubr.f32.mxu1 %v14379_v9 }
 0x174   : > { %1627 = vmatprep.subr.mxu1 %v1248_v23 }
 0x175   : > { %1628 = vmatpush1.msra.mxu1 %v1247_v24 }
 0x176   : > { %v1233_v25 = vpop.permute.xlu0 %1232  ;;  %v1235_v26 = vpop.permute.xlu1 %1234  ;;  %13745 = vmatmul.mubr.msk.f32.vlgmr.msra.gmra.mrb[8].mxu1 %vm362_vm0, %v14746_v4 }
 0x177   : > { %v1252_v27 = vsel %vm1236_vm4, %v1233_v25, %v1235_v26  ;;  %1833 = vmatprep.mubr.f32.mxu1 %v14379_v9 }
 0x178   : > { %1769 = vmatprep.subr.mxu1 %v1252_v27 }
 0x17a   : > { %v1231_v28 = vpop.permute.xlu0 %1230  ;;  %v1221_v29 = vpop.permute.xlu1 %1220 }
 0x17b   : > { %v1246_v30 = vsel %vm1236_vm4, %v1221_v29, %v1223_v16  ;;  %v1251_v31 = vsel %vm1236_vm4, %v1231_v28, %v1233_v25  ;;  %v1245_v32 = vsel %vm1236_vm4, %v1219_v15, %v1221_v29 }
 0x17c   : > { %1556 = vmatprep.subr.mxu0 %v1246_v30  ;;  %1770 = vmatpush1.msra.mxu1 %v1251_v31 }
 0x17d   : > { %1557 = vmatpush1.msra.mxu0 %v1245_v32  ;;  %13747 = vmatmul.mubr.msk.f32.vlgmr.msra.gmra.mrb[10].mxu1 %vm362_vm0, %v14746_v4 }
 0x17e   : > { %1861 = vmatprep.subr.mxu1 %v14484_v22  ;;  %v14779_v33 = vpop.permute.xlu0 %2485  ;;  %v2484_v34 = vpop.permute.xlu1 %2483  ;;  %1925 = vmatprep.mubr.f32.mxu1 %v14379_v9 }
 0x17f   : > { %1862 = vmatpush1.msra.mxu1 %v14482_v18  ;;  %13744 = vmatmul.mubr.msk.f32.vlgmr.msra.gmra.mrb[8].mxu0 %vm362_vm0, %v14746_v4 }
 0x180   : > { %1932 = vmatprep.subr.mxu1 %v14504_v40  ;;  %1762 = vmatprep.mubr.f32.mxu0 %v14379_v9 }
 0x181   : > { %13749 = vmatmul.mubr.msk.f32.vlgmr.msra.gmra.mrb[0].mxu1 %vm362_vm0, %v13748_v35 }
 0x182   : > { %1933 = vmatpush1.msra.mxu1 %v14497_v36  ;;  %v1229_v22 = vpop.permute.xlu0 %1228  ;;  %v2482_v37 = vpop.permute.xlu1 %2481  ;;  %1996 = vmatprep.mubr.f32.mxu1 %v14379_v9 }
 0x183   : > { %2003 = vmatprep.subr.mxu1 %v14506_v41  ;;  %v1250_v38 = vsel %vm1236_vm4, %v1229_v22, %v1231_v28  ;;  %v1249_v18 = vsel %vm1236_vm4, %v1227_v20, %v1229_v22 }
 0x184   : > { %1698 = vmatprep.subr.mxu0 %v1250_v38 }
 0x185   : > { %1699 = vmatpush1.msra.mxu0 %v1249_v18  ;;  %13750 = vmatmul.mubr.msk.f32.vlgmr.msra.gmra.mrb[2].mxu1 %vm362_vm0, %v13748_v35 }
 0x186   : > { %2004 = vmatpush1.msra.mxu1 %v14502_v39  ;;  %v2488_v40 = vpop.permute.xlu0 %2487  ;;  %13746 = vmatmul.mubr.msk.f32.vlgmr.msra.gmra.mrb[10].mxu0 %vm362_vm0, %v14746_v4  ;;  %v2490_v36 = vpop.permute.xlu1 %2489 }
 0x187   : > { %2145 = vmatprep.subr.mxu0 %v14527_v59  ;;  %2074 = vmatprep.subr.mxu1 %v14522_v56  ;;  %v2516_v56 = vsel %vm1236_vm4, %v2484_v34, %v14779_v33  ;;  %v2515_v59 = vsel %vm1236_vm4, %v2482_v37, %v2484_v34  ;;  %v2517_v43 = vsel %vm1236_vm4, %v14779_v33, %v2488_v40 }
 0x188   : > { %2146 = vmatpush1.msra.mxu0 %v14517_v52  ;;  %2067 = vmatprep.mubr.f32.mxu1 %v14379_v9 }
 0x189   : > { %2287 = vmatprep.subr.mxu0 %v14542_v0  ;;  %13751 = vmatmul.mubr.msk.f32.vlgmr.msra.gmra.mrb[4].mxu1 %vm362_vm0, %v13748_v35 }
 0x18a   : > { %2075 = vmatpush1.msra.mxu1 %v14515_v51  ;;  %2209 = vmatprep.mubr.f32.mxu0 %v14379_v9  ;;  %v2492_v39 = vpop.permute.xlu0 %2491  ;;  %v2494_v41 = vpop.permute.xlu1 %2493 }
 0x18b   : > { %13753 = vmatmul.mubr.msk.f32.vlgmr.msra.gmra.mrb[8].mxu0 %vm362_vm0, %v13748_v35  ;;  %2216 = vmatprep.subr.mxu1 %v14535_v62  ;;  %v2518_v62 = vsel %vm1236_vm4, %v2488_v40, %v2490_v36  ;;  %v2520_v46 = vsel %vm1236_vm4, %v2492_v39, %v2494_v41  ;;  %v2519_v47 = vsel %vm1236_vm4, %v2490_v36, %v2492_v39 }
 0x18c   : > { %2288 = vmatpush1.msra.mxu0 %v14533_v61  ;;  %2138 = vmatprep.mubr.f32.mxu1 %v14379_v9 }
 0x18d   : > { %13752 = vmatmul.mubr.msk.f32.vlgmr.msra.gmra.mrb[6].mxu1 %vm362_vm0, %v13748_v35  ;;  %2351 = vmatprep.mubr.f32.mxu0 %v14379_v9 }
 0x18e   : > { %2217 = vmatpush1.msra.mxu1 %v14531_v60  ;;  %14037 = vmatprep.subr.mxu0 %v14379_v9  ;;  %v2496_v51 = vpop.permute.xlu0 %2495  ;;  %v2498_v52 = vpop.permute.xlu1 %2497 }
 0x18f   : > { %13755 = vmatmul.mubr.msk.f32.vlgmr.msra.gmra.mrb[10].mxu0 %vm362_vm0, %v13748_v35  ;;  %2550 = vmatprep.subr.mxu1 %v2516_v56  ;;  %v2522_v50 = vsel %vm1236_vm4, %v2496_v51, %v2498_v52  ;;  %v2521_v55 = vsel %vm1236_vm4, %v2494_v41, %v2496_v51 }
 0x190   : > { %14038 = vmatpush3.msra.mxu0 %v14540_v63  ;;  %2280 = vmatprep.mubr.f32.mxu1 %v14379_v9  ;;  %v13757_v63 = vld [vmem:[%s16181_s3 + $0xc] sm:$0xf] }
 0x191   : > { %13754 = vmatmul.mubr.msk.f32.vlgmr.msra.gmra.mrb[8].mxu1 %vm362_vm0, %v13748_v35  ;;  %14039 = vmatprep.mubr.msk.f32.mxu0 %vm14383_vm5, %v14379_v9 }
 0x192   : > { %2551 = vmatpush1.msra.mxu1 %v2515_v59  ;;  %v2500_v60 = vpop.permute.xlu0 %2499  ;;  %v2502_v61 = vpop.permute.xlu1 %2501  ;;  %2614 = vmatprep.mubr.f32.mxu1 %v14379_v9 }
 0x193   : > { %14040 = vmatmul.mubr.msk.f32.vlgmr.msra.gmra.mrb[12].mxu0 %vm362_vm0, %v13748_v35  ;;  %2621 = vmatprep.subr.mxu1 %v2518_v62  ;;  %v2524_v0 = vsel %vm1236_vm4, %v2500_v60, %v2502_v61  ;;  %v2523_v42 = vsel %vm1236_vm4, %v2498_v52, %v2500_v60 }
 0x194   : > { %2834 = vmatprep.subr.mxu0 %v2524_v0  ;;  %2898 = vmatprep.mubr.f32.mxu0 %v14379_v9 }
 0x195   : > { %13758 = vmatmul.mubr.msk.f32.vlgmr.msra.gmra.mrb[0].mxu1 %vm362_vm0, %v13757_v63  ;;  %2835 = vmatpush1.msra.mxu0 %v2523_v42 }
 0x196   : > { %2622 = vmatpush1.msra.mxu1 %v2517_v43  ;;  %v2504_v44 = vpop.permute.xlu0 %2503  ;;  %v2506_v45 = vpop.permute.xlu1 %2505  ;;  %2685 = vmatprep.mubr.f32.mxu1 %v14379_v9 }
 0x197   : > { %13762 = vmatmul.mubr.msk.f32.vlgmr.msra.gmra.mrb[8].mxu0 %vm362_vm0, %v13757_v63  ;;  %2692 = vmatprep.subr.mxu1 %v2520_v46  ;;  %v2526_v58 = vsel %vm1236_vm4, %v2504_v44, %v2506_v45  ;;  %v2525_v3 = vsel %vm1236_vm4, %v2502_v61, %v2504_v44 }
 0x198   : > { %3040 = vmatprep.mubr.f32.mxu0 %v14379_v9 }
 0x199   : > { %13759 = vmatmul.mubr.msk.f32.vlgmr.msra.gmra.mrb[2].mxu1 %vm362_vm0, %v13757_v63 }
 0x19a   : > { %2693 = vmatpush1.msra.mxu1 %v2519_v47  ;;  %v2508_v48 = vpop.permute.xlu0 %2507  ;;  %v2510_v49 = vpop.permute.xlu1 %2509  ;;  %2756 = vmatprep.mubr.f32.mxu1 %v14379_v9 }
 0x19b   : > { %2763 = vmatprep.subr.mxu1 %v2522_v50  ;;  %v2528_v53 = vsel %vm1236_vm4, %v2508_v48, %v2510_v49  ;;  %v2527_v54 = vsel %vm1236_vm4, %v2506_v45, %v2508_v48 }
 0x19c   : > { %2976 = vmatprep.subr.mxu0 %v2528_v53 }
 0x19d   : > { %13760 = vmatmul.mubr.msk.f32.vlgmr.msra.gmra.mrb[4].mxu1 %vm362_vm0, %v13757_v63  ;;  %2977 = vmatpush1.msra.mxu0 %v2527_v54 }
 0x19e   : > { %2764 = vmatpush1.msra.mxu1 %v2521_v55  ;;  %v14353_v57 = vpop.permute.xlu0 %14352  ;;  %13764 = vmatmul.mubr.msk.f32.vlgmr.msra.gmra.mrb[10].mxu0 %vm362_vm0, %v13757_v63 }
 0x19f   : > { %v14355_v1 = vunpack.i.h.bf16 %v14353_v57  ;;  %v14354_v2 = vunpack.i.l.bf16 %v14353_v57  ;;  %2905 = vmatprep.subr.mxu1 %v2526_v58  ;;  %2827 = vmatprep.mubr.f32.mxu1 %v14379_v9  ;;  %v14898_v57 = vld [vmem:[%s16183_s5] sm:$0xf] }
 0x1a0   : > { %3111 = vmatprep.mubr.f32.mxu0 %v14379_v9 }
 0x1a1   : > { %13761 = vmatmul.mubr.msk.f32.vlgmr.msra.gmra.mrb[6].mxu1 %vm362_vm0, %v13757_v63  ;;  %v2530_v4 = vsel %vm1236_vm4, %v14354_v2, %v14355_v1  ;;  %v2529_v5 = vsel %vm1236_vm4, %v2510_v49, %v14354_v2 }
 0x1a2   : > { %2906 = vmatpush1.msra.mxu1 %v2525_v3  ;;  %3047 = vmatprep.subr.mxu0 %v2530_v4  ;;  %v3234_v7 = vpop.permute.xlu0 %3233 }
 0x1a3   : > { %3048 = vmatpush1.msra.mxu0 %v2529_v5  ;;  %2969 = vmatprep.mubr.f32.mxu1 %v14379_v9  ;;  %3237 = vst.msk [vmem:[#allocation3 + $0x8] sm:$0xf] %vm3236_vm6, %v3234_v7 }
 0x1a4   : > { %13765 = vmatmul.mubr.msk.f32.vlgmr.msra.gmra.mrb[14].mxu0 %vm362_vm0, %v13757_v63 }
 0x1a5   : > { %13763 = vmatmul.mubr.msk.f32.vlgmr.msra.gmra.mrb[8].mxu1 %vm362_vm0, %v13757_v63  ;;  %3560 = vmatprep.mubr.f32.mxu0 %v14379_v9 }
 0x1a6   : > { %8742 = vmatprep.mubr.f32.mxu1 %v14379_v9  ;;  %v3271_v10 = vpop.permute.xlu0 %3270 }
 0x1a7   : > { %3273 = vst.msk [vmem:[#allocation3 + $0x18] sm:$0xf] %vm3236_vm6, %v3271_v10 }
 0x1aa   : > { %v3307_v12 = vpop.permute.xlu0 %3306 }
 0x1ab   : > { %v14861_v6 = vpop.permute.xlu1 %559  ;;  %3309 = vst.msk [vmem:[#allocation3 + $0x28] sm:$0xf] %vm3236_vm6, %v3307_v12 }
 0x1ae   : > { %v3343_v14 = vpop.permute.xlu0 %3342 }
 0x1af   : > { %v3253_v8 = vpop.permute.xlu1 %3252  ;;  %3345 = vst.msk [vmem:[#allocation3 + $0x38] sm:$0xf] %vm3236_vm6, %v3343_v14 }
 0x1b0   : > { %3255 = vst.msk [vmem:[#allocation3 + $0x10] sm:$0xf] %vm3236_vm6, %v3253_v8 }
 0x1b2   : > { %v3379_v16 = vpop.permute.xlu0 %3378 }
 0x1b3   : > { %v3289_v11 = vpop.permute.xlu1 %3288  ;;  %3381 = vst.msk [vmem:[#allocation3 + $0x48] sm:$0xf] %vm3236_vm6, %v3379_v16 }
 0x1b4   : > { %3291 = vst.msk [vmem:[#allocation3 + $0x20] sm:$0xf] %vm3236_vm6, %v3289_v11 }
 0x1b6   : > { %v3415_v19 = vpop.permute.xlu0 %3414 }
 0x1b7   : > { %v3325_v13 = vpop.permute.xlu1 %3324  ;;  %3417 = vst.msk [vmem:[#allocation3 + $0x58] sm:$0xf] %vm3236_vm6, %v3415_v19 }
 0x1b8   : > { %3327 = vst.msk [vmem:[#allocation3 + $0x30] sm:$0xf] %vm3236_vm6, %v3325_v13 }
 0x1ba   : > { %v3451_v21 = vpop.permute.xlu0 %3450 }
 0x1bb   : > { %v3361_v15 = vpop.permute.xlu1 %3360  ;;  %3453 = vst.msk [vmem:[#allocation3 + $0x68] sm:$0xf] %vm3236_vm6, %v3451_v21 }
 0x1bc   : > { %3363 = vst.msk [vmem:[#allocation3 + $0x40] sm:$0xf] %vm3236_vm6, %v3361_v15 }
 0x1bf   : > { %v3397_v17 = vpop.permute.xlu1 %3396 }
 0x1c0   : > { %3399 = vst.msk [vmem:[#allocation3 + $0x50] sm:$0xf] %vm3236_vm6, %v3397_v17 }
 0x1c3   : > { %v3433_v20 = vpop.permute.xlu1 %3432 }
 0x1c4   : > { %3435 = vst.msk [vmem:[#allocation3 + $0x60] sm:$0xf] %vm3236_vm6, %v3433_v20 }
 0x1c7   : > { %v3469_v23 = vpop.permute.xlu1 %3468 }
 0x1c8   : > { %3471 = vst.msk [vmem:[#allocation3 + $0x70] sm:$0xf] %vm3236_vm6, %v3469_v23 }
 0x250   : > { %v1835_v24 = vpop.f32.mrb[10].mxu1 }
 0x251   : > { %v1837_v25 = vpop.f32.mrb[11].mxu1  ;;  %v14056_v26 = vadd.f32 %v1835_v24, %v14861_v6 }
 0x252   : > { %v14057_v1 = vadd.f32 %v1837_v25, %v14861_v6 }
 0x266   : > { %v2424_v27 = vpop.f32.mrb[12].mxu0 }
 0x267   : > { %v2443_v28 = vadd.f32 %v14056_v26, %v2424_v27  ;;  %v14041_v29 = vpop.f32.mrb[13].mxu0 }
 0x268   : > { %v2616_v30 = vpop.f32.mrb[0].mxu1 }
 0x269   : > { %v14042_v31 = vadd.f32 %v2616_v30, %v14861_v6  ;;  %v2618_v32 = vpop.f32.mrb[1].mxu1 }
 0x26a   : > { %v2900_v33 = vpop.f32.mrb[8].mxu0  ;;  %v14043_v34 = vadd.f32 %v2618_v32, %v14861_v6 }
 0x26b   : > { %v3150_v35 = vrot.slane %v14042_v31, 4  ;;  %v14050_v22 = vadd.f32 %v2900_v33, %v14861_v6  ;;  %v2902_v37 = vpop.f32.mrb[9].mxu0 }
 0x26c   : > { %v3151_v38 = vrot.slane %v14043_v34, 4  ;;  %v14051_v18 = vadd.f32 %v2902_v37, %v14861_v6  ;;  %v2687_v40 = vpop.f32.mrb[2].mxu1 }
 0x26d   : > { %3182 = vst [vmem:[#allocation3] sm:$0xf0] %v3150_v35  ;;  %v3158_v36 = vrot.slane %v14050_v22, 4  ;;  %v14044_v39 = vadd.f32 %v2687_v40, %v14861_v6  ;;  %v2689_v41 = vpop.f32.mrb[3].mxu1 }
 0x26e   : > { %3183 = vst [vmem:[#allocation3 + $0x8] sm:$0xf0] %v3151_v38  ;;  %v3159_v51 = vrot.slane %v14051_v18, 4  ;;  %v14045_v52 = vadd.f32 %v2689_v41, %v14861_v6  ;;  %v15088_v38 = vld [vmem:[%s16183_s5 + $0x4] sm:$0xf] }
 0x26f   : > { %3190 = vst [vmem:[#allocation3 + $0x40] sm:$0xf0] %v3158_v36  ;;  %v3152_v56 = vrot.slane %v14044_v39, 4 }
 0x270   : > { %3191 = vst [vmem:[#allocation3 + $0x48] sm:$0xf0] %v3159_v51  ;;  %v3153_v59 = vrot.slane %v14045_v52, 4  ;;  %v2758_v60 = vpop.f32.mrb[4].mxu1 }
 0x271   : > { %3184 = vst [vmem:[#allocation3 + $0x10] sm:$0xf0] %v3152_v56  ;;  %v14046_v61 = vadd.f32 %v2758_v60, %v14861_v6  ;;  %v3042_v62 = vpop.f32.mrb[10].mxu0  ;;  %v2760_v63 = vpop.f32.mrb[5].mxu1 }
 0x272   : > { %3185 = vst [vmem:[#allocation3 + $0x18] sm:$0xf0] %v3153_v59  ;;  %v14054_v0 = vadd.f32 %v3042_v62, %v14861_v6  ;;  %v14047_v42 = vadd.f32 %v2760_v63, %v14861_v6  ;;  %v3044_v43 = vpop.f32.mrb[11].mxu0 }
 0x273   : > { %v3154_v44 = vrot.slane %v14046_v61, 4  ;;  %v14055_v45 = vadd.f32 %v3044_v43, %v14861_v6 }
 0x274   : > { %v3162_v46 = vrot.slane %v14054_v0, 4  ;;  %v3155_v47 = vrot.slane %v14047_v42, 4  ;;  %v2829_v48 = vpop.f32.mrb[6].mxu1  ;;  %v14888_v49 = vld [vmem:[#allocation3] sm:$0xff] }
 0x275   : > { %3186 = vst [vmem:[#allocation3 + $0x20] sm:$0xf0] %v3154_v44  ;;  %v3163_v50 = vrot.slane %v14055_v45, 4  ;;  %v14048_v53 = vadd.f32 %v2829_v48, %v14861_v6  ;;  %4039 = vrot.lane.b32.xlu0 %v14888_v49, %s14380_s17  ;;  %v2831_v54 = vpop.f32.mrb[7].mxu1  ;;  %v14893_v55 = vld [vmem:[#allocation3 + $0x8] sm:$0xff] }
 0x276   : > { %3194 = vst [vmem:[#allocation3 + $0x60] sm:$0xf0] %v3162_v46  ;;  %3187 = vst [vmem:[#allocation3 + $0x28] sm:$0xf0] %v3155_v47  ;;  %v14049_v58 = vadd.f32 %v2831_v54, %v14861_v6  ;;  %3496 = vmatprep.subr.mxu0 %v14893_v55  ;;  %v14950_v26 = vld [vmem:[#allocation3 + $0x40] sm:$0xff] }
 0x277   : > { %3195 = vst [vmem:[#allocation3 + $0x68] sm:$0xf0] %v3163_v50  ;;  %v3156_v2 = vrot.slane %v14048_v53, 4  ;;  %v3113_v3 = vpop.f32.mrb[14].mxu0  ;;  %3497 = vmatpush1.msra.mxu0 %v14888_v49  ;;  %v14945_v25 = vld [vmem:[#allocation3 + $0x48] sm:$0xff] }
 0x278   : > { %v3157_v4 = vrot.slane %v14049_v58, 4  ;;  %v3132_v5 = vadd.f32 %v3113_v3, %v2443_v28  ;;  %v2971_v7 = vpop.f32.mrb[8].mxu1  ;;  %v3115_v8 = vpop.f32.mrb[15].mxu0  ;;  %13766 = vmatmul.mubr.msk.f32.vlgmr.msra.gmra.mrb[16].mxu0 %vm362_vm0, %v14898_v57  ;;  %v14906_v10 = vld [vmem:[#allocation3 + $0x10] sm:$0xff] }
 0x279   : > { %3188 = vst [vmem:[#allocation3 + $0x30] sm:$0xf0] %v3156_v2  ;;  %v14052_v11 = vadd.f32 %v2971_v7, %v14861_v6  ;;  %v3133_v12 = vadd.f32 %v14057_v1, %v3115_v8  ;;  %4041 = vrot.lane.b32.xlu0 %v14893_v55, %s14380_s17  ;;  %4043 = vrot.lane.b32.xlu1 %v14906_v10, %s14380_s17  ;;  %v2973_v13 = vpop.f32.mrb[9].mxu1  ;;  %v14913_v14 = vld [vmem:[#allocation3 + $0x18] sm:$0xff] }
 0x27a   : > { %3189 = vst [vmem:[#allocation3 + $0x38] sm:$0xf0] %v3157_v4  ;;  %v3164_v15 = vrot.slane %v3132_v5, 4  ;;  %v14053_v16 = vadd.f32 %v2973_v13, %v14861_v6  ;;  %3567 = vmatprep.subr.mxu0 %v14913_v14  ;;  %3631 = vmatprep.mubr.f32.mxu0 %v14379_v9  ;;  %v15162_v5 = vld [vmem:[%s16183_s5 + $0x8] sm:$0xf] }
 0x27b   : > { %v3160_v17 = vrot.slane %v14052_v11, 4  ;;  %v3165_v19 = vrot.slane %v3133_v12, 4  ;;  %3568 = vmatpush1.msra.mxu0 %v14906_v10 }
 0x27c   : > { %3196 = vst [vmem:[#allocation3 + $0x70] sm:$0xf0] %v3164_v15  ;;  %v3161_v20 = vrot.slane %v14053_v16, 4  ;;  %13767 = vmatmul.mubr.msk.f32.vlgmr.msra.gmra.mrb[18].mxu0 %vm362_vm0, %v14898_v57  ;;  %v14921_v21 = vld [vmem:[#allocation3 + $0x20] sm:$0xff] }
 0x27d   : > { %3192 = vst [vmem:[#allocation3 + $0x50] sm:$0xf0] %v3160_v17  ;;  %3197 = vst [vmem:[#allocation3 + $0x78] sm:$0xf0] %v3165_v19  ;;  %4045 = vrot.lane.b32.xlu1 %v14913_v14, %s14380_s17  ;;  %4047 = vrot.lane.b32.xlu0 %v14921_v21, %s14380_s17  ;;  %v14927_v6 = vld [vmem:[#allocation3 + $0x28] sm:$0xff]  ;;  %v14976_v30 = vld [vmem:[#allocation3 + $0x60] sm:$0xff] }
 0x27e   : > { %3193 = vst [vmem:[#allocation3 + $0x58] sm:$0xf0] %v3161_v20  ;;  %3638 = vmatprep.subr.mxu0 %v14927_v6  ;;  %3702 = vmatprep.mubr.f32.mxu0 %v14379_v9  ;;  %v14968_v29 = vld [vmem:[#allocation3 + $0x68] sm:$0xff] }
 0x27f   : > { %3639 = vmatpush1.msra.mxu0 %v14921_v21 }
 0x280   : > { %13768 = vmatmul.mubr.msk.f32.vlgmr.msra.gmra.mrb[20].mxu0 %vm362_vm0, %v14898_v57  ;;  %v14934_v23 = vld [vmem:[#allocation3 + $0x30] sm:$0xff] }
 0x281   : > { %4049 = vrot.lane.b32.xlu1 %v14927_v6, %s14380_s17  ;;  %4051 = vrot.lane.b32.xlu0 %v14934_v23, %s14380_s17  ;;  %v14940_v24 = vld [vmem:[#allocation3 + $0x38] sm:$0xff] }
 0x282   : > { %3709 = vmatprep.subr.mxu0 %v14940_v24  ;;  %3773 = vmatprep.mubr.f32.mxu0 %v14379_v9 }
 0x283   : > { %3710 = vmatpush1.msra.mxu0 %v14934_v23  ;;  %v14986_v31 = vld [vmem:[#allocation3 + $0x70] sm:$0xff] }
 0x284   : > { %13769 = vmatmul.mubr.msk.f32.vlgmr.msra.gmra.mrb[22].mxu0 %vm362_vm0, %v14898_v57  ;;  %3780 = vmatprep.subr.mxu0 %v14945_v25  ;;  %v14963_v28 = vld [vmem:[#allocation3 + $0x50] sm:$0xff]  ;;  %v15051_v32 = vld [vmem:[#allocation3 + $0x78] sm:$0xff] }
 0x285   : > { %4057 = vrot.lane.b32.xlu1 %v14945_v25, %s14380_s17  ;;  %4055 = vrot.lane.b32.xlu0 %v14950_v26, %s14380_s17  ;;  %v14956_v27 = vld [vmem:[#allocation3 + $0x58] sm:$0xff] }
 0x286   : > { %3781 = vmatpush1.msra.mxu0 %v14950_v26  ;;  %3844 = vmatprep.mubr.f32.mxu0 %v14379_v9 }
 0x287   : > { %3851 = vmatprep.subr.mxu0 %v14956_v27 }
 0x288   : > { %13770 = vmatmul.mubr.msk.f32.vlgmr.msra.gmra.mrb[24].mxu0 %vm362_vm0, %v14898_v57 }
 0x289   : > { %3852 = vmatpush1.msra.mxu0 %v14963_v28  ;;  %4053 = vrot.lane.b32.xlu1 %v14940_v24, %s14380_s17 }
 0x28a   : > { %4059 = vrot.lane.b32.xlu0 %v14963_v28, %s14380_s17  ;;  %3922 = vmatprep.subr.mxu0 %v14968_v29 }
 0x28b   : > { %3915 = vmatprep.mubr.f32.mxu0 %v14379_v9 }
 0x28c   : > { %13771 = vmatmul.mubr.msk.f32.vlgmr.msra.gmra.mrb[26].mxu0 %vm362_vm0, %v14898_v57 }
 0x28d   : > { %3923 = vmatpush1.msra.mxu0 %v14976_v30  ;;  %4065 = vrot.lane.b32.xlu1 %v14968_v29, %s14380_s17 }
 0x28e   : > { %4063 = vrot.lane.b32.xlu0 %v14976_v30, %s14380_s17  ;;  %3986 = vmatprep.mubr.f32.mxu0 %v14379_v9 }
 0x290   : > { %13772 = vmatmul.mubr.msk.f32.vlgmr.msra.gmra.mrb[28].mxu0 %vm362_vm0, %v14898_v57  ;;  %v15147_v57 = vld [vmem:[#allocation3 + $0x80] sm:$0xff] }
 0x291   : > { %4061 = vrot.lane.b32.xlu1 %v14956_v27, %s14380_s17  ;;  %4164 = vmatprep.mubr.f32.mxu0 %v14379_v9 }
 0x292   : > { %4067 = vrot.lane.b32.xlu0 %v14986_v31, %s14380_s17 }
 0x295   : > { %4615 = vrot.lane.b32.xlu1 %v14893_v55, %s14384_s15 }
 0x296   : > { %4617 = vrot.lane.b32.xlu0 %v14906_v10, %s14384_s15 }
 0x299   : > { %4613 = vrot.lane.b32.xlu1 %v14888_v49, %s14384_s15 }
 0x29a   : > { %4619 = vrot.lane.b32.xlu0 %v14913_v14, %s14384_s15 }
 0x29d   : > { %4621 = vrot.lane.b32.xlu1 %v14921_v21, %s14384_s15 }
 0x29e   : > { %4623 = vrot.lane.b32.xlu0 %v14927_v6, %s14384_s15 }
 0x2a1   : > { %4625 = vrot.lane.b32.xlu1 %v14934_v23, %s14384_s15 }
 0x2a2   : > { %4627 = vrot.lane.b32.xlu0 %v14940_v24, %s14384_s15 }
 0x2a5   : > { %4629 = vrot.lane.b32.xlu1 %v14950_v26, %s14384_s15 }
 0x2a6   : > { %4631 = vrot.lane.b32.xlu0 %v14945_v25, %s14384_s15 }
 0x2a9   : > { %4633 = vrot.lane.b32.xlu1 %v14963_v28, %s14384_s15 }
 0x2aa   : > { %4635 = vrot.lane.b32.xlu0 %v14956_v27, %s14384_s15 }
 0x2ad   : > { %4637 = vrot.lane.b32.xlu1 %v14976_v30, %s14384_s15 }
 0x2ae   : > { %4639 = vrot.lane.b32.xlu0 %v14968_v29, %s14384_s15 }
 0x2b1   : > { %4641 = vrot.lane.b32.xlu1 %v14986_v31, %s14384_s15 }
 0x2b2   : > { %5736 = vrot.lane.b32.xlu0 %v14906_v10, %s14380_s17 }
 0x2b5   : > { %5738 = vrot.lane.b32.xlu1 %v14913_v14, %s14380_s17 }
 0x2b6   : > { %5734 = vrot.lane.b32.xlu0 %v14893_v55, %s14380_s17 }
 0x2b9   : > { %5740 = vrot.lane.b32.xlu1 %v14921_v21, %s14380_s17 }
 0x2ba   : > { %5742 = vrot.lane.b32.xlu0 %v14927_v6, %s14380_s17 }
 0x2bd   : > { %5744 = vrot.lane.b32.xlu1 %v14934_v23, %s14380_s17 }
 0x2be   : > { %5746 = vrot.lane.b32.xlu0 %v14940_v24, %s14380_s17 }
 0x2c1   : > { %5748 = vrot.lane.b32.xlu1 %v14950_v26, %s14380_s17 }
 0x2c2   : > { %5750 = vrot.lane.b32.xlu0 %v14945_v25, %s14380_s17 }
 0x2c5   : > { %5752 = vrot.lane.b32.xlu1 %v14963_v28, %s14380_s17 }
 0x2c6   : > { %5754 = vrot.lane.b32.xlu0 %v14956_v27, %s14380_s17 }
 0x2c9   : > { %5756 = vrot.lane.b32.xlu1 %v14976_v30, %s14380_s17 }
 0x2ca   : > { %5758 = vrot.lane.b32.xlu0 %v14968_v29, %s14380_s17 }
 0x2cd   : > { %5760 = vrot.lane.b32.xlu1 %v14986_v31, %s14380_s17 }
 0x2ce   : > { %5762 = vrot.lane.b32.xlu0 %v15051_v32, %s14380_s17 }
 0x2d1   : > { %6310 = vrot.lane.b32.xlu1 %v14906_v10, %s14384_s15 }
 0x2d2   : > { %6312 = vrot.lane.b32.xlu0 %v14913_v14, %s14384_s15 }
 0x2d5   : > { %6308 = vrot.lane.b32.xlu1 %v14893_v55, %s14384_s15 }
 0x2d6   : > { %6314 = vrot.lane.b32.xlu0 %v14921_v21, %s14384_s15 }
 0x2d9   : > { %6316 = vrot.lane.b32.xlu1 %v14927_v6, %s14384_s15 }
 0x2da   : > { %6318 = vrot.lane.b32.xlu0 %v14934_v23, %s14384_s15 }
 0x2dd   : > { %6320 = vrot.lane.b32.xlu1 %v14940_v24, %s14384_s15 }
 0x2de   : > { %6322 = vrot.lane.b32.xlu0 %v14950_v26, %s14384_s15 }
 0x2e1   : > { %6324 = vrot.lane.b32.xlu1 %v14945_v25, %s14384_s15 }
 0x2e2   : > { %6326 = vrot.lane.b32.xlu0 %v14963_v28, %s14384_s15 }
 0x2e5   : > { %6328 = vrot.lane.b32.xlu1 %v14956_v27, %s14384_s15 }
 0x2e6   : > { %6330 = vrot.lane.b32.xlu0 %v14976_v30, %s14384_s15 }
 0x2e7   : > { %v4040_v33 = vpop.permute.xlu0 %4039 }
 0x2e9   : > { %6332 = vrot.lane.b32.xlu1 %v14968_v29, %s14384_s15 }
 0x2ea   : > { %6334 = vrot.lane.b32.xlu0 %v14986_v31, %s14384_s15 }
 0x2eb   : > { %v4042_v34 = vpop.permute.xlu0 %4041  ;;  %v4044_v35 = vpop.permute.xlu1 %4043 }
 0x2ec   : > { %v4070_v22 = vsel %vm1236_vm4, %v4042_v34, %v4044_v35  ;;  %v4069_v37 = vsel %vm1236_vm4, %v4040_v33, %v4042_v34 }
 0x2ed   : > { %4100 = vmatprep.subr.mxu0 %v4070_v22  ;;  %6336 = vrot.lane.b32.xlu1 %v15051_v32, %s14384_s15 }
 0x2ee   : > { %7430 = vrot.lane.b32.xlu0 %v14913_v14, %s14380_s17  ;;  %4101 = vmatpush1.msra.mxu0 %v4069_v37 }
 0x2ef   : > { %v4046_v18 = vpop.permute.xlu1 %4045  ;;  %v4048_v40 = vpop.permute.xlu0 %4047  ;;  %13774 = vmatmul.mubr.msk.f32.vlgmr.msra.gmra.mrb[16].mxu0 %vm362_vm0, %v15088_v38 }
 0x2f0   : > { %v4072_v36 = vsel %vm1236_vm4, %v4046_v18, %v4048_v40  ;;  %v4071_v39 = vsel %vm1236_vm4, %v4044_v35, %v4046_v18  ;;  %4235 = vmatprep.mubr.f32.mxu0 %v14379_v9 }
 0x2f1   : > { %4171 = vmatprep.subr.mxu0 %v4072_v36  ;;  %7432 = vrot.lane.b32.xlu1 %v14921_v21, %s14380_s17 }
 0x2f2   : > { %7428 = vrot.lane.b32.xlu0 %v14906_v10, %s14380_s17  ;;  %4172 = vmatpush1.msra.mxu0 %v4071_v39 }
 0x2f3   : > { %v4050_v41 = vpop.permute.xlu1 %4049  ;;  %v4052_v51 = vpop.permute.xlu0 %4051  ;;  %13775 = vmatmul.mubr.msk.f32.vlgmr.msra.gmra.mrb[18].mxu0 %vm362_vm0, %v15088_v38 }
 0x2f4   : > { %v4074_v52 = vsel %vm1236_vm4, %v4050_v41, %v4052_v51  ;;  %v4073_v56 = vsel %vm1236_vm4, %v4048_v40, %v4050_v41  ;;  %4306 = vmatprep.mubr.f32.mxu0 %v14379_v9 }
 0x2f5   : > { %4242 = vmatprep.subr.mxu0 %v4074_v52  ;;  %7434 = vrot.lane.b32.xlu1 %v14927_v6, %s14380_s17 }
 0x2f6   : > { %7436 = vrot.lane.b32.xlu0 %v14934_v23, %s14380_s17  ;;  %4243 = vmatpush1.msra.mxu0 %v4073_v56 }
 0x2f7   : > { %v4058_v59 = vpop.permute.xlu1 %4057  ;;  %v4056_v60 = vpop.permute.xlu0 %4055  ;;  %13776 = vmatmul.mubr.msk.f32.vlgmr.msra.gmra.mrb[20].mxu0 %vm362_vm0, %v15088_v38 }
 0x2f8   : > { %4377 = vmatprep.mubr.f32.mxu0 %v14379_v9  ;;  %v4077_v44 = vsel %vm1236_vm4, %v4056_v60, %v4058_v59 }
 0x2f9   : > { %7438 = vrot.lane.b32.xlu1 %v14940_v24, %s14380_s17 }
 0x2fa   : > { %7440 = vrot.lane.b32.xlu0 %v14950_v26, %s14380_s17 }
 0x2fb   : > { %v4054_v61 = vpop.permute.xlu1 %4053 }
 0x2fc   : > { %v4060_v62 = vpop.permute.xlu0 %4059  ;;  %v4076_v63 = vsel %vm1236_vm4, %v4054_v61, %v4056_v60  ;;  %v4075_v0 = vsel %vm1236_vm4, %v4052_v51, %v4054_v61  ;;  %v13789_v61 = vld [vmem:[%s16183_s5 + $0xc] sm:$0xf] }
 0x2fd   : > { %4313 = vmatprep.subr.mxu0 %v4076_v63  ;;  %7442 = vrot.lane.b32.xlu1 %v14945_v25, %s14380_s17  ;;  %v4078_v42 = vsel %vm1236_vm4, %v4058_v59, %v4060_v62 }
 0x2fe   : > { %7444 = vrot.lane.b32.xlu0 %v14963_v28, %s14380_s17  ;;  %4314 = vmatpush1.msra.mxu0 %v4075_v0 }
 0x2ff   : > { %v4066_v43 = vpop.permute.xlu1 %4065  ;;  %13777 = vmatmul.mubr.msk.f32.vlgmr.msra.gmra.mrb[22].mxu0 %vm362_vm0, %v15088_v38  ;;  %4384 = vmatprep.subr.mxu0 %v4078_v42 }
 0x300   : > { %v4064_v45 = vpop.permute.xlu0 %4063  ;;  %4385 = vmatpush1.msra.mxu0 %v4077_v44  ;;  %4448 = vmatprep.mubr.f32.mxu0 %v14379_v9 }
 0x301   : > { %7450 = vrot.lane.b32.xlu1 %v14968_v29, %s14380_s17  ;;  %v4081_v54 = vsel %vm1236_vm4, %v4064_v45, %v4066_v43 }
 0x302   : > { %7448 = vrot.lane.b32.xlu0 %v14976_v30, %s14380_s17 }
 0x303   : > { %v4062_v46 = vpop.permute.xlu1 %4061  ;;  %13778 = vmatmul.mubr.msk.f32.vlgmr.msra.gmra.mrb[24].mxu0 %vm362_vm0, %v15088_v38 }
 0x304   : > { %v4068_v47 = vpop.permute.xlu0 %4067  ;;  %v4080_v48 = vsel %vm1236_vm4, %v4062_v46, %v4064_v45  ;;  %v4079_v49 = vsel %vm1236_vm4, %v4060_v62, %v4062_v46  ;;  %4519 = vmatprep.mubr.f32.mxu0 %v14379_v9 }
 0x305   : > { %4455 = vmatprep.subr.mxu0 %v4080_v48  ;;  %7446 = vrot.lane.b32.xlu1 %v14956_v27, %s14380_s17  ;;  %v4082_v50 = vsel %vm1236_vm4, %v4066_v43, %v4068_v47 }
 0x306   : > { %7452 = vrot.lane.b32.xlu0 %v14986_v31, %s14380_s17  ;;  %4456 = vmatpush1.msra.mxu0 %v4079_v49 }
 0x307   : > { %v4616_v53 = vpop.permute.xlu1 %4615  ;;  %13779 = vmatmul.mubr.msk.f32.vlgmr.msra.gmra.mrb[26].mxu0 %vm362_vm0, %v15088_v38  ;;  %4526 = vmatprep.subr.mxu0 %v4082_v50 }
 0x308   : > { %v4618_v58 = vpop.permute.xlu0 %4617  ;;  %4527 = vmatpush1.msra.mxu0 %v4081_v54  ;;  %4590 = vmatprep.mubr.f32.mxu0 %v14379_v9 }
 0x309   : > { %v4645_v1 = vsel %vm4643_vm7, %v4616_v53, %v4618_v58  ;;  %7454 = vrot.lane.b32.xlu1 %v15051_v32, %s14380_s17 }
 0x30a   : > { %4675 = vmatprep.subr.mxu0 %v4645_v1  ;;  %7456 = vrot.lane.b32.xlu0 %v15147_v57, %s14380_s17 }
 0x30b   : > { %v4614_v2 = vpop.permute.xlu1 %4613  ;;  %13780 = vmatmul.mubr.msk.f32.vlgmr.msra.gmra.mrb[28].mxu0 %vm362_vm0, %v15088_v38 }
 0x30c   : > { %v4620_v3 = vpop.permute.xlu0 %4619  ;;  %v4644_v4 = vsel %vm4643_vm7, %v4614_v2, %v4616_v53  ;;  %4739 = vmatprep.mubr.f32.mxu0 %v14379_v9 }
 0x30d   : > { %4676 = vmatpush1.msra.mxu0 %v4644_v4  ;;  %8004 = vrot.lane.b32.xlu1 %v14913_v14, %s14384_s15  ;;  %v4646_v12 = vsel %vm4643_vm7, %v4618_v58, %v4620_v3  ;;  %v13797_v58 = vld [vmem:[%s16183_s5 + $0x10] sm:$0xf] }
 0x30e   : > { %8006 = vrot.lane.b32.xlu0 %v14921_v21, %s14384_s15 }
 0x30f   : > { %v4622_v7 = vpop.permute.xlu1 %4621  ;;  %13782 = vmatmul.mubr.msk.f32.vlgmr.msra.gmra.mrb[16].mxu0 %vm362_vm0, %v15162_v5 }
 0x310   : > { %v4624_v8 = vpop.permute.xlu0 %4623  ;;  %v4647_v11 = vsel %vm4643_vm7, %v4620_v3, %v4622_v7  ;;  %4810 = vmatprep.mubr.f32.mxu0 %v14379_v9 }
 0x311   : > { %4746 = vmatprep.subr.mxu0 %v4647_v11  ;;  %8002 = vrot.lane.b32.xlu1 %v14906_v10, %s14384_s15  ;;  %v4648_v17 = vsel %vm4643_vm7, %v4622_v7, %v4624_v8 }
 0x312   : > { %8008 = vrot.lane.b32.xlu0 %v14927_v6, %s14384_s15  ;;  %4747 = vmatpush1.msra.mxu0 %v4646_v12 }
 0x313   : > { %v4626_v13 = vpop.permute.xlu1 %4625  ;;  %13783 = vmatmul.mubr.msk.f32.vlgmr.msra.gmra.mrb[18].mxu0 %vm362_vm0, %v15162_v5 }
 0x314   : > { %v4628_v15 = vpop.permute.xlu0 %4627  ;;  %v4649_v16 = vsel %vm4643_vm7, %v4624_v8, %v4626_v13  ;;  %4881 = vmatprep.mubr.f32.mxu0 %v14379_v9 }
 0x315   : > { %4817 = vmatprep.subr.mxu0 %v4649_v16  ;;  %8010 = vrot.lane.b32.xlu1 %v14934_v23, %s14384_s15  ;;  %v4650_v34 = vsel %vm4643_vm7, %v4626_v13, %v4628_v15  ;;  %v3472_v13 = vld [vmem:[%s16184_s6] sm:$0xf] }
 0x316   : > { %8012 = vrot.lane.b32.xlu0 %v14940_v24, %s14384_s15  ;;  %4818 = vmatpush1.msra.mxu0 %v4648_v17 }
 0x317   : > { %v4630_v19 = vpop.permute.xlu1 %4629  ;;  %13784 = vmatmul.mubr.msk.f32.vlgmr.msra.gmra.mrb[20].mxu0 %vm362_vm0, %v15162_v5 }
 0x318   : > { %v4632_v20 = vpop.permute.xlu0 %4631  ;;  %v4651_v33 = vsel %vm4643_vm7, %v4628_v15, %v4630_v19  ;;  %4952 = vmatprep.mubr.f32.mxu0 %v14379_v9 }
 0x319   : > { %4888 = vmatprep.subr.mxu0 %v4651_v33  ;;  %8014 = vrot.lane.b32.xlu1 %v14950_v26, %s14384_s15  ;;  %v4652_v38 = vsel %vm4643_vm7, %v4630_v19, %v4632_v20 }
 0x31a   : > { %8016 = vrot.lane.b32.xlu0 %v14945_v25, %s14384_s15  ;;  %4889 = vmatpush1.msra.mxu0 %v4650_v34 }
 0x31b   : > { %v4634_v35 = vpop.permute.xlu1 %4633  ;;  %13785 = vmatmul.mubr.msk.f32.vlgmr.msra.gmra.mrb[22].mxu0 %vm362_vm0, %v15162_v5 }
 0x31c   : > { %v4636_v22 = vpop.permute.xlu0 %4635  ;;  %v4653_v37 = vsel %vm4643_vm7, %v4632_v20, %v4634_v35  ;;  %5023 = vmatprep.mubr.f32.mxu0 %v14379_v9 }
 0x31d   : > { %4959 = vmatprep.subr.mxu0 %v4653_v37  ;;  %8018 = vrot.lane.b32.xlu1 %v14963_v28, %s14384_s15  ;;  %v4654_v39 = vsel %vm4643_vm7, %v4634_v35, %v4636_v22 }
 0x31e   : > { %8020 = vrot.lane.b32.xlu0 %v14956_v27, %s14384_s15  ;;  %4960 = vmatpush1.msra.mxu0 %v4652_v38 }
 0x31f   : > { %v4638_v18 = vpop.permute.xlu1 %4637  ;;  %13786 = vmatmul.mubr.msk.f32.vlgmr.msra.gmra.mrb[24].mxu0 %vm362_vm0, %v15162_v5 }
 0x320   : > { %v4640_v40 = vpop.permute.xlu0 %4639  ;;  %v4655_v36 = vsel %vm4643_vm7, %v4636_v22, %v4638_v18  ;;  %5094 = vmatprep.mubr.f32.mxu0 %v14379_v9 }
 0x321   : > { %5030 = vmatprep.subr.mxu0 %v4655_v36  ;;  %8022 = vrot.lane.b32.xlu1 %v14976_v30, %s14384_s15  ;;  %v4656_v56 = vsel %vm4643_vm7, %v4638_v18, %v4640_v40 }
 0x322   : > { %8024 = vrot.lane.b32.xlu0 %v14968_v29, %s14384_s15  ;;  %5031 = vmatpush1.msra.mxu0 %v4654_v39  ;;  %v13805_v39 = vld [vmem:[%s16183_s5 + $0x14] sm:$0xf] }
 0x323   : > { %v4642_v41 = vpop.permute.xlu1 %4641  ;;  %13787 = vmatmul.mubr.msk.f32.vlgmr.msra.gmra.mrb[26].mxu0 %vm362_vm0, %v15162_v5 }
 0x324   : > { %v5737_v51 = vpop.permute.xlu0 %5736  ;;  %v4657_v52 = vsel %vm4643_vm7, %v4640_v40, %v4642_v41  ;;  %5165 = vmatprep.mubr.f32.mxu0 %v14379_v9 }
 0x325   : > { %5101 = vmatprep.subr.mxu0 %v4657_v52  ;;  %8026 = vrot.lane.b32.xlu1 %v14986_v31, %s14384_s15 }
 0x326   : > { %8028 = vrot.lane.b32.xlu0 %v15051_v32, %s14384_s15  ;;  %5102 = vmatpush1.msra.mxu0 %v4656_v56 }
 0x327   : > { %v5739_v59 = vpop.permute.xlu1 %5738  ;;  %13788 = vmatmul.mubr.msk.f32.vlgmr.msra.gmra.mrb[28].mxu0 %vm362_vm0, %v15162_v5  ;;  %5191 = vmatprep.subr.mxu0 %v14906_v10 }
 0x328   : > { %v5735_v60 = vpop.permute.xlu0 %5734  ;;  %5192 = vmatpush1.msra.mxu0 %v14893_v55  ;;  %5255 = vmatprep.mubr.f32.mxu0 %v14379_v9  ;;  %v5765_v49 = vsel %vm1236_vm4, %v5737_v51, %v5739_v59 }
 0x329   : > { %5262 = vmatprep.subr.mxu0 %v14921_v21  ;;  %8030 = vrot.lane.b32.xlu1 %v15147_v57, %s14384_s15  ;;  %v5764_v50 = vsel %vm1236_vm4, %v5735_v60, %v5737_v51 }
 0x32a   : > { %3475 = vperm.xlu0 %14357, %v3472_v13  }
 0x32b   : > { %v5741_v62 = vpop.permute.xlu1 %5740  ;;  %13790 = vmatmul.mubr.msk.f32.vlgmr.msra.gmra.mrb[16].mxu0 %vm362_vm0, %v13789_v61 }
 0x32c   : > { %v5743_v63 = vpop.permute.xlu0 %5742  ;;  %5263 = vmatpush1.msra.mxu0 %v14913_v14  ;;  %5326 = vmatprep.mubr.f32.mxu0 %v14379_v9  ;;  %v5766_v2 = vsel %vm1236_vm4, %v5739_v59, %v5741_v62 }
 0x32d   : > { %5333 = vmatprep.subr.mxu0 %v14934_v23  ;;  %v5767_v57 = vsel %vm1236_vm4, %v5741_v62, %v5743_v63 }
 0x32f   : > { %v5745_v55 = vpop.permute.xlu1 %5744  ;;  %13791 = vmatmul.mubr.msk.f32.vlgmr.msra.gmra.mrb[18].mxu0 %vm362_vm0, %v13789_v61 }
 0x330   : > { %v5747_v0 = vpop.permute.xlu0 %5746  ;;  %5334 = vmatpush1.msra.mxu0 %v14927_v6  ;;  %5397 = vmatprep.mubr.f32.mxu0 %v14379_v9  ;;  %v5768_v5 = vsel %vm1236_vm4, %v5743_v63, %v5745_v55 }
 0x331   : > { %5404 = vmatprep.subr.mxu0 %v14950_v26  ;;  %v5769_v3 = vsel %vm1236_vm4, %v5745_v55, %v5747_v0 }
 0x333   : > { %v5749_v42 = vpop.permute.xlu1 %5748  ;;  %13792 = vmatmul.mubr.msk.f32.vlgmr.msra.gmra.mrb[20].mxu0 %vm362_vm0, %v13789_v61 }
 0x334   : > { %v5751_v43 = vpop.permute.xlu0 %5750  ;;  %5405 = vmatpush1.msra.mxu0 %v14940_v24  ;;  %5468 = vmatprep.mubr.f32.mxu0 %v14379_v9  ;;  %v5770_v12 = vsel %vm1236_vm4, %v5747_v0, %v5749_v42 }
 0x335   : > { %5475 = vmatprep.subr.mxu0 %v14963_v28  ;;  %v5771_v7 = vsel %vm1236_vm4, %v5749_v42, %v5751_v43 }
 0x337   : > { %v5753_v44 = vpop.permute.xlu1 %5752  ;;  %13793 = vmatmul.mubr.msk.f32.vlgmr.msra.gmra.mrb[22].mxu0 %vm362_vm0, %v13789_v61 }
 0x338   : > { %v5755_v45 = vpop.permute.xlu0 %5754  ;;  %5476 = vmatpush1.msra.mxu0 %v14945_v25  ;;  %5539 = vmatprep.mubr.f32.mxu0 %v14379_v9  ;;  %v5772_v17 = vsel %vm1236_vm4, %v5751_v43, %v5753_v44 }
 0x339   : > { %5546 = vmatprep.subr.mxu0 %v14976_v30  ;;  %v5773_v15 = vsel %vm1236_vm4, %v5753_v44, %v5755_v45 }
 0x33b   : > { %v5757_v46 = vpop.permute.xlu1 %5756  ;;  %13794 = vmatmul.mubr.msk.f32.vlgmr.msra.gmra.mrb[24].mxu0 %vm362_vm0, %v13789_v61 }
 0x33c   : > { %5547 = vmatpush1.msra.mxu0 %v14956_v27  ;;  %5610 = vmatprep.mubr.f32.mxu0 %v14379_v9  ;;  %v5759_v47 = vpop.permute.xlu0 %5758  ;;  %v5774_v33 = vsel %vm1236_vm4, %v5755_v45, %v5757_v46 }
 0x33d   : > { %5617 = vmatprep.subr.mxu0 %v14986_v31  ;;  %v5775_v19 = vsel %vm1236_vm4, %v5757_v46, %v5759_v47 }
 0x33f   : > { %v5761_v48 = vpop.permute.xlu1 %5760  ;;  %13795 = vmatmul.mubr.msk.f32.vlgmr.msra.gmra.mrb[26].mxu0 %vm362_vm0, %v13789_v61 }
 0x340   : > { %5618 = vmatpush1.msra.mxu0 %v14968_v29  ;;  %5681 = vmatprep.mubr.f32.mxu0 %v14379_v9  ;;  %v5763_v53 = vpop.permute.xlu0 %5762  ;;  %v5776_v37 = vsel %vm1236_vm4, %v5759_v47, %v5761_v48 }
 0x341   : > { %5795 = vmatprep.subr.mxu0 %v5765_v49  ;;  %v5777_v34 = vsel %vm1236_vm4, %v5761_v48, %v5763_v53  ;;  %v13813_v53 = vld [vmem:[%s16183_s5 + $0x18] sm:$0xf] }
 0x343   : > { %v6311_v54 = vpop.permute.xlu1 %6310  ;;  %13796 = vmatmul.mubr.msk.f32.vlgmr.msra.gmra.mrb[28].mxu0 %vm362_vm0, %v13789_v61 }
 0x344   : > { %5796 = vmatpush1.msra.mxu0 %v5764_v50  ;;  %5859 = vmatprep.mubr.f32.mxu0 %v14379_v9  ;;  %v6313_v4 = vpop.permute.xlu0 %6312 }
 0x345   : > { %5866 = vmatprep.subr.mxu0 %v5767_v57  ;;  %v6339_v38 = vsel %vm4643_vm7, %v6311_v54, %v6313_v4 }
 0x347   : > { %v6309_v1 = vpop.permute.xlu1 %6308  ;;  %13798 = vmatmul.mubr.msk.f32.vlgmr.msra.gmra.mrb[16].mxu0 %vm362_vm0, %v13797_v58 }
 0x348   : > { %5867 = vmatpush1.msra.mxu0 %v5766_v2  ;;  %5930 = vmatprep.mubr.f32.mxu0 %v14379_v9  ;;  %v6315_v11 = vpop.permute.xlu0 %6314  ;;  %v6338_v18 = vsel %vm4643_vm7, %v6309_v1, %v6311_v54 }
 0x349   : > { %5937 = vmatprep.subr.mxu0 %v5769_v3  ;;  %v6340_v51 = vsel %vm4643_vm7, %v6313_v4, %v6315_v11 }
 0x34b   : > { %13799 = vmatmul.mubr.msk.f32.vlgmr.msra.gmra.mrb[18].mxu0 %vm362_vm0, %v13797_v58  ;;  %v6317_v8 = vpop.permute.xlu1 %6316 }
 0x34c   : > { %5938 = vmatpush1.msra.mxu0 %v5768_v5  ;;  %6001 = vmatprep.mubr.f32.mxu0 %v14379_v9  ;;  %v6319_v20 = vpop.permute.xlu0 %6318  ;;  %v6341_v36 = vsel %vm4643_vm7, %v6315_v11, %v6317_v8 }
 0x34d   : > { %6008 = vmatprep.subr.mxu0 %v5771_v7  ;;  %v6342_v60 = vsel %vm4643_vm7, %v6317_v8, %v6319_v20 }
 0x34f   : > { %13800 = vmatmul.mubr.msk.f32.vlgmr.msra.gmra.mrb[20].mxu0 %vm362_vm0, %v13797_v58  ;;  %v6321_v16 = vpop.permute.xlu1 %6320 }
 0x350   : > { %6009 = vmatpush1.msra.mxu0 %v5770_v12  ;;  %6072 = vmatprep.mubr.f32.mxu0 %v14379_v9  ;;  %v6323_v22 = vpop.permute.xlu0 %6322  ;;  %v6343_v52 = vsel %vm4643_vm7, %v6319_v20, %v6321_v16 }
 0x351   : > { %6079 = vmatprep.subr.mxu0 %v5773_v15  ;;  %v6344_v63 = vsel %vm4643_vm7, %v6321_v16, %v6323_v22 }
 0x353   : > { %13801 = vmatmul.mubr.msk.f32.vlgmr.msra.gmra.mrb[22].mxu0 %vm362_vm0, %v13797_v58  ;;  %v6325_v35 = vpop.permute.xlu1 %6324 }
 0x354   : > { %6080 = vmatpush1.msra.mxu0 %v5772_v17  ;;  %6143 = vmatprep.mubr.f32.mxu0 %v14379_v9  ;;  %v6327_v41 = vpop.permute.xlu0 %6326  ;;  %v6345_v61 = vsel %vm4643_vm7, %v6323_v22, %v6325_v35 }
 0x355   : > { %6150 = vmatprep.subr.mxu0 %v5775_v19  ;;  %v6346_v42 = vsel %vm4643_vm7, %v6325_v35, %v6327_v41 }
 0x357   : > { %13802 = vmatmul.mubr.msk.f32.vlgmr.msra.gmra.mrb[24].mxu0 %vm362_vm0, %v13797_v58  ;;  %v6329_v40 = vpop.permute.xlu1 %6328 }
 0x358   : > { %6151 = vmatpush1.msra.mxu0 %v5774_v33  ;;  %6214 = vmatprep.mubr.f32.mxu0 %v14379_v9  ;;  %v6331_v59 = vpop.permute.xlu0 %6330  ;;  %v6347_v55 = vsel %vm4643_vm7, %v6327_v41, %v6329_v40 }
 0x359   : > { %6221 = vmatprep.subr.mxu0 %v5777_v34  ;;  %v6348_v46 = vsel %vm4643_vm7, %v6329_v40, %v6331_v59 }
 0x35b   : > { %13803 = vmatmul.mubr.msk.f32.vlgmr.msra.gmra.mrb[26].mxu0 %vm362_vm0, %v13797_v58  ;;  %v6333_v56 = vpop.permute.xlu1 %6332 }
 0x35c   : > { %6222 = vmatpush1.msra.mxu0 %v5776_v37  ;;  %6285 = vmatprep.mubr.f32.mxu0 %v14379_v9  ;;  %v6335_v0 = vpop.permute.xlu0 %6334  ;;  %v6349_v43 = vsel %vm4643_vm7, %v6331_v59, %v6333_v56 }
 0x35d   : > { %6369 = vmatprep.subr.mxu0 %v6339_v38  ;;  %v6350_v49 = vsel %vm4643_vm7, %v6333_v56, %v6335_v0  ;;  %v13829_v38 = vld [vmem:[%s16183_s5 + $0x20] sm:$0xf] }
 0x35f   : > { %13804 = vmatmul.mubr.msk.f32.vlgmr.msra.gmra.mrb[28].mxu0 %vm362_vm0, %v13797_v58  ;;  %v6337_v62 = vpop.permute.xlu1 %6336 }
 0x360   : > { %6370 = vmatpush1.msra.mxu0 %v6338_v18  ;;  %6433 = vmatprep.mubr.f32.mxu0 %v14379_v9  ;;  %v7431_v45 = vpop.permute.xlu0 %7430  ;;  %v6351_v47 = vsel %vm4643_vm7, %v6335_v0, %v6337_v62 }
 0x361   : > { %6440 = vmatprep.subr.mxu0 %v6341_v36 }
 0x363   : > { %13806 = vmatmul.mubr.msk.f32.vlgmr.msra.gmra.mrb[16].mxu0 %vm362_vm0, %v13805_v39  ;;  %v15314_v44 = vpop.permute.xlu1 %7432 }
 0x364   : > { %6441 = vmatpush1.msra.mxu0 %v6340_v51  ;;  %6504 = vmatprep.mubr.f32.mxu0 %v14379_v9  ;;  %v7429_v50 = vpop.permute.xlu0 %7428 }
 0x365   : > { %6511 = vmatprep.subr.mxu0 %v6343_v52 }
 0x367   : > { %13807 = vmatmul.mubr.msk.f32.vlgmr.msra.gmra.mrb[18].mxu0 %vm362_vm0, %v13805_v39  ;;  %v7435_v48 = vpop.permute.xlu1 %7434 }
 0x368   : > { %6512 = vmatpush1.msra.mxu0 %v6342_v60  ;;  %6575 = vmatprep.mubr.f32.mxu0 %v14379_v9  ;;  %v7437_v57 = vpop.permute.xlu0 %7436 }
 0x369   : > { %6582 = vmatprep.subr.mxu0 %v6345_v61 }
 0x36b   : > { %13808 = vmatmul.mubr.msk.f32.vlgmr.msra.gmra.mrb[20].mxu0 %vm362_vm0, %v13805_v39  ;;  %v7439_v54 = vpop.permute.xlu1 %7438 }
 0x36c   : > { %6583 = vmatpush1.msra.mxu0 %v6344_v63  ;;  %6646 = vmatprep.mubr.f32.mxu0 %v14379_v9  ;;  %v7462_v2 = vsel %vm1236_vm4, %v7437_v57, %v7439_v54 }
 0x36d   : > { %6653 = vmatprep.subr.mxu0 %v6347_v55 }
 0x36f   : > { %13809 = vmatmul.mubr.msk.f32.vlgmr.msra.gmra.mrb[22].mxu0 %vm362_vm0, %v13805_v39 }
 0x370   : > { %6654 = vmatpush1.msra.mxu0 %v6346_v42  ;;  %6717 = vmatprep.mubr.f32.mxu0 %v14379_v9 }
 0x371   : > { %6724 = vmatprep.subr.mxu0 %v6349_v43 }
 0x373   : > { %13810 = vmatmul.mubr.msk.f32.vlgmr.msra.gmra.mrb[24].mxu0 %vm362_vm0, %v13805_v39 }
 0x374   : > { %6725 = vmatpush1.msra.mxu0 %v6348_v46  ;;  %6788 = vmatprep.mubr.f32.mxu0 %v14379_v9 }
 0x375   : > { %6795 = vmatprep.subr.mxu0 %v6351_v47 }
 0x377   : > { %13811 = vmatmul.mubr.msk.f32.vlgmr.msra.gmra.mrb[26].mxu0 %vm362_vm0, %v13805_v39 }
 0x378   : > { %6796 = vmatpush1.msra.mxu0 %v6350_v49  ;;  %6859 = vmatprep.mubr.f32.mxu0 %v14379_v9 }
 0x379   : > { %6885 = vmatprep.subr.mxu0 %v14913_v14  ;;  %v7443_v14 = vpop.permute.xlu1 %7442 }
 0x37b   : > { %13812 = vmatmul.mubr.msk.f32.vlgmr.msra.gmra.mrb[28].mxu0 %vm362_vm0, %v13805_v39 }
 0x37c   : > { %6886 = vmatpush1.msra.mxu0 %v14906_v10  ;;  %6949 = vmatprep.mubr.f32.mxu0 %v14379_v9  ;;  %v7441_v10 = vpop.permute.xlu0 %7440 }
 0x37d   : > { %6956 = vmatprep.subr.mxu0 %v14927_v6  ;;  %v7463_v58 = vsel %vm1236_vm4, %v7439_v54, %v7441_v10  ;;  %v7464_v7 = vsel %vm1236_vm4, %v7441_v10, %v7443_v14 }
 0x37f   : > { %13814 = vmatmul.mubr.msk.f32.vlgmr.msra.gmra.mrb[16].mxu0 %vm362_vm0, %v13813_v53 }
 0x380   : > { %6957 = vmatpush1.msra.mxu0 %v14921_v21  ;;  %7020 = vmatprep.mubr.f32.mxu0 %v14379_v9  ;;  %v7451_v21 = vpop.permute.xlu1 %7450  ;;  %v7445_v6 = vpop.permute.xlu0 %7444 }
 0x381   : > { %7027 = vmatprep.subr.mxu0 %v14940_v24  ;;  %v7465_v3 = vsel %vm1236_vm4, %v7443_v14, %v7445_v6 }
 0x383   : > { %13815 = vmatmul.mubr.msk.f32.vlgmr.msra.gmra.mrb[18].mxu0 %vm362_vm0, %v13813_v53 }
 0x384   : > { %7028 = vmatpush1.msra.mxu0 %v14934_v23  ;;  %7091 = vmatprep.mubr.f32.mxu0 %v14379_v9  ;;  %v7447_v23 = vpop.permute.xlu1 %7446  ;;  %v7449_v24 = vpop.permute.xlu0 %7448 }
 0x385   : > { %7098 = vmatprep.subr.mxu0 %v14945_v25  ;;  %v7459_v25 = vsel %vm1236_vm4, %v7431_v45, %v15314_v44  ;;  %v7467_v8 = vsel %vm1236_vm4, %v7447_v23, %v7449_v24  ;;  %v7466_v12 = vsel %vm1236_vm4, %v7445_v6, %v7447_v23  ;;  %v7468_v16 = vsel %vm1236_vm4, %v7449_v24, %v7451_v21 }
 0x387   : > { %13816 = vmatmul.mubr.msk.f32.vlgmr.msra.gmra.mrb[20].mxu0 %vm362_vm0, %v13813_v53 }
 0x388   : > { %7099 = vmatpush1.msra.mxu0 %v14950_v26  ;;  %7162 = vmatprep.mubr.f32.mxu0 %v14379_v9  ;;  %v7455_v26 = vpop.permute.xlu1 %7454 }
 0x389   : > { %7169 = vmatprep.subr.mxu0 %v14956_v27  ;;  %v7458_v27 = vsel %vm1236_vm4, %v7429_v50, %v7431_v45 }
 0x38b   : > { %13817 = vmatmul.mubr.msk.f32.vlgmr.msra.gmra.mrb[22].mxu0 %vm362_vm0, %v13813_v53 }
 0x38c   : > { %7170 = vmatpush1.msra.mxu0 %v14963_v28  ;;  %7233 = vmatprep.mubr.f32.mxu0 %v14379_v9  ;;  %v7453_v28 = vpop.permute.xlu0 %7452 }
 0x38d   : > { %7240 = vmatprep.subr.mxu0 %v14968_v29  ;;  %v7461_v29 = vsel %vm1236_vm4, %v7435_v48, %v7437_v57  ;;  %v7469_v13 = vsel %vm1236_vm4, %v7451_v21, %v7453_v28  ;;  %v7470_v20 = vsel %vm1236_vm4, %v7453_v28, %v7455_v26  ;;  %v15434_v28 = vld [vmem:[%s16185_s7] sm:$0xf] }
 0x38f   : > { %13818 = vmatmul.mubr.msk.f32.vlgmr.msra.gmra.mrb[24].mxu0 %vm362_vm0, %v13813_v53 }
 0x390   : > { %7241 = vmatpush1.msra.mxu0 %v14976_v30  ;;  %7304 = vmatprep.mubr.f32.mxu0 %v14379_v9  ;;  %v13821_v30 = vld [vmem:[%s16183_s5 + $0x1c] sm:$0xf]  ;;  %v7457_v1 = vpop.permute.xlu0 %7456 }
 0x391   : > { %7311 = vmatprep.subr.mxu0 %v15051_v32  ;;  %v7460_v32 = vsel %vm1236_vm4, %v15314_v44, %v7435_v48  ;;  %v7471_v17 = vsel %vm1236_vm4, %v7455_v26, %v7457_v1 }
 0x393   : > { %13819 = vmatmul.mubr.msk.f32.vlgmr.msra.gmra.mrb[26].mxu0 %vm362_vm0, %v13813_v53 }
 0x394   : > { %7312 = vmatpush1.msra.mxu0 %v14986_v31  ;;  %7375 = vmatprep.mubr.f32.mxu0 %v14379_v9  ;;  %v8005_v31 = vpop.permute.xlu1 %8004  ;;  %v8007_v5 = vpop.permute.xlu0 %8006 }
 0x395   : > { %7489 = vmatprep.subr.mxu0 %v7459_v25  ;;  %v8033_v34 = vsel %vm4643_vm7, %v8005_v31, %v8007_v5 }
 0x397   : > { %13820 = vmatmul.mubr.msk.f32.vlgmr.msra.gmra.mrb[28].mxu0 %vm362_vm0, %v13813_v53 }
 0x398   : > { %7490 = vmatpush1.msra.mxu0 %v7458_v27  ;;  %7553 = vmatprep.mubr.f32.mxu0 %v14379_v9  ;;  %v8003_v4 = vpop.permute.xlu1 %8002  ;;  %v8009_v15 = vpop.permute.xlu0 %8008 }
 0x399   : > { %7560 = vmatprep.subr.mxu0 %v7461_v29  ;;  %v8032_v35 = vsel %vm4643_vm7, %v8003_v4, %v8005_v31  ;;  %v8034_v40 = vsel %vm4643_vm7, %v8007_v5, %v8009_v15 }
 0x39b   : > { %13822 = vmatmul.mubr.msk.f32.vlgmr.msra.gmra.mrb[16].mxu0 %vm362_vm0, %v13821_v30 }
 0x39c   : > { %7561 = vmatpush1.msra.mxu0 %v7460_v32  ;;  %7624 = vmatprep.mubr.f32.mxu0 %v14379_v9  ;;  %v8011_v11 = vpop.permute.xlu1 %8010  ;;  %v8013_v33 = vpop.permute.xlu0 %8012 }
 0x39d   : > { %7631 = vmatprep.subr.mxu0 %v7463_v58  ;;  %v8035_v37 = vsel %vm4643_vm7, %v8009_v15, %v8011_v11  ;;  %v8036_v41 = vsel %vm4643_vm7, %v8011_v11, %v8013_v33 }
 0x39f   : > { %13823 = vmatmul.mubr.msk.f32.vlgmr.msra.gmra.mrb[18].mxu0 %vm362_vm0, %v13821_v30 }
 0x3a0   : > { %7632 = vmatpush1.msra.mxu0 %v7462_v2  ;;  %7695 = vmatprep.mubr.f32.mxu0 %v14379_v9  ;;  %v8015_v19 = vpop.permute.xlu1 %8014  ;;  %v8017_v18 = vpop.permute.xlu0 %8016 }
 0x3a1   : > { %7702 = vmatprep.subr.mxu0 %v7465_v3  ;;  %v8037_v36 = vsel %vm4643_vm7, %v8013_v33, %v8015_v19  ;;  %v8038_v56 = vsel %vm4643_vm7, %v8015_v19, %v8017_v18 }
 0x3a3   : > { %13824 = vmatmul.mubr.msk.f32.vlgmr.msra.gmra.mrb[20].mxu0 %vm362_vm0, %v13821_v30 }
 0x3a4   : > { %7703 = vmatpush1.msra.mxu0 %v7464_v7  ;;  %7766 = vmatprep.mubr.f32.mxu0 %v14379_v9  ;;  %v8019_v22 = vpop.permute.xlu1 %8018  ;;  %v8021_v51 = vpop.permute.xlu0 %8020 }
 0x3a5   : > { %7773 = vmatprep.subr.mxu0 %v7467_v8  ;;  %v8039_v52 = vsel %vm4643_vm7, %v8017_v18, %v8019_v22  ;;  %v8040_v62 = vsel %vm4643_vm7, %v8019_v22, %v8021_v51 }
 0x3a7   : > { %13825 = vmatmul.mubr.msk.f32.vlgmr.msra.gmra.mrb[22].mxu0 %vm362_vm0, %v13821_v30 }
 0x3a8   : > { %7774 = vmatpush1.msra.mxu0 %v7466_v12  ;;  %7837 = vmatprep.mubr.f32.mxu0 %v14379_v9  ;;  %v8023_v39 = vpop.permute.xlu1 %8022  ;;  %v8025_v61 = vpop.permute.xlu0 %8024 }
 0x3a9   : > { %7844 = vmatprep.subr.mxu0 %v7469_v13  ;;  %v8041_v60 = vsel %vm4643_vm7, %v8021_v51, %v8023_v39  ;;  %v8042_v0 = vsel %vm4643_vm7, %v8023_v39, %v8025_v61 }
 0x3ab   : > { %13826 = vmatmul.mubr.msk.f32.vlgmr.msra.gmra.mrb[24].mxu0 %vm362_vm0, %v13821_v30 }
 0x3ac   : > { %7845 = vmatpush1.msra.mxu0 %v7468_v16  ;;  %7908 = vmatprep.mubr.f32.mxu0 %v14379_v9  ;;  %v8027_v59 = vpop.permute.xlu1 %8026  ;;  %v8029_v42 = vpop.permute.xlu0 %8028 }
 0x3ad   : > { %7915 = vmatprep.subr.mxu0 %v7471_v17  ;;  %v8043_v63 = vsel %vm4643_vm7, %v8025_v61, %v8027_v59  ;;  %v8044_v44 = vsel %vm4643_vm7, %v8027_v59, %v8029_v42 }
 0x3af   : > { %13827 = vmatmul.mubr.msk.f32.vlgmr.msra.gmra.mrb[26].mxu0 %vm362_vm0, %v13821_v30 }
 0x3b0   : > { %7916 = vmatpush1.msra.mxu0 %v7470_v20  ;;  %7979 = vmatprep.mubr.f32.mxu0 %v14379_v9  ;;  %v8031_v55 = vpop.permute.xlu1 %8030  ;;  %v15419_v45 = vpop.permute.xlu0 %3475 }
 0x3b1   : > { %8063 = vmatprep.subr.mxu0 %v8033_v34  ;;  %v8045_v43 = vsel %vm4643_vm7, %v8029_v42, %v8031_v55 }
 0x3b3   : > { %13828 = vmatmul.mubr.msk.f32.vlgmr.msra.gmra.mrb[28].mxu0 %vm362_vm0, %v13821_v30 }
 0x3b4   : > { %8064 = vmatpush1.msra.mxu0 %v8032_v35  ;;  %8127 = vmatprep.mubr.f32.mxu0 %v14379_v9 }
 0x3b5   : > { %8134 = vmatprep.subr.mxu0 %v8035_v37 }
 0x3b7   : > { %13830 = vmatmul.mubr.msk.f32.vlgmr.msra.gmra.mrb[16].mxu0 %vm362_vm0, %v13829_v38 }
 0x3b8   : > { %8135 = vmatpush1.msra.mxu0 %v8034_v40  ;;  %8198 = vmatprep.mubr.f32.mxu0 %v14379_v9 }
 0x3b9   : > { %8205 = vmatprep.subr.mxu0 %v8037_v36 }
 0x3bb   : > { %13831 = vmatmul.mubr.msk.f32.vlgmr.msra.gmra.mrb[18].mxu0 %vm362_vm0, %v13829_v38 }
 0x3bc   : > { %8206 = vmatpush1.msra.mxu0 %v8036_v41  ;;  %8269 = vmatprep.mubr.f32.mxu0 %v14379_v9 }
 0x3bd   : > { %8276 = vmatprep.subr.mxu0 %v8039_v52 }
 0x3bf   : > { %13832 = vmatmul.mubr.msk.f32.vlgmr.msra.gmra.mrb[20].mxu0 %vm362_vm0, %v13829_v38 }
 0x3c0   : > { %8277 = vmatpush1.msra.mxu0 %v8038_v56  ;;  %8340 = vmatprep.mubr.f32.mxu0 %v14379_v9 }
 0x3c1   : > { %8347 = vmatprep.subr.mxu0 %v8041_v60 }
 0x3c3   : > { %13833 = vmatmul.mubr.msk.f32.vlgmr.msra.gmra.mrb[22].mxu0 %vm362_vm0, %v13829_v38 }
 0x3c4   : > { %8348 = vmatpush1.msra.mxu0 %v8040_v62  ;;  %8411 = vmatprep.mubr.f32.mxu0 %v14379_v9 }
 0x3c5   : > { %8418 = vmatprep.subr.mxu0 %v8043_v63 }
 0x3c7   : > { %13834 = vmatmul.mubr.msk.f32.vlgmr.msra.gmra.mrb[24].mxu0 %vm362_vm0, %v13829_v38 }
 0x3c8   : > { %8419 = vmatpush1.msra.mxu0 %v8042_v0  ;;  %8482 = vmatprep.mubr.f32.mxu0 %v14379_v9 }
 0x3c9   : > { %8489 = vmatprep.subr.mxu0 %v8045_v43 }
 0x3cb   : > { %13835 = vmatmul.mubr.msk.f32.vlgmr.msra.gmra.mrb[26].mxu0 %vm362_vm0, %v13829_v38 }
 0x3cc   : > { %8490 = vmatpush1.msra.mxu0 %v8044_v44  ;;  %8553 = vmatprep.mubr.f32.mxu0 %v14379_v9 }
 0x3cf   : > { %13836 = vmatmul.mubr.msk.f32.vlgmr.msra.gmra.mrb[28].mxu0 %vm362_vm0, %v13829_v38 }
 0x48a   : > { %v8129_v46 = vpop.f32.mrb[16].mxu0 }
 0x48b   : > { %v8131_v47 = vpop.f32.mrb[17].mxu0  ;;  %v14058_v48 = vadd.f32 %v8129_v46, %v15419_v45 }
 0x48c   : > { %v14059_v49 = vadd.f32 %v8131_v47, %v15419_v45 }
 0x48d   : > { %v8574_v50 = vmax.f32 %v14058_v48, 0.0 }
 0x48e   : > { %v8575_v53 = vmax.f32 %v14059_v49, 0.0  ;;  %v8200_v54 = vpop.f32.mrb[18].mxu0 }
 0x48f   : > { %v14060_v57 = vadd.f32 %v8200_v54, %v15419_v45  ;;  %v8202_v14 = vpop.f32.mrb[19].mxu0 }
 0x490   : > { %v15424_v10 = vcombine.low %v8574_v50, %v8575_v53  ;;  %v14061_v21 = vadd.f32 %v8202_v14, %v15419_v45  ;;  %v14364_v25 = vcombine.low %v8575_v53, %v8575_v53 }
 0x491   : > { %v8576_v6 = vmax.f32 %v14060_v57, 0.0 }
 0x492   : > { %8616 = vst [vmem:[#allocation4] sm:$0xff] %v15424_v10  ;;  %v8577_v23 = vmax.f32 %v14061_v21, 0.0  ;;  %v8271_v24 = vpop.f32.mrb[20].mxu0  ;;  %9138 = vrot.lane.b32.xlu0 %v15424_v10, %s14380_s17  ;;  %9140 = vrot.lane.b32.xlu1 %v14364_v25, %s14380_s17 }
 0x493   : > { %v14062_v26 = vadd.f32 %v8271_v24, %v15419_v45  ;;  %v8273_v27 = vpop.f32.mrb[21].mxu0  ;;  %13837 = vmatprep.subr.msk.mxu1 %vm8653_vm8, %v14364_v25 }
 0x494   : > { %v15436_v29 = vcombine.low %v8576_v6, %v8577_v23  ;;  %v14063_v30 = vadd.f32 %v8273_v27, %v15419_v45  ;;  %13838 = vmatpush1.msk.msra.mxu1 %vm8653_vm8, %v15424_v10  ;;  %v15444_v1 = vcombine.low %v8577_v23, %v8577_v23 }
 0x495   : > { %v8578_v31 = vmax.f32 %v14062_v26, 0.0  ;;  %13839 = vmatmul.mubr.msk.f32.vlgmr.msra.gmra.mrb[12].mxu1 %vm8649_vm9, %v15434_v28  ;;  %v13855_v26 = vld [vmem:[%s16185_s7 + $0x4] sm:$0xf] }
 0x496   : > { %8617 = vst [vmem:[#allocation4 + $0x8] sm:$0xff] %v15436_v29  ;;  %v8579_v32 = vmax.f32 %v14063_v30, 0.0  ;;  %v8342_v58 = vpop.f32.mrb[22].mxu0  ;;  %8813 = vmatprep.mubr.f32.mxu1 %v14379_v9  ;;  %9665 = vrot.lane.b32.xlu1 %v14364_v25, %s14384_s15 }
 0x497   : > { %v14064_v2 = vadd.f32 %v8342_v58, %v15419_v45  ;;  %v8344_v3 = vpop.f32.mrb[23].mxu0  ;;  %13840 = vmatprep.subr.msk.mxu1 %vm8653_vm8, %v15444_v1 }
 0x498   : > { %v15450_v4 = vcombine.low %v8578_v31, %v8579_v32  ;;  %v14065_v5 = vadd.f32 %v8344_v3, %v15419_v45  ;;  %13841 = vmatpush1.msk.msra.mxu1 %vm8653_vm8, %v15436_v29  ;;  %v15459_v12 = vcombine.low %v8579_v32, %v8579_v32  ;;  %v12194_v3 = vld [vmem:[#allocation4 + $0x38] sm:$0xf] }
 0x499   : > { %v8580_v7 = vmax.f32 %v14064_v2, 0.0  ;;  %13842 = vmatmul.mubr.msk.f32.vlgmr.msra.gmra.mrb[14].mxu1 %vm8649_vm9, %v15434_v28 }
 0x49a   : > { %8618 = vst [vmem:[#allocation4 + $0x10] sm:$0xff] %v15450_v4  ;;  %v8581_v8 = vmax.f32 %v14065_v5, 0.0  ;;  %v8413_v11 = vpop.f32.mrb[24].mxu0  ;;  %9146 = vrot.lane.b32.xlu0 %v15450_v4, %s14380_s17  ;;  %8884 = vmatprep.mubr.f32.mxu1 %v14379_v9 }
 0x49b   : > { %v14066_v13 = vadd.f32 %v8413_v11, %v15419_v45  ;;  %v8415_v15 = vpop.f32.mrb[25].mxu0  ;;  %9142 = vrot.lane.b32.xlu1 %v15436_v29, %s14380_s17  ;;  %13843 = vmatprep.subr.msk.mxu1 %vm8653_vm8, %v15459_v12 }
 0x49c   : > { %v15467_v16 = vcombine.low %v8580_v7, %v8581_v8  ;;  %v14067_v17 = vadd.f32 %v8415_v15, %v15419_v45  ;;  %13844 = vmatpush1.msk.msra.mxu1 %vm8653_vm8, %v15450_v4  ;;  %v15477_v34 = vcombine.low %v8581_v8, %v8581_v8 }
 0x49d   : > { %v8582_v19 = vmax.f32 %v14066_v13, 0.0  ;;  %13845 = vmatmul.mubr.msk.f32.vlgmr.msra.gmra.mrb[16].mxu1 %vm8649_vm9, %v15434_v28  ;;  %v15561_v0 = vld [vmem:[#allocation4 + $0x4] sm:$0xff] }
 0x49e   : > { %8619 = vst [vmem:[#allocation4 + $0x18] sm:$0xff] %v15467_v16  ;;  %v8583_v20 = vmax.f32 %v14067_v17, 0.0  ;;  %v8484_v33 = vpop.f32.mrb[26].mxu0  ;;  %9150 = vrot.lane.b32.xlu0 %v15467_v16, %s14380_s17  ;;  %8955 = vmatprep.mubr.f32.mxu1 %v14379_v9  ;;  %v15569_v43 = vcombine.high %v15561_v0, %v15561_v0 }
 0x49f   : > { %v14068_v35 = vadd.f32 %v8484_v33, %v15419_v45  ;;  %v8486_v22 = vpop.f32.mrb[27].mxu0  ;;  %9144 = vrot.lane.b32.xlu1 %v15444_v1, %s14380_s17  ;;  %13846 = vmatprep.subr.msk.mxu1 %vm8653_vm8, %v15477_v34 }
 0x4a0   : > { %v15485_v37 = vcombine.low %v8582_v19, %v8583_v20  ;;  %v14069_v38 = vadd.f32 %v8486_v22, %v15419_v45  ;;  %13847 = vmatpush1.msk.msra.mxu1 %vm8653_vm8, %v15467_v16  ;;  %v15495_v39 = vcombine.low %v8583_v20, %v8583_v20 }
 0x4a1   : > { %v8584_v18 = vmax.f32 %v14068_v35, 0.0  ;;  %13848 = vmatmul.mubr.msk.f32.vlgmr.msra.gmra.mrb[18].mxu1 %vm8649_vm9, %v15434_v28  ;;  %v15565_v42 = vld [vmem:[#allocation4 + $0xc] sm:$0xff] }
 0x4a2   : > { %8620 = vst [vmem:[#allocation4 + $0x20] sm:$0xff] %v15485_v37  ;;  %v8585_v40 = vmax.f32 %v14069_v38, 0.0  ;;  %v8555_v36 = vpop.f32.mrb[28].mxu0  ;;  %9154 = vrot.lane.b32.xlu0 %v15485_v37, %s14380_s17  ;;  %9026 = vmatprep.mubr.f32.mxu1 %v14379_v9  ;;  %v15577_v44 = vcombine.high %v15565_v42, %v15565_v42 }
 0x4a3   : > { %v14070_v41 = vadd.f32 %v8555_v36, %v15419_v45  ;;  %v8557_v51 = vpop.f32.mrb[29].mxu0  ;;  %9148 = vrot.lane.b32.xlu1 %v15459_v12, %s14380_s17  ;;  %13849 = vmatprep.subr.msk.mxu1 %vm8653_vm8, %v15495_v39 }
 0x4a4   : > { %v15503_v52 = vcombine.low %v8584_v18, %v8585_v40  ;;  %v14071_v56 = vadd.f32 %v8557_v51, %v15419_v45  ;;  %13850 = vmatpush1.msk.msra.mxu1 %vm8653_vm8, %v15485_v37  ;;  %v15515_v61 = vcombine.low %v8585_v40, %v8585_v40  ;;  %v13874_v51 = vld [vmem:[%s16185_s7 + $0x8] sm:$0xf] }
 0x4a5   : > { %v8586_v59 = vmax.f32 %v14070_v41, 0.0  ;;  %13851 = vmatmul.mubr.msk.f32.vlgmr.msra.gmra.mrb[20].mxu1 %vm8649_vm9, %v15434_v28  ;;  %v15579_v45 = vld [vmem:[#allocation4 + $0x14] sm:$0xff] }
 0x4a6   : > { %8621 = vst [vmem:[#allocation4 + $0x28] sm:$0xff] %v15503_v52  ;;  %v15513_v60 = vmax.f32 %v14071_v56, 0.0  ;;  %9158 = vrot.lane.b32.xlu0 %v15503_v52, %s14380_s17  ;;  %9097 = vmatprep.mubr.f32.mxu1 %v14379_v9  ;;  %v15587_v46 = vcombine.high %v15579_v45, %v15579_v45 }
 0x4a7   : > { %9152 = vrot.lane.b32.xlu1 %v15477_v34, %s14380_s17  ;;  %13852 = vmatprep.subr.msk.mxu1 %vm8653_vm8, %v15515_v61 }
 0x4a8   : > { %v15523_v62 = vcombine.low %v8586_v59, %v15513_v60  ;;  %13853 = vmatpush1.msk.msra.mxu1 %vm8653_vm8, %v15503_v52  ;;  %v15688_v58 = vcombine.low %v15513_v60, %v15513_v60 }
 0x4a9   : > { %13854 = vmatmul.mubr.msk.f32.vlgmr.msra.gmra.mrb[22].mxu1 %vm8649_vm9, %v15434_v28  ;;  %v15589_v47 = vld [vmem:[#allocation4 + $0x1c] sm:$0xff] }
 0x4aa   : > { %8622 = vst [vmem:[#allocation4 + $0x30] sm:$0xff] %v15523_v62  ;;  %9267 = vmatprep.mubr.f32.mxu1 %v14379_v9  ;;  %v15597_v48 = vcombine.high %v15589_v47, %v15589_v47 }
 0x4ab   : > { %9156 = vrot.lane.b32.xlu1 %v15495_v39, %s14380_s17 }
 0x4ad   : > { %v15599_v49 = vld [vmem:[#allocation4 + $0x24] sm:$0xff] }
 0x4ae   : > { %v15607_v50 = vcombine.high %v15599_v49, %v15599_v49 }
 0x4af   : > { %9160 = vrot.lane.b32.xlu1 %v15515_v61, %s14380_s17 }
 0x4b1   : > { %v9124_v63 = vld [vmem:[#allocation4 + $0x30] sm:$0xf]  ;;  %v10659_v57 = vld [vmem:[#allocation4 + $0x34] sm:$0xf] }
 0x4b2   : > { %9162 = vrot.lane.b32.xlu0 %v9124_v63, %s14380_s17  ;;  %v9649_v55 = vld [vmem:[#allocation4 + $0x30] sm:$0xf]  ;;  %v11184_v14 = vld [vmem:[#allocation4 + $0x34] sm:$0xf] }
 0x4b3   : > { %9663 = vrot.lane.b32.xlu1 %v15424_v10, %s14384_s15  ;;  %v15613_v53 = vld [vmem:[#allocation4 + $0x2c] sm:$0xff] }
 0x4b4   : > { %v15619_v54 = vcombine.high %v15613_v53, %v15613_v53 }
 0x4b6   : > { %9667 = vrot.lane.b32.xlu0 %v15436_v29, %s14384_s15 }
 0x4b7   : > { %9671 = vrot.lane.b32.xlu1 %v15450_v4, %s14384_s15 }
 0x4ba   : > { %9669 = vrot.lane.b32.xlu0 %v15444_v1, %s14384_s15 }
 0x4bb   : > { %9675 = vrot.lane.b32.xlu1 %v15467_v16, %s14384_s15 }
 0x4be   : > { %9673 = vrot.lane.b32.xlu0 %v15459_v12, %s14384_s15 }
 0x4bf   : > { %9679 = vrot.lane.b32.xlu1 %v15485_v37, %s14384_s15 }
 0x4c2   : > { %9677 = vrot.lane.b32.xlu0 %v15477_v34, %s14384_s15 }
 0x4c3   : > { %9683 = vrot.lane.b32.xlu1 %v15503_v52, %s14384_s15 }
 0x4c6   : > { %9681 = vrot.lane.b32.xlu0 %v15495_v39, %s14384_s15 }
 0x4c7   : > { %9687 = vrot.lane.b32.xlu1 %v9649_v55, %s14384_s15 }
 0x4ca   : > { %9685 = vrot.lane.b32.xlu0 %v15515_v61, %s14384_s15 }
 0x4cb   : > { %10677 = vrot.lane.b32.xlu1 %v15565_v42, %s14380_s17 }
 0x4ce   : > { %10675 = vrot.lane.b32.xlu0 %v15569_v43, %s14380_s17 }
 0x4cf   : > { %10679 = vrot.lane.b32.xlu1 %v15577_v44, %s14380_s17 }
 0x4d2   : > { %10673 = vrot.lane.b32.xlu0 %v15561_v0, %s14380_s17 }
 0x4d3   : > { %10683 = vrot.lane.b32.xlu1 %v15587_v46, %s14380_s17 }
 0x4d6   : > { %10681 = vrot.lane.b32.xlu0 %v15579_v45, %s14380_s17 }
 0x4d7   : > { %10687 = vrot.lane.b32.xlu1 %v15597_v48, %s14380_s17 }
 0x4da   : > { %10685 = vrot.lane.b32.xlu0 %v15589_v47, %s14380_s17 }
 0x4db   : > { %10691 = vrot.lane.b32.xlu1 %v15607_v50, %s14380_s17 }
 0x4de   : > { %10689 = vrot.lane.b32.xlu0 %v15599_v49, %s14380_s17 }
 0x4df   : > { %11200 = vrot.lane.b32.xlu1 %v15569_v43, %s14384_s15 }
 0x4e2   : > { %10693 = vrot.lane.b32.xlu0 %v15613_v53, %s14380_s17 }
 0x4e3   : > { %10695 = vrot.lane.b32.xlu1 %v15619_v54, %s14380_s17 }
 0x4e6   : > { %10697 = vrot.lane.b32.xlu0 %v10659_v57, %s14380_s17  ;;  %v12719_v57 = vld [vmem:[#allocation4 + $0x38] sm:$0xf] }
 0x4e7   : > { %11198 = vrot.lane.b32.xlu1 %v15561_v0, %s14384_s15 }
 0x4ea   : > { %11202 = vrot.lane.b32.xlu0 %v15565_v42, %s14384_s15 }
 0x4eb   : > { %11206 = vrot.lane.b32.xlu1 %v15579_v45, %s14384_s15 }
 0x4ee   : > { %11204 = vrot.lane.b32.xlu0 %v15577_v44, %s14384_s15 }
 0x4ef   : > { %11210 = vrot.lane.b32.xlu1 %v15589_v47, %s14384_s15 }
 0x4f2   : > { %11208 = vrot.lane.b32.xlu0 %v15587_v46, %s14384_s15 }
 0x4f3   : > { %11214 = vrot.lane.b32.xlu1 %v15599_v49, %s14384_s15 }
 0x4f6   : > { %11212 = vrot.lane.b32.xlu0 %v15597_v48, %s14384_s15 }
 0x4f7   : > { %11218 = vrot.lane.b32.xlu1 %v15613_v53, %s14384_s15 }
 0x4fa   : > { %11216 = vrot.lane.b32.xlu0 %v15607_v50, %s14384_s15 }
 0x4fb   : > { %11222 = vrot.lane.b32.xlu1 %v11184_v14, %s14384_s15 }
 0x4fe   : > { %11220 = vrot.lane.b32.xlu0 %v15619_v54, %s14384_s15 }
 0x4ff   : > { %12212 = vrot.lane.b32.xlu1 %v15450_v4, %s14380_s17 }
 0x502   : > { %12210 = vrot.lane.b32.xlu0 %v15444_v1, %s14380_s17 }
 0x503   : > { %12214 = vrot.lane.b32.xlu1 %v15459_v12, %s14380_s17 }
 0x504   : > { %v9141_v10 = vpop.permute.xlu1 %9140  ;;  %v9139_v21 = vpop.permute.xlu0 %9138 }
 0x505   : > { %v9164_v27 = vsel %vm1236_vm4, %v9139_v21, %v9141_v10 }
 0x506   : > { %12208 = vrot.lane.b32.xlu0 %v15436_v29, %s14380_s17 }
 0x507   : > { %12218 = vrot.lane.b32.xlu1 %v15477_v34, %s14380_s17 }
 0x508   : > { %v15661_v6 = vpop.permute.xlu1 %9665 }
 0x50a   : > { %12216 = vrot.lane.b32.xlu0 %v15467_v16, %s14380_s17 }
 0x50b   : > { %12222 = vrot.lane.b32.xlu1 %v15495_v39, %s14380_s17 }
 0x50c   : > { %v9147_v23 = vpop.permute.xlu0 %9146 }
 0x50d   : > { %v9143_v24 = vpop.permute.xlu1 %9142 }
 0x50e   : > { %12220 = vrot.lane.b32.xlu0 %v15485_v37, %s14380_s17  ;;  %v9165_v25 = vsel %vm1236_vm4, %v9141_v10, %v9143_v24 }
 0x50f   : > { %12226 = vrot.lane.b32.xlu1 %v15515_v61, %s14380_s17  ;;  %13856 = vmatprep.subr.msk.mxu1 %vm8653_vm8, %v9165_v25 }
 0x510   : > { %13857 = vmatpush1.msk.msra.mxu1 %vm8653_vm8, %v9164_v27  ;;  %v9151_v28 = vpop.permute.xlu0 %9150 }
 0x511   : > { %v9145_v30 = vpop.permute.xlu1 %9144  ;;  %13858 = vmatmul.mubr.msk.f32.vlgmr.msra.gmra.mrb[12].mxu1 %vm8649_vm9, %v13855_v26 }
 0x512   : > { %12224 = vrot.lane.b32.xlu0 %v15503_v52, %s14380_s17  ;;  %v9166_v31 = vsel %vm1236_vm4, %v9143_v24, %v9145_v30  ;;  %v9167_v32 = vsel %vm1236_vm4, %v9145_v30, %v9147_v23  ;;  %9338 = vmatprep.mubr.f32.mxu1 %v14379_v9  ;;  %v8624_v24 = vld [vmem:[%s16186_s8] sm:$0xf] }
 0x513   : > { %12735 = vrot.lane.b32.xlu1 %v15444_v1, %s14384_s15  ;;  %13859 = vmatprep.subr.msk.mxu1 %vm8653_vm8, %v9167_v32 }
 0x514   : > { %13860 = vmatpush1.msk.msra.mxu1 %vm8653_vm8, %v9166_v31  ;;  %v9155_v8 = vpop.permute.xlu0 %9154 }
 0x515   : > { %v9149_v2 = vpop.permute.xlu1 %9148  ;;  %13861 = vmatmul.mubr.msk.f32.vlgmr.msra.gmra.mrb[14].mxu1 %vm8649_vm9, %v13855_v26 }
 0x516   : > { %12228 = vrot.lane.b32.xlu0 %v15523_v62, %s14380_s17  ;;  %v9168_v5 = vsel %vm1236_vm4, %v9147_v23, %v9149_v2  ;;  %v9169_v7 = vsel %vm1236_vm4, %v9149_v2, %v9151_v28  ;;  %9409 = vmatprep.mubr.f32.mxu1 %v14379_v9 }
 0x517   : > { %12230 = vrot.lane.b32.xlu1 %v15688_v58, %s14380_s17  ;;  %13862 = vmatprep.subr.msk.mxu1 %vm8653_vm8, %v9169_v7 }
 0x518   : > { %13863 = vmatpush1.msk.msra.mxu1 %vm8653_vm8, %v9168_v5  ;;  %v9159_v17 = vpop.permute.xlu0 %9158 }
 0x519   : > { %v9153_v11 = vpop.permute.xlu1 %9152  ;;  %13864 = vmatmul.mubr.msk.f32.vlgmr.msra.gmra.mrb[16].mxu1 %vm8649_vm9, %v13855_v26 }
 0x51a   : > { %12232 = vrot.lane.b32.xlu0 %v12194_v3, %s14380_s17  ;;  %v9170_v13 = vsel %vm1236_vm4, %v9151_v28, %v9153_v11  ;;  %v9171_v15 = vsel %vm1236_vm4, %v9153_v11, %v9155_v8  ;;  %9480 = vmatprep.mubr.f32.mxu1 %v14379_v9 }
 0x51b   : > { %12733 = vrot.lane.b32.xlu1 %v15436_v29, %s14384_s15  ;;  %13865 = vmatprep.subr.msk.mxu1 %vm8653_vm8, %v9171_v15 }
 0x51c   : > { %13866 = vmatpush1.msk.msra.mxu1 %vm8653_vm8, %v9170_v13  ;;  %v13893_v13 = vld [vmem:[%s16185_s7 + $0xc] sm:$0xf] }
 0x51d   : > { %v9157_v19 = vpop.permute.xlu1 %9156  ;;  %13867 = vmatmul.mubr.msk.f32.vlgmr.msra.gmra.mrb[18].mxu1 %vm8649_vm9, %v13855_v26 }
 0x51e   : > { %12737 = vrot.lane.b32.xlu0 %v15450_v4, %s14384_s15  ;;  %v9172_v20 = vsel %vm1236_vm4, %v9155_v8, %v9157_v19  ;;  %v9173_v33 = vsel %vm1236_vm4, %v9157_v19, %v9159_v17  ;;  %9551 = vmatprep.mubr.f32.mxu1 %v14379_v9 }
 0x51f   : > { %12741 = vrot.lane.b32.xlu1 %v15467_v16, %s14384_s15  ;;  %13868 = vmatprep.subr.msk.mxu1 %vm8653_vm8, %v9173_v33 }
 0x520   : > { %13869 = vmatpush1.msk.msra.mxu1 %vm8653_vm8, %v9172_v20 }
 0x521   : > { %v9161_v35 = vpop.permute.xlu1 %9160  ;;  %13870 = vmatmul.mubr.msk.f32.vlgmr.msra.gmra.mrb[20].mxu1 %vm8649_vm9, %v13855_v26 }
 0x522   : > { %12739 = vrot.lane.b32.xlu0 %v15459_v12, %s14384_s15  ;;  %9622 = vmatprep.mubr.f32.mxu1 %v14379_v9  ;;  %v9174_v18 = vsel %vm1236_vm4, %v9159_v17, %v9161_v35 }
 0x523   : > { %12745 = vrot.lane.b32.xlu1 %v15485_v37, %s14384_s15 }
 0x524   : > { %v9163_v22 = vpop.permute.xlu0 %9162 }
 0x525   : > { %v9175_v38 = vsel %vm1236_vm4, %v9161_v35, %v9163_v22  ;;  %v9664_v40 = vpop.permute.xlu1 %9663 }
 0x526   : > { %12743 = vrot.lane.b32.xlu0 %v15477_v34, %s14384_s15  ;;  %13871 = vmatprep.subr.msk.mxu1 %vm8653_vm8, %v9175_v38  ;;  %v9689_v56 = vsel %vm4643_vm7, %v9664_v40, %v15661_v6 }
 0x527   : > { %13872 = vmatpush1.msk.msra.mxu1 %vm8653_vm8, %v9174_v18  ;;  %12749 = vrot.lane.b32.xlu1 %v15503_v52, %s14384_s15 }
 0x528   : > { %v9668_v36 = vpop.permute.xlu0 %9667  ;;  %13873 = vmatmul.mubr.msk.f32.vlgmr.msra.gmra.mrb[22].mxu1 %vm8649_vm9, %v13855_v26 }
 0x529   : > { %v9690_v41 = vsel %vm4643_vm7, %v15661_v6, %v9668_v36  ;;  %9792 = vmatprep.mubr.f32.mxu1 %v14379_v9  ;;  %v9672_v59 = vpop.permute.xlu1 %9671 }
 0x52a   : > { %12747 = vrot.lane.b32.xlu0 %v15495_v39, %s14384_s15  ;;  %13875 = vmatprep.subr.msk.mxu1 %vm8653_vm8, %v9690_v41 }
 0x52b   : > { %13876 = vmatpush1.msk.msra.mxu1 %vm8653_vm8, %v9689_v56  ;;  %12753 = vrot.lane.b32.xlu1 %v15523_v62, %s14384_s15 }
 0x52c   : > { %v9670_v60 = vpop.permute.xlu0 %9669  ;;  %13877 = vmatmul.mubr.msk.f32.vlgmr.msra.gmra.mrb[12].mxu1 %vm8649_vm9, %v13874_v51 }
 0x52d   : > { %v9691_v63 = vsel %vm4643_vm7, %v9668_v36, %v9670_v60  ;;  %v9692_v55 = vsel %vm4643_vm7, %v9670_v60, %v9672_v59  ;;  %9863 = vmatprep.mubr.f32.mxu1 %v14379_v9  ;;  %v9676_v14 = vpop.permute.xlu1 %9675 }
 0x52e   : > { %12751 = vrot.lane.b32.xlu0 %v15515_v61, %s14384_s15  ;;  %13878 = vmatprep.subr.msk.mxu1 %vm8653_vm8, %v9692_v55 }
 0x52f   : > { %13879 = vmatpush1.msk.msra.mxu1 %vm8653_vm8, %v9691_v63  ;;  %12757 = vrot.lane.b32.xlu1 %v12719_v57, %s14384_s15 }
 0x530   : > { %v9674_v10 = vpop.permute.xlu0 %9673  ;;  %13880 = vmatmul.mubr.msk.f32.vlgmr.msra.gmra.mrb[14].mxu1 %vm8649_vm9, %v13874_v51 }
 0x531   : > { %v9693_v21 = vsel %vm4643_vm7, %v9672_v59, %v9674_v10  ;;  %v9694_v6 = vsel %vm4643_vm7, %v9674_v10, %v9676_v14  ;;  %9934 = vmatprep.mubr.f32.mxu1 %v14379_v9  ;;  %v9680_v23 = vpop.permute.xlu1 %9679 }
 0x532   : > { %12755 = vrot.lane.b32.xlu0 %v15688_v58, %s14384_s15  ;;  %13881 = vmatprep.subr.msk.mxu1 %vm8653_vm8, %v9694_v6 }
 0x533   : > { %13882 = vmatpush1.msk.msra.mxu1 %vm8653_vm8, %v9693_v21 }
 0x534   : > { %v9678_v25 = vpop.permute.xlu0 %9677  ;;  %13883 = vmatmul.mubr.msk.f32.vlgmr.msra.gmra.mrb[16].mxu1 %vm8649_vm9, %v13874_v51 }
 0x535   : > { %v9695_v26 = vsel %vm4643_vm7, %v9676_v14, %v9678_v25  ;;  %v9696_v27 = vsel %vm4643_vm7, %v9678_v25, %v9680_v23  ;;  %10005 = vmatprep.mubr.f32.mxu1 %v14379_v9  ;;  %v9684_v28 = vpop.permute.xlu1 %9683 }
 0x536   : > { %8627 = vperm.xlu0 %14357, %v8624_v24   ;;  %13884 = vmatprep.subr.msk.mxu1 %vm8653_vm8, %v9696_v27  ;;  %v13931_v24 = vld [vmem:[%s16185_s7 + $0x14] sm:$0xf] }
 0x537   : > { %13885 = vmatpush1.msk.msra.mxu1 %vm8653_vm8, %v9695_v26 }
 0x538   : > { %v9682_v30 = vpop.permute.xlu0 %9681  ;;  %13886 = vmatmul.mubr.msk.f32.vlgmr.msra.gmra.mrb[18].mxu1 %vm8649_vm9, %v13874_v51 }
 0x539   : > { %v9697_v31 = vsel %vm4643_vm7, %v9680_v23, %v9682_v30  ;;  %v9698_v32 = vsel %vm4643_vm7, %v9682_v30, %v9684_v28  ;;  %10076 = vmatprep.mubr.f32.mxu1 %v14379_v9  ;;  %v9688_v2 = vpop.permute.xlu1 %9687 }
 0x53a   : > { %13887 = vmatprep.subr.msk.mxu1 %vm8653_vm8, %v9698_v32 }
 0x53b   : > { %13888 = vmatpush1.msk.msra.mxu1 %vm8653_vm8, %v9697_v31 }
 0x53c   : > { %v9686_v3 = vpop.permute.xlu0 %9685  ;;  %13889 = vmatmul.mubr.msk.f32.vlgmr.msra.gmra.mrb[20].mxu1 %vm8649_vm9, %v13874_v51 }
 0x53d   : > { %v9699_v5 = vsel %vm4643_vm7, %v9684_v28, %v9686_v3  ;;  %v9700_v7 = vsel %vm4643_vm7, %v9686_v3, %v9688_v2  ;;  %10147 = vmatprep.mubr.f32.mxu1 %v14379_v9  ;;  %v10678_v8 = vpop.permute.xlu1 %10677 }
 0x53e   : > { %13890 = vmatprep.subr.msk.mxu1 %vm8653_vm8, %v9700_v7 }
 0x53f   : > { %13891 = vmatpush1.msk.msra.mxu1 %vm8653_vm8, %v9699_v5 }
 0x540   : > { %v10676_v11 = vpop.permute.xlu0 %10675  ;;  %13892 = vmatmul.mubr.msk.f32.vlgmr.msra.gmra.mrb[22].mxu1 %vm8649_vm9, %v13874_v51  ;;  %13894 = vmatprep.subr.msk.mxu1 %vm8653_vm8, %v15569_v43 }
 0x541   : > { %13895 = vmatpush1.msk.msra.mxu1 %vm8653_vm8, %v15561_v0  ;;  %10277 = vmatprep.mubr.f32.mxu1 %v14379_v9  ;;  %v10680_v15 = vpop.permute.xlu1 %10679 }
 0x542   : > { %13897 = vmatprep.subr.msk.mxu1 %vm8653_vm8, %v15577_v44  ;;  %v10701_v33 = vsel %vm1236_vm4, %v10678_v8, %v10680_v15 }
 0x544   : > { %v10674_v17 = vpop.permute.xlu0 %10673  ;;  %13896 = vmatmul.mubr.msk.f32.vlgmr.msra.gmra.mrb[12].mxu1 %vm8649_vm9, %v13893_v13 }
 0x545   : > { %13898 = vmatpush1.msk.msra.mxu1 %vm8653_vm8, %v15565_v42  ;;  %10348 = vmatprep.mubr.f32.mxu1 %v14379_v9  ;;  %v10684_v0 = vpop.permute.xlu1 %10683 }
 0x546   : > { %13900 = vmatprep.subr.msk.mxu1 %vm8653_vm8, %v15587_v46 }
 0x548   : > { %v10682_v43 = vpop.permute.xlu0 %10681  ;;  %13899 = vmatmul.mubr.msk.f32.vlgmr.msra.gmra.mrb[14].mxu1 %vm8649_vm9, %v13893_v13 }
 0x549   : > { %13901 = vmatpush1.msk.msra.mxu1 %vm8653_vm8, %v15579_v45  ;;  %10419 = vmatprep.mubr.f32.mxu1 %v14379_v9  ;;  %v10688_v44 = vpop.permute.xlu1 %10687  ;;  %v10703_v18 = vsel %vm1236_vm4, %v10682_v43, %v10684_v0 }
 0x54a   : > { %13903 = vmatprep.subr.msk.mxu1 %vm8653_vm8, %v15597_v48 }
 0x54c   : > { %v10686_v19 = vpop.permute.xlu0 %10685  ;;  %13902 = vmatmul.mubr.msk.f32.vlgmr.msra.gmra.mrb[16].mxu1 %vm8649_vm9, %v13893_v13 }
 0x54d   : > { %13904 = vmatpush1.msk.msra.mxu1 %vm8653_vm8, %v15589_v47  ;;  %10490 = vmatprep.mubr.f32.mxu1 %v14379_v9  ;;  %v10692_v42 = vpop.permute.xlu1 %10691  ;;  %v10700_v47 = vsel %vm1236_vm4, %v10676_v11, %v10678_v8  ;;  %v10704_v38 = vsel %vm1236_vm4, %v10684_v0, %v10686_v19  ;;  %v10705_v51 = vsel %vm1236_vm4, %v10686_v19, %v10688_v44 }
 0x54e   : > { %13906 = vmatprep.subr.msk.mxu1 %vm8653_vm8, %v15607_v50 }
 0x550   : > { %v10690_v46 = vpop.permute.xlu0 %10689  ;;  %13905 = vmatmul.mubr.msk.f32.vlgmr.msra.gmra.mrb[18].mxu1 %vm8649_vm9, %v13893_v13 }
 0x551   : > { %13907 = vmatpush1.msk.msra.mxu1 %vm8653_vm8, %v15599_v49  ;;  %10561 = vmatprep.mubr.f32.mxu1 %v14379_v9  ;;  %v11201_v45 = vpop.permute.xlu1 %11200  ;;  %v10699_v49 = vsel %vm1236_vm4, %v10674_v17, %v10676_v11  ;;  %v10706_v36 = vsel %vm1236_vm4, %v10688_v44, %v10690_v46  ;;  %v10707_v60 = vsel %vm1236_vm4, %v10690_v46, %v10692_v42 }
 0x552   : > { %13909 = vmatprep.subr.msk.mxu1 %vm8653_vm8, %v15619_v54  ;;  %v10702_v54 = vsel %vm1236_vm4, %v10680_v15, %v10682_v43  ;;  %v13950_v43 = vld [vmem:[%s16185_s7 + $0x18] sm:$0xf] }
 0x554   : > { %v10694_v48 = vpop.permute.xlu0 %10693  ;;  %13908 = vmatmul.mubr.msk.f32.vlgmr.msra.gmra.mrb[20].mxu1 %vm8649_vm9, %v13893_v13 }
 0x555   : > { %13910 = vmatpush1.msk.msra.mxu1 %vm8653_vm8, %v15613_v53  ;;  %10632 = vmatprep.mubr.f32.mxu1 %v14379_v9  ;;  %v10696_v50 = vpop.permute.xlu1 %10695  ;;  %v13912_v53 = vld [vmem:[%s16185_s7 + $0x10] sm:$0xf]  ;;  %v10708_v56 = vsel %vm1236_vm4, %v10692_v42, %v10694_v48 }
 0x556   : > { %13913 = vmatprep.subr.msk.mxu1 %vm8653_vm8, %v10700_v47  ;;  %v10709_v57 = vsel %vm1236_vm4, %v10694_v48, %v10696_v50 }
 0x558   : > { %v10698_v20 = vpop.permute.xlu0 %10697  ;;  %13911 = vmatmul.mubr.msk.f32.vlgmr.msra.gmra.mrb[22].mxu1 %vm8649_vm9, %v13893_v13 }
 0x559   : > { %13914 = vmatpush1.msk.msra.mxu1 %vm8653_vm8, %v10699_v49  ;;  %10802 = vmatprep.mubr.f32.mxu1 %v14379_v9  ;;  %v11199_v22 = vpop.permute.xlu1 %11198  ;;  %v10710_v55 = vsel %vm1236_vm4, %v10696_v50, %v10698_v20 }
 0x55a   : > { %13916 = vmatprep.subr.msk.mxu1 %vm8653_vm8, %v10702_v54  ;;  %v11224_v6 = vsel %vm4643_vm7, %v11199_v22, %v11201_v45 }
 0x55c   : > { %v11203_v35 = vpop.permute.xlu0 %11202  ;;  %13915 = vmatmul.mubr.msk.f32.vlgmr.msra.gmra.mrb[12].mxu1 %vm8649_vm9, %v13912_v53 }
 0x55d   : > { %13917 = vmatpush1.msk.msra.mxu1 %vm8653_vm8, %v10701_v33  ;;  %10873 = vmatprep.mubr.f32.mxu1 %v14379_v9  ;;  %v11207_v41 = vpop.permute.xlu1 %11206  ;;  %v11225_v10 = vsel %vm4643_vm7, %v11201_v45, %v11203_v35 }
 0x55e   : > { %13919 = vmatprep.subr.msk.mxu1 %vm8653_vm8, %v10704_v38 }
 0x560   : > { %v11205_v40 = vpop.permute.xlu0 %11204  ;;  %13918 = vmatmul.mubr.msk.f32.vlgmr.msra.gmra.mrb[14].mxu1 %vm8649_vm9, %v13912_v53 }
 0x561   : > { %13920 = vmatpush1.msk.msra.mxu1 %vm8653_vm8, %v10703_v18  ;;  %10944 = vmatprep.mubr.f32.mxu1 %v14379_v9  ;;  %v11211_v63 = vpop.permute.xlu1 %11210  ;;  %v11227_v23 = vsel %vm4643_vm7, %v11205_v40, %v11207_v41  ;;  %v11226_v26 = vsel %vm4643_vm7, %v11203_v35, %v11205_v40 }
 0x562   : > { %13922 = vmatprep.subr.msk.mxu1 %vm8653_vm8, %v10706_v36 }
 0x564   : > { %13921 = vmatmul.mubr.msk.f32.vlgmr.msra.gmra.mrb[16].mxu1 %vm8649_vm9, %v13912_v53  ;;  %v11209_v59 = vpop.permute.xlu0 %11208 }
 0x565   : > { %13923 = vmatpush1.msk.msra.mxu1 %vm8653_vm8, %v10705_v51  ;;  %11015 = vmatprep.mubr.f32.mxu1 %v14379_v9  ;;  %v11215_v21 = vpop.permute.xlu1 %11214  ;;  %v11229_v28 = vsel %vm4643_vm7, %v11209_v59, %v11211_v63  ;;  %v11228_v30 = vsel %vm4643_vm7, %v11207_v41, %v11209_v59  ;;  %v13988_v51 = vld [vmem:[%s16185_s7 + $0x20] sm:$0xf] }
 0x566   : > { %13925 = vmatprep.subr.msk.mxu1 %vm8653_vm8, %v10708_v56 }
 0x568   : > { %13924 = vmatmul.mubr.msk.f32.vlgmr.msra.gmra.mrb[18].mxu1 %vm8649_vm9, %v13912_v53  ;;  %v11213_v14 = vpop.permute.xlu0 %11212 }
 0x569   : > { %13926 = vmatpush1.msk.msra.mxu1 %vm8653_vm8, %v10707_v60  ;;  %11086 = vmatprep.mubr.f32.mxu1 %v14379_v9  ;;  %v11219_v27 = vpop.permute.xlu1 %11218  ;;  %v11231_v32 = vsel %vm4643_vm7, %v11213_v14, %v11215_v21  ;;  %v11230_v3 = vsel %vm4643_vm7, %v11211_v63, %v11213_v14 }
 0x56a   : > { %13928 = vmatprep.subr.msk.mxu1 %vm8653_vm8, %v10710_v55 }
 0x56c   : > { %13927 = vmatmul.mubr.msk.f32.vlgmr.msra.gmra.mrb[20].mxu1 %vm8649_vm9, %v13912_v53  ;;  %v11217_v25 = vpop.permute.xlu0 %11216 }
 0x56d   : > { %13929 = vmatpush1.msk.msra.mxu1 %vm8653_vm8, %v10709_v57  ;;  %11157 = vmatprep.mubr.f32.mxu1 %v14379_v9  ;;  %v11223_v2 = vpop.permute.xlu1 %11222  ;;  %v11233_v5 = vsel %vm4643_vm7, %v11217_v25, %v11219_v27  ;;  %v11232_v8 = vsel %vm4643_vm7, %v11215_v21, %v11217_v25 }
 0x56e   : > { %13932 = vmatprep.subr.msk.mxu1 %vm8653_vm8, %v11225_v10 }
 0x570   : > { %13930 = vmatmul.mubr.msk.f32.vlgmr.msra.gmra.mrb[22].mxu1 %vm8649_vm9, %v13912_v53  ;;  %v11221_v31 = vpop.permute.xlu0 %11220 }
 0x571   : > { %13933 = vmatpush1.msk.msra.mxu1 %vm8653_vm8, %v11224_v6  ;;  %11327 = vmatprep.mubr.f32.mxu1 %v14379_v9  ;;  %v12213_v11 = vpop.permute.xlu1 %12212  ;;  %v11235_v13 = vsel %vm4643_vm7, %v11221_v31, %v11223_v2  ;;  %v11234_v15 = vsel %vm4643_vm7, %v11219_v27, %v11221_v31  ;;  %v13252_v31 = vlaneseq }
 0x572   : > { %13935 = vmatprep.subr.msk.mxu1 %vm8653_vm8, %v11227_v23 }
 0x573   : > { %v13253_v2 = vshrl.u32 %v13252_v31, 7 }
 0x574   : > { %13934 = vmatmul.mubr.msk.f32.vlgmr.msra.gmra.mrb[12].mxu1 %vm8649_vm9, %v13931_v24  ;;  %v12211_v7 = vpop.permute.xlu0 %12210 }
 0x575   : > { %13936 = vmatpush1.msk.msra.mxu1 %vm8653_vm8, %v11226_v26  ;;  %11398 = vmatprep.mubr.f32.mxu1 %v14379_v9  ;;  %v12215_v0 = vpop.permute.xlu1 %12214 }
 0x576   : > { %13938 = vmatprep.subr.msk.mxu1 %vm8653_vm8, %v11229_v28  ;;  %v14385_v28 = vmov 1966171168  }
 0x578   : > { %13937 = vmatmul.mubr.msk.f32.vlgmr.msra.gmra.mrb[14].mxu1 %vm8649_vm9, %v13931_v24  ;;  %v12209_v17 = vpop.permute.xlu0 %12208 }
 0x579   : > { %13939 = vmatpush1.msk.msra.mxu1 %vm8653_vm8, %v11228_v30  ;;  %11469 = vmatprep.mubr.f32.mxu1 %v14379_v9  ;;  %v12219_v19 = vpop.permute.xlu1 %12218  ;;  %v13250_v30 = vunpack.c.l.s4 %v14385_v28 }
 0x57a   : > { %13941 = vmatprep.subr.msk.mxu1 %vm8653_vm8, %v11231_v32 }
 0x57b   : > { %v13251_v32 = vunpack.c.0.s8 %v13250_v30 }
 0x57c   : > { %13940 = vmatmul.mubr.msk.f32.vlgmr.msra.gmra.mrb[16].mxu1 %vm8649_vm9, %v13931_v24  ;;  %v12217_v44 = vpop.permute.xlu0 %12216 }
 0x57d   : > { %13942 = vmatpush1.msk.msra.mxu1 %vm8653_vm8, %v11230_v3  ;;  %11540 = vmatprep.mubr.f32.mxu1 %v14379_v9  ;;  %v12238_v45 = vsel %vm1236_vm4, %v12217_v44, %v12219_v19 }
 0x57e   : > { %13944 = vmatprep.subr.msk.mxu1 %vm8653_vm8, %v11233_v5 }
 0x580   : > { %13943 = vmatmul.mubr.msk.f32.vlgmr.msra.gmra.mrb[18].mxu1 %vm8649_vm9, %v13931_v24 }
 0x581   : > { %13945 = vmatpush1.msk.msra.mxu1 %vm8653_vm8, %v11232_v8  ;;  %11611 = vmatprep.mubr.f32.mxu1 %v14379_v9  ;;  %v16024_v8 = vsub.s32 %v13251_v32, %v13253_v2 }
 0x582   : > { %13947 = vmatprep.subr.msk.mxu1 %vm8653_vm8, %v11235_v13 }
 0x584   : > { %13946 = vmatmul.mubr.msk.f32.vlgmr.msra.gmra.mrb[20].mxu1 %vm8649_vm9, %v13931_v24 }
 0x585   : > { %13948 = vmatpush1.msk.msra.mxu1 %vm8653_vm8, %v11234_v15  ;;  %11682 = vmatprep.mubr.f32.mxu1 %v14379_v9 }
 0x586   : > { %13951 = vmatprep.subr.msk.mxu1 %vm8653_vm8, %v15444_v1  ;;  %v12223_v1 = vpop.permute.xlu1 %12222 }
 0x588   : > { %13949 = vmatmul.mubr.msk.f32.vlgmr.msra.gmra.mrb[22].mxu1 %vm8649_vm9, %v13931_v24 }
 0x589   : > { %13952 = vmatpush1.msk.msra.mxu1 %vm8653_vm8, %v15436_v29  ;;  %11812 = vmatprep.mubr.f32.mxu1 %v14379_v9  ;;  %v12221_v29 = vpop.permute.xlu0 %12220 }
 0x58a   : > { %13954 = vmatprep.subr.msk.mxu1 %vm8653_vm8, %v15459_v12  ;;  %v12227_v12 = vpop.permute.xlu1 %12226  ;;  %v12239_v46 = vsel %vm1236_vm4, %v12219_v19, %v12221_v29  ;;  %v12240_v49 = vsel %vm1236_vm4, %v12221_v29, %v12223_v1 }
 0x58c   : > { %13953 = vmatmul.mubr.msk.f32.vlgmr.msra.gmra.mrb[12].mxu1 %vm8649_vm9, %v13950_v43 }
 0x58d   : > { %13955 = vmatpush1.msk.msra.mxu1 %vm8653_vm8, %v15450_v4  ;;  %11883 = vmatprep.mubr.f32.mxu1 %v14379_v9  ;;  %v12225_v4 = vpop.permute.xlu0 %12224 }
 0x58e   : > { %13957 = vmatprep.subr.msk.mxu1 %vm8653_vm8, %v15477_v34  ;;  %v12235_v34 = vsel %vm1236_vm4, %v12211_v7, %v12213_v11  ;;  %v12241_v47 = vsel %vm1236_vm4, %v12223_v1, %v12225_v4  ;;  %v12242_v53 = vsel %vm1236_vm4, %v12225_v4, %v12227_v12 }
 0x590   : > { %13956 = vmatmul.mubr.msk.f32.vlgmr.msra.gmra.mrb[14].mxu1 %vm8649_vm9, %v13950_v43 }
 0x591   : > { %13958 = vmatpush1.msk.msra.mxu1 %vm8653_vm8, %v15467_v16  ;;  %11954 = vmatprep.mubr.f32.mxu1 %v14379_v9  ;;  %v12229_v16 = vpop.permute.xlu0 %12228 }
 0x592   : > { %13960 = vmatprep.subr.msk.mxu1 %vm8653_vm8, %v15495_v39  ;;  %v12234_v39 = vsel %vm1236_vm4, %v12209_v17, %v12211_v7  ;;  %v12243_v20 = vsel %vm1236_vm4, %v12227_v12, %v12229_v16 }
 0x594   : > { %13959 = vmatmul.mubr.msk.f32.vlgmr.msra.gmra.mrb[16].mxu1 %vm8649_vm9, %v13950_v43 }
 0x595   : > { %13961 = vmatpush1.msk.msra.mxu1 %vm8653_vm8, %v15485_v37  ;;  %12025 = vmatprep.mubr.f32.mxu1 %v14379_v9  ;;  %v12736_v37 = vpop.permute.xlu1 %12735 }
 0x596   : > { %13963 = vmatprep.subr.msk.mxu1 %vm8653_vm8, %v15515_v61  ;;  %v13969_v61 = vld [vmem:[%s16185_s7 + $0x1c] sm:$0xf] }
 0x598   : > { %13962 = vmatmul.mubr.msk.f32.vlgmr.msra.gmra.mrb[18].mxu1 %vm8649_vm9, %v13950_v43 }
 0x599   : > { %13964 = vmatpush1.msk.msra.mxu1 %vm8653_vm8, %v15503_v52  ;;  %12096 = vmatprep.mubr.f32.mxu1 %v14379_v9  ;;  %v12237_v52 = vsel %vm1236_vm4, %v12215_v0, %v12217_v44  ;;  %v12231_v42 = vpop.permute.xlu1 %12230 }
 0x59a   : > { %13966 = vmatprep.subr.msk.mxu1 %vm8653_vm8, %v15688_v58  ;;  %v12236_v58 = vsel %vm1236_vm4, %v12213_v11, %v12215_v0  ;;  %v12244_v22 = vsel %vm1236_vm4, %v12229_v16, %v12231_v42 }
 0x59c   : > { %13965 = vmatmul.mubr.msk.f32.vlgmr.msra.gmra.mrb[20].mxu1 %vm8649_vm9, %v13950_v43 }
 0x59d   : > { %13967 = vmatpush1.msk.msra.mxu1 %vm8653_vm8, %v15523_v62  ;;  %12167 = vmatprep.mubr.f32.mxu1 %v14379_v9  ;;  %v12233_v62 = vpop.permute.xlu0 %12232  ;;  %v12734_v50 = vpop.permute.xlu1 %12733 }
 0x59e   : > { %13970 = vmatprep.subr.msk.mxu1 %vm8653_vm8, %v12235_v34  ;;  %v12245_v35 = vsel %vm1236_vm4, %v12231_v42, %v12233_v62  ;;  %v12759_v36 = vsel %vm4643_vm7, %v12734_v50, %v12736_v37 }
 0x5a0   : > { %13968 = vmatmul.mubr.msk.f32.vlgmr.msra.gmra.mrb[22].mxu1 %vm8649_vm9, %v13950_v43 }
 0x5a1   : > { %13971 = vmatpush1.msk.msra.mxu1 %vm8653_vm8, %v12234_v39  ;;  %12337 = vmatprep.mubr.f32.mxu1 %v14379_v9  ;;  %v12738_v48 = vpop.permute.xlu0 %12737  ;;  %v12742_v33 = vpop.permute.xlu1 %12741 }
 0x5a2   : > { %13973 = vmatprep.subr.msk.mxu1 %vm8653_vm8, %v12237_v52  ;;  %v12760_v18 = vsel %vm4643_vm7, %v12736_v37, %v12738_v48 }
 0x5a4   : > { %13972 = vmatmul.mubr.msk.f32.vlgmr.msra.gmra.mrb[12].mxu1 %vm8649_vm9, %v13969_v61 }
 0x5a5   : > { %13974 = vmatpush1.msk.msra.mxu1 %vm8653_vm8, %v12236_v58  ;;  %12408 = vmatprep.mubr.f32.mxu1 %v14379_v9  ;;  %v12740_v54 = vpop.permute.xlu0 %12739  ;;  %v12746_v40 = vpop.permute.xlu1 %12745 }
 0x5a6   : > { %13976 = vmatprep.subr.msk.mxu1 %vm8653_vm8, %v12239_v46  ;;  %v12762_v41 = vsel %vm4643_vm7, %v12740_v54, %v12742_v33  ;;  %v12761_v59 = vsel %vm4643_vm7, %v12738_v48, %v12740_v54 }
 0x5a8   : > { %13975 = vmatmul.mubr.msk.f32.vlgmr.msra.gmra.mrb[14].mxu1 %vm8649_vm9, %v13969_v61 }
 0x5a9   : > { %13977 = vmatpush1.msk.msra.mxu1 %vm8653_vm8, %v12238_v45  ;;  %12479 = vmatprep.mubr.f32.mxu1 %v14379_v9  ;;  %v12744_v38 = vpop.permute.xlu0 %12743  ;;  %v12750_v60 = vpop.permute.xlu1 %12749 }
 0x5aa   : > { %13979 = vmatprep.subr.msk.mxu1 %vm8653_vm8, %v12241_v47  ;;  %v12764_v63 = vsel %vm4643_vm7, %v12744_v38, %v12746_v40  ;;  %v12763_v55 = vsel %vm4643_vm7, %v12742_v33, %v12744_v38 }
 0x5ac   : > { %13978 = vmatmul.mubr.msk.f32.vlgmr.msra.gmra.mrb[16].mxu1 %vm8649_vm9, %v13969_v61 }
 0x5ad   : > { %13980 = vmatpush1.msk.msra.mxu1 %vm8653_vm8, %v12240_v49  ;;  %12550 = vmatprep.mubr.f32.mxu1 %v14379_v9  ;;  %v12748_v56 = vpop.permute.xlu0 %12747  ;;  %v12754_v10 = vpop.permute.xlu1 %12753 }
 0x5ae   : > { %13982 = vmatprep.subr.msk.mxu1 %vm8653_vm8, %v12243_v20  ;;  %v12766_v14 = vsel %vm4643_vm7, %v12748_v56, %v12750_v60  ;;  %v12765_v21 = vsel %vm4643_vm7, %v12746_v40, %v12748_v56 }
 0x5b0   : > { %13981 = vmatmul.mubr.msk.f32.vlgmr.msra.gmra.mrb[18].mxu1 %vm8649_vm9, %v13969_v61 }
 0x5b1   : > { %13983 = vmatpush1.msk.msra.mxu1 %vm8653_vm8, %v12242_v53  ;;  %12621 = vmatprep.mubr.f32.mxu1 %v14379_v9  ;;  %v12752_v57 = vpop.permute.xlu0 %12751  ;;  %v12758_v24 = vpop.permute.xlu1 %12757 }
 0x5b2   : > { %13985 = vmatprep.subr.msk.mxu1 %vm8653_vm8, %v12245_v35  ;;  %v12768_v6 = vsel %vm4643_vm7, %v12752_v57, %v12754_v10  ;;  %v12767_v25 = vsel %vm4643_vm7, %v12750_v60, %v12752_v57 }
 0x5b4   : > { %13984 = vmatmul.mubr.msk.f32.vlgmr.msra.gmra.mrb[20].mxu1 %vm8649_vm9, %v13969_v61 }
 0x5b5   : > { %13986 = vmatpush1.msk.msra.mxu1 %vm8653_vm8, %v12244_v22  ;;  %12692 = vmatprep.mubr.f32.mxu1 %v14379_v9  ;;  %v12756_v23 = vpop.permute.xlu0 %12755 }
 0x5b6   : > { %13989 = vmatprep.subr.msk.mxu1 %vm8653_vm8, %v12760_v18  ;;  %v12770_v26 = vsel %vm4643_vm7, %v12756_v23, %v12758_v24  ;;  %v12769_v27 = vsel %vm4643_vm7, %v12754_v10, %v12756_v23 }
 0x5b8   : > { %13987 = vmatmul.mubr.msk.f32.vlgmr.msra.gmra.mrb[22].mxu1 %vm8649_vm9, %v13969_v61 }
 0x5b9   : > { %13990 = vmatpush1.msk.msra.mxu1 %vm8653_vm8, %v12759_v36  ;;  %12862 = vmatprep.mubr.f32.mxu1 %v14379_v9  ;;  %v16021_v3 = vpop.permute.xlu0 %8627 }
 0x5ba   : > { %13992 = vmatprep.subr.msk.mxu1 %vm8653_vm8, %v12762_v41 }
 0x5bc   : > { %13991 = vmatmul.mubr.msk.f32.vlgmr.msra.gmra.mrb[12].mxu1 %vm8649_vm9, %v13988_v51 }
 0x5bd   : > { %13993 = vmatpush1.msk.msra.mxu1 %vm8653_vm8, %v12761_v59  ;;  %12933 = vmatprep.mubr.f32.mxu1 %v14379_v9 }
 0x5be   : > { %13995 = vmatprep.subr.msk.mxu1 %vm8653_vm8, %v12764_v63 }
 0x5c0   : > { %13994 = vmatmul.mubr.msk.f32.vlgmr.msra.gmra.mrb[14].mxu1 %vm8649_vm9, %v13988_v51 }
 0x5c1   : > { %13996 = vmatpush1.msk.msra.mxu1 %vm8653_vm8, %v12763_v55  ;;  %13004 = vmatprep.mubr.f32.mxu1 %v14379_v9 }
 0x5c2   : > { %13998 = vmatprep.subr.msk.mxu1 %vm8653_vm8, %v12766_v14 }
 0x5c4   : > { %13997 = vmatmul.mubr.msk.f32.vlgmr.msra.gmra.mrb[16].mxu1 %vm8649_vm9, %v13988_v51 }
 0x5c5   : > { %13999 = vmatpush1.msk.msra.mxu1 %vm8653_vm8, %v12765_v21  ;;  %13075 = vmatprep.mubr.f32.mxu1 %v14379_v9 }
 0x5c6   : > { %14001 = vmatprep.subr.msk.mxu1 %vm8653_vm8, %v12768_v6 }
 0x5c8   : > { %14000 = vmatmul.mubr.msk.f32.vlgmr.msra.gmra.mrb[18].mxu1 %vm8649_vm9, %v13988_v51 }
 0x5c9   : > { %14002 = vmatpush1.msk.msra.mxu1 %vm8653_vm8, %v12767_v25  ;;  %13146 = vmatprep.mubr.f32.mxu1 %v14379_v9 }
 0x5ca   : > { %14004 = vmatprep.subr.msk.mxu1 %vm8653_vm8, %v12770_v26 }
 0x5cc   : > { %14003 = vmatmul.mubr.msk.f32.vlgmr.msra.gmra.mrb[20].mxu1 %vm8649_vm9, %v13988_v51 }
 0x5cd   : > { %14005 = vmatpush1.msk.msra.mxu1 %vm8653_vm8, %v12769_v27  ;;  %13217 = vmatprep.mubr.f32.mxu1 %v14379_v9 }
 0x5d0   : > { %14006 = vmatmul.mubr.msk.f32.vlgmr.msra.gmra.mrb[22].mxu1 %vm8649_vm9, %v13988_v51 }
 0x68f   : > { %v12864_v5 = vpop.f32.mrb[12].mxu1 }
 0x690   : > { %v14072_v7 = vadd.f32 %v12864_v5, %v16021_v3  ;;  %v12866_v11 = vpop.f32.mrb[13].mxu1 }
 0x691   : > { %v14073_v13 = vadd.f32 %v12866_v11, %v16021_v3 }
 0x692   : > { %v13236_v15 = vmax.f32 %v14072_v7, 0.0 }
 0x693   : > { %v13237_v9 = vmax.f32 %v14073_v13, 0.0  ;;  %v12935_v17 = vpop.f32.mrb[14].mxu1 }
 0x694   : > { %v13255_v0 = vrot.slane %v13236_v15, %v16024_v8  ;;  %v14074_v43 = vadd.f32 %v12935_v17, %v16021_v3  ;;  %v12937_v44 = vpop.f32.mrb[15].mxu1 }
 0x695   : > { %v13289_v19 = vrot.slane %v13237_v9, %v16024_v8  ;;  %v14075_v29 = vadd.f32 %v12937_v44, %v16021_v3 }
 0x696   : > { %v13256_v1 = vcombine.high %v13255_v0, %v13255_v0  ;;  %v13263_v4 = vrot.slane %v13255_v0, %v16024_v8  ;;  %v13238_v12 = vmax.f32 %v14074_v43, 0.0 }
 0x697   : > { %v13290_v16 = vcombine.high %v13289_v19, %v13289_v19  ;;  %v13297_v34 = vrot.slane %v13289_v19, %v16024_v8  ;;  %v13239_v37 = vmax.f32 %v14075_v29, 0.0  ;;  %v13006_v39 = vpop.f32.mrb[16].mxu1 }
 0x698   : > { %v13270_v52 = vrot.slane %v13256_v1, %v16024_v8  ;;  %v13271_v61 = vcombine.high %v13263_v4, %v13263_v4  ;;  %13278 = vst.msk [vmem:[%s16033_s21] sm:$0x1] %vm13277_vm10, %v13263_v4  ;;  %v13322_v62 = vrot.slane %v13238_v12, %v16024_v8  ;;  %v14076_v58 = vadd.f32 %v13006_v39, %v16021_v3  ;;  %v13008_v42 = vpop.f32.mrb[17].mxu1 }
 0x699   : > { %v13304_v46 = vrot.slane %v13290_v16, %v16024_v8  ;;  %v13305_v45 = vcombine.high %v13297_v34, %v13297_v34  ;;  %13311 = vst.msk [vmem:[%s16033_s21 + $0x1] sm:$0x1] %vm13277_vm10, %v13297_v34  ;;  %v13355_v48 = vrot.slane %v13239_v37, %v16024_v8  ;;  %v14077_v47 = vadd.f32 %v13008_v42, %v16021_v3 }
 0x69a   : > { %v13272_v50 = vcombine.high %v13270_v52, %v13270_v52  ;;  %13279 = vst.msk [vmem:[%s16033_s21 + $0x10] sm:$0x1] %vm13277_vm10, %v13270_v52  ;;  %13280 = vst.msk [vmem:[%s16033_s21 + $0x20] sm:$0x1] %vm13277_vm10, %v13271_v61  ;;  %v13323_v49 = vcombine.high %v13322_v62, %v13322_v62  ;;  %v13330_v20 = vrot.slane %v13322_v62, %v16024_v8  ;;  %v13240_v54 = vmax.f32 %v14076_v58, 0.0 }
 0x69b   : > { %v13306_v53 = vcombine.high %v13304_v46, %v13304_v46  ;;  %13312 = vst.msk [vmem:[%s16033_s21 + $0x11] sm:$0x1] %vm13277_vm10, %v13304_v46  ;;  %13313 = vst.msk [vmem:[%s16033_s21 + $0x21] sm:$0x1] %vm13277_vm10, %v13305_v45  ;;  %v13356_v33 = vcombine.high %v13355_v48, %v13355_v48  ;;  %v13363_v35 = vrot.slane %v13355_v48, %v16024_v8  ;;  %v13241_v22 = vmax.f32 %v14077_v47, 0.0  ;;  %v13077_v38 = vpop.f32.mrb[18].mxu1 }
 0x69c   : > { %13281 = vst.msk [vmem:[%s16033_s21 + $0x30] sm:$0x1] %vm13277_vm10, %v13272_v50  ;;  %v13337_v18 = vrot.slane %v13323_v49, %v16024_v8  ;;  %v13338_v40 = vcombine.high %v13330_v20, %v13330_v20  ;;  %13344 = vst.msk [vmem:[%s16033_s21 + $0x2] sm:$0x1] %vm13277_vm10, %v13330_v20  ;;  %v13388_v36 = vrot.slane %v13240_v54, %v16024_v8  ;;  %v13079_v51 = vpop.f32.mrb[19].mxu1 }
 0x69d   : > { %v14078_v41 = vadd.f32 %v13077_v38, %v16021_v3  ;;  %13314 = vst.msk [vmem:[%s16033_s21 + $0x31] sm:$0x1] %vm13277_vm10, %v13306_v53  ;;  %v13370_v56 = vrot.slane %v13356_v33, %v16024_v8  ;;  %v13371_v59 = vcombine.high %v13363_v35, %v13363_v35  ;;  %13377 = vst.msk [vmem:[%s16033_s21 + $0x3] sm:$0x1] %vm13277_vm10, %v13363_v35 }
 0x69e   : > { %v13421_v60 = vrot.slane %v13241_v22, %v16024_v8  ;;  %v14079_v63 = vadd.f32 %v13079_v51, %v16021_v3  ;;  %v13339_v55 = vcombine.high %v13337_v18, %v13337_v18  ;;  %13345 = vst.msk [vmem:[%s16033_s21 + $0x12] sm:$0x1] %vm13277_vm10, %v13337_v18  ;;  %13346 = vst.msk [vmem:[%s16033_s21 + $0x22] sm:$0x1] %vm13277_vm10, %v13338_v40 }
 0x69f   : > { %v13389_v57 = vcombine.high %v13388_v36, %v13388_v36  ;;  %v13396_v14 = vrot.slane %v13388_v36, %v16024_v8  ;;  %v13242_v10 = vmax.f32 %v14078_v41, 0.0  ;;  %v13372_v21 = vcombine.high %v13370_v56, %v13370_v56  ;;  %13378 = vst.msk [vmem:[%s16033_s21 + $0x13] sm:$0x1] %vm13277_vm10, %v13370_v56  ;;  %13379 = vst.msk [vmem:[%s16033_s21 + $0x23] sm:$0x1] %vm13277_vm10, %v13371_v59  ;;  %v13148_v25 = vpop.f32.mrb[20].mxu1 }
 0x6a0   : > { %v13422_v6 = vcombine.high %v13421_v60, %v13421_v60  ;;  %v13429_v23 = vrot.slane %v13421_v60, %v16024_v8  ;;  %v13243_v24 = vmax.f32 %v14079_v63, 0.0  ;;  %13347 = vst.msk [vmem:[%s16033_s21 + $0x32] sm:$0x1] %vm13277_vm10, %v13339_v55  ;;  %v14080_v30 = vadd.f32 %v13148_v25, %v16021_v3  ;;  %v13150_v31 = vpop.f32.mrb[21].mxu1 }
 0x6a1   : > { %v13403_v26 = vrot.slane %v13389_v57, %v16024_v8  ;;  %v13404_v27 = vcombine.high %v13396_v14, %v13396_v14  ;;  %13410 = vst.msk [vmem:[%s16033_s21 + $0x4] sm:$0x1] %vm13277_vm10, %v13396_v14  ;;  %v13454_v28 = vrot.slane %v13242_v10, %v16024_v8  ;;  %13380 = vst.msk [vmem:[%s16033_s21 + $0x33] sm:$0x1] %vm13277_vm10, %v13372_v21 }
 0x6a2   : > { %v13436_v32 = vrot.slane %v13422_v6, %v16024_v8  ;;  %v13437_v2 = vcombine.high %v13429_v23, %v13429_v23  ;;  %13443 = vst.msk [vmem:[%s16033_s21 + $0x5] sm:$0x1] %vm13277_vm10, %v13429_v23  ;;  %v13487_v5 = vrot.slane %v13243_v24, %v16024_v8  ;;  %v14081_v7 = vadd.f32 %v13150_v31, %v16021_v3 }
 0x6a3   : > { %v13405_v11 = vcombine.high %v13403_v26, %v13403_v26  ;;  %13411 = vst.msk [vmem:[%s16033_s21 + $0x14] sm:$0x1] %vm13277_vm10, %v13403_v26  ;;  %13412 = vst.msk [vmem:[%s16033_s21 + $0x24] sm:$0x1] %vm13277_vm10, %v13404_v27  ;;  %v13455_v13 = vcombine.high %v13454_v28, %v13454_v28  ;;  %v13462_v15 = vrot.slane %v13454_v28, %v16024_v8  ;;  %v13244_v9 = vmax.f32 %v14080_v30, 0.0  ;;  %v13219_v19 = vpop.f32.mrb[22].mxu1 }
 0x6a4   : > { %v13438_v17 = vcombine.high %v13436_v32, %v13436_v32  ;;  %13444 = vst.msk [vmem:[%s16033_s21 + $0x15] sm:$0x1] %vm13277_vm10, %v13436_v32  ;;  %13445 = vst.msk [vmem:[%s16033_s21 + $0x25] sm:$0x1] %vm13277_vm10, %v13437_v2  ;;  %v13488_v0 = vcombine.high %v13487_v5, %v13487_v5  ;;  %v13495_v43 = vrot.slane %v13487_v5, %v16024_v8  ;;  %v13245_v44 = vmax.f32 %v14081_v7, 0.0  ;;  %v13221_v16 = vpop.f32.mrb[23].mxu1 }
 0x6a5   : > { %13413 = vst.msk [vmem:[%s16033_s21 + $0x34] sm:$0x1] %vm13277_vm10, %v13405_v11  ;;  %v13469_v29 = vrot.slane %v13455_v13, %v16024_v8  ;;  %v13470_v1 = vcombine.high %v13462_v15, %v13462_v15  ;;  %13476 = vst.msk [vmem:[%s16033_s21 + $0x6] sm:$0x1] %vm13277_vm10, %v13462_v15  ;;  %v13520_v4 = vrot.slane %v13244_v9, %v16024_v8 }
 0x6a6   : > { %v14082_v12 = vadd.f32 %v13219_v19, %v16021_v3  ;;  %13446 = vst.msk [vmem:[%s16033_s21 + $0x35] sm:$0x1] %vm13277_vm10, %v13438_v17  ;;  %v13502_v34 = vrot.slane %v13488_v0, %v16024_v8  ;;  %v13503_v37 = vcombine.high %v13495_v43, %v13495_v43  ;;  %13509 = vst.msk [vmem:[%s16033_s21 + $0x7] sm:$0x1] %vm13277_vm10, %v13495_v43 }
 0x6a7   : > { %v13553_v39 = vrot.slane %v13245_v44, %v16024_v8  ;;  %v14083_v52 = vadd.f32 %v13221_v16, %v16021_v3  ;;  %v13471_v61 = vcombine.high %v13469_v29, %v13469_v29  ;;  %13477 = vst.msk [vmem:[%s16033_s21 + $0x16] sm:$0x1] %vm13277_vm10, %v13469_v29  ;;  %13478 = vst.msk [vmem:[%s16033_s21 + $0x26] sm:$0x1] %vm13277_vm10, %v13470_v1 }
 0x6a8   : > { %v13521_v62 = vcombine.high %v13520_v4, %v13520_v4  ;;  %v13528_v58 = vrot.slane %v13520_v4, %v16024_v8  ;;  %v13246_v42 = vmax.f32 %v14082_v12, 0.0  ;;  %v13504_v46 = vcombine.high %v13502_v34, %v13502_v34  ;;  %13510 = vst.msk [vmem:[%s16033_s21 + $0x17] sm:$0x1] %vm13277_vm10, %v13502_v34  ;;  %13511 = vst.msk [vmem:[%s16033_s21 + $0x27] sm:$0x1] %vm13277_vm10, %v13503_v37 }
 0x6a9   : > { %v13554_v3 = vcombine.high %v13553_v39, %v13553_v39  ;;  %v13561_v45 = vrot.slane %v13553_v39, %v16024_v8  ;;  %v13247_v48 = vmax.f32 %v14083_v52, 0.0  ;;  %13479 = vst.msk [vmem:[%s16033_s21 + $0x36] sm:$0x1] %vm13277_vm10, %v13471_v61 }
 0x6aa   : > { %v13535_v47 = vrot.slane %v13521_v62, %v16024_v8  ;;  %v13536_v50 = vcombine.high %v13528_v58, %v13528_v58  ;;  %13542 = vst.msk [vmem:[%s16033_s21 + $0x8] sm:$0x1] %vm13277_vm10, %v13528_v58  ;;  %v13586_v49 = vrot.slane %v13246_v42, %v16024_v8  ;;  %13512 = vst.msk [vmem:[%s16033_s21 + $0x37] sm:$0x1] %vm13277_vm10, %v13504_v46 }
 0x6ab   : > { %v13568_v20 = vrot.slane %v13554_v3, %v16024_v8  ;;  %v13569_v54 = vcombine.high %v13561_v45, %v13561_v45  ;;  %13575 = vst.msk [vmem:[%s16033_s21 + $0x9] sm:$0x1] %vm13277_vm10, %v13561_v45  ;;  %v13619_v53 = vrot.slane %v13247_v48, %v16024_v8 }
 0x6ac   : > { %v13537_v33 = vcombine.high %v13535_v47, %v13535_v47  ;;  %13543 = vst.msk [vmem:[%s16033_s21 + $0x18] sm:$0x1] %vm13277_vm10, %v13535_v47  ;;  %13544 = vst.msk [vmem:[%s16033_s21 + $0x28] sm:$0x1] %vm13277_vm10, %v13536_v50  ;;  %v13587_v35 = vcombine.high %v13586_v49, %v13586_v49  ;;  %v13594_v22 = vrot.slane %v13586_v49, %v16024_v8 }
 0x6ad   : > { %v13570_v38 = vcombine.high %v13568_v20, %v13568_v20  ;;  %13576 = vst.msk [vmem:[%s16033_s21 + $0x19] sm:$0x1] %vm13277_vm10, %v13568_v20  ;;  %13577 = vst.msk [vmem:[%s16033_s21 + $0x29] sm:$0x1] %vm13277_vm10, %v13569_v54  ;;  %v13620_v18 = vcombine.high %v13619_v53, %v13619_v53  ;;  %v13627_v40 = vrot.slane %v13619_v53, %v16024_v8 }
 0x6ae   : > { %13545 = vst.msk [vmem:[%s16033_s21 + $0x38] sm:$0x1] %vm13277_vm10, %v13537_v33  ;;  %v13601_v36 = vrot.slane %v13587_v35, %v16024_v8  ;;  %v13602_v41 = vcombine.high %v13594_v22, %v13594_v22  ;;  %13608 = vst.msk [vmem:[%s16033_s21 + $0xa] sm:$0x1] %vm13277_vm10, %v13594_v22 }
 0x6af   : > { %13578 = vst.msk [vmem:[%s16033_s21 + $0x39] sm:$0x1] %vm13277_vm10, %v13570_v38  ;;  %v13634_v51 = vrot.slane %v13620_v18, %v16024_v8  ;;  %v13635_v56 = vcombine.high %v13627_v40, %v13627_v40  ;;  %13641 = vst.msk [vmem:[%s16033_s21 + $0xb] sm:$0x1] %vm13277_vm10, %v13627_v40 }
 0x6b0   : > { %v13603_v59 = vcombine.high %v13601_v36, %v13601_v36  ;;  %13609 = vst.msk [vmem:[%s16033_s21 + $0x1a] sm:$0x1] %vm13277_vm10, %v13601_v36  ;;  %13610 = vst.msk [vmem:[%s16033_s21 + $0x2a] sm:$0x1] %vm13277_vm10, %v13602_v41 }
 0x6b1   : > { %v13636_v60 = vcombine.high %v13634_v51, %v13634_v51  ;;  %13642 = vst.msk [vmem:[%s16033_s21 + $0x1b] sm:$0x1] %vm13277_vm10, %v13634_v51  ;;  %13643 = vst.msk [vmem:[%s16033_s21 + $0x2b] sm:$0x1] %vm13277_vm10, %v13635_v56 }
 0x6b2   : > { %13611 = vst.msk [vmem:[%s16033_s21 + $0x3a] sm:$0x1] %vm13277_vm10, %v13603_v59 }
 0x6b3   : > { %13644 = vst.msk [vmem:[%s16033_s21 + $0x3b] sm:$0x1] %vm13277_vm10, %v13636_v60 }
 0x6b4 PF: > { %s19_s30 = sadd.s32 1, %s14377_s30  }
 0x6b5   : > { %p16_p4 = scmp.ge.s32.totalorder %s19_s30, 4  }
 0x6b7   :  { %18 = sbr.rel (!%p16_p4) target bundleno = 1 (0x1), region = 108 }

</bundles_post_ra>
